<compile_context>
chip_gen: v7x
topology: tpu7x:2x2x1
jax: 0.10.0
libtpu: 0.0.40
codegen_flags: <defaults>
</compile_context>

<pallas_src>
import functools

import numpy as np
import jax
import jax.numpy as jnp
from jax.experimental import pallas as pl
from jax.experimental.pallas import tpu as pltpu


# --------------------------------------------------------------------------
# helpers
# --------------------------------------------------------------------------


def _tree_sum(parts):
    """Pairwise (tree) sum of a list of arrays -> breaks serial add chains."""
    xs = list(parts)
    while len(xs) > 1:
        nxt = [xs[i] + xs[i + 1] for i in range(0, len(xs) - 1, 2)]
        if len(xs) % 2:
            nxt.append(xs[-1])
        xs = nxt
    return xs[0]


def _resident_spec(shape):
    """BlockSpec for a weight that stays VMEM-resident across the whole grid."""
    nd = len(shape)
    return pl.BlockSpec(shape, lambda t, _nd=nd: (0,) * _nd)


# --------------------------------------------------------------------------
# fused kernel: conv1+ReLU, conv2+ReLU, conv3+ReLU, critic/actor heads,
# Categorical log-softmax -- all for one tile of BT observations.
# --------------------------------------------------------------------------


def _acn_fused_kernel(cols_ref, w1_ref, b1_ref, w2_ref, b2_ref, w3_ref, b3_ref,
                      wh1_ref, bh1_ref, wh2_ref, bh2_ref, out_ref, *, out_dim):
    f32 = jnp.float32
    bf16 = jnp.bfloat16

    bt = out_ref.shape[0]                       # batch tile (8)
    c1 = w1_ref.shape[1]                        # conv1 out channels (32)
    c2 = w2_ref.shape[1]                        # conv2 out channels (64)
    n_k2 = w2_ref.shape[0] // c1                # conv2 kernel positions (16)
    n_p2 = w3_ref.shape[0] // c2                # conv2 output pixels    (9)
    rows_k = n_p2 * bt                          # rows per conv2 kernel pos (72)

    # ---- conv1: one big MXU matmul on the duplicated im2col rows ----------
    # cols row = (k*n_p2 + p2)*bt + b  ->  act1 keeps the same row order.
    act1 = jnp.dot(cols_ref[...], w1_ref[...], preferred_element_type=f32)
    act1 = jnp.maximum(act1 + b1_ref[...], 0.0)            # (n_k2*n_p2*bt, 32) f32

    # ---- conv2: 16 contiguous-slice dots, tree-summed (independent accs) --
    w2 = w2_ref[...]
    parts2 = []
    for k in range(n_k2):
        lhs = act1[k * rows_k:(k + 1) * rows_k, :].astype(bf16)      # (72, 32)
        parts2.append(jnp.dot(lhs, w2[k * c1:(k + 1) * c1, :],
                              preferred_element_type=f32))
    act2 = jnp.maximum(_tree_sum(parts2) + b2_ref[...], 0.0)         # (72, 64)
    # act2 row = p2*bt + b

    # ---- conv3: 3x3 kernel covers the whole 3x3 grid -> 9 dots, tree-sum --
    w3 = w3_ref[...]
    parts3 = []
    for p in range(n_p2):
        lhs = act2[p * bt:(p + 1) * bt, :].astype(bf16)              # (BT, 64)
        parts3.append(jnp.dot(lhs, w3[p * c2:(p + 1) * c2, :],
                              preferred_element_type=f32))
    emb = jnp.maximum(_tree_sum(parts3) + b3_ref[...], 0.0)          # (BT, 128)

    # ---- merged critic/actor heads (no activation between the Linears) ----
    h = jnp.dot(emb.astype(bf16), wh1_ref[...],
                preferred_element_type=f32) + bh1_ref[...]           # (BT, 256)
    row = jnp.dot(h.astype(bf16), wh2_ref[...],
                  preferred_element_type=f32) + bh2_ref[...]         # (BT, 128)
    # row layout: [ value | actor logits (out_dim lanes) | exact zeros ]

    # ---- Categorical log-softmax over the logit lanes, f32 epilogue -------
    lane = jax.lax.broadcasted_iota(jnp.int32, row.shape, 1)
    is_logit = (lane >= 1) & (lane < 1 + out_dim)
    masked = jnp.where(is_logit, row, jnp.full_like(row, -1e30))
    m = jnp.max(masked, axis=-1, keepdims=True)
    ex = jnp.where(is_logit, jnp.exp(masked - m), 0.0)
    lse = jnp.log(jnp.sum(ex, axis=-1, keepdims=True)) + m
    out_ref[...] = jnp.where(is_logit, row - lse, row)   # lane-dense (BT,128) store


# --------------------------------------------------------------------------
# parameter init + one-time prep (weight repacking, im2col index table)
# --------------------------------------------------------------------------


def init_params(key, input_dim, output_dim, hidden_size=128):
    """Deterministic synthetic parameters with the shapes ACN.__init__ implies.
    Linear weights are stored as (in_features, out_features) so layers compute
    x @ W + b."""
    C, H, W = input_dim

    def nrm(k, shape, scale=0.05):
        return scale * jax.random.normal(k, shape, dtype=jnp.float32)

    ks = jax.random.split(key, 14)
    params = dict(
        conv1_w=nrm(ks[0], (32, C, 8, 8)), conv1_b=nrm(ks[1], (32,)),
        conv2_w=nrm(ks[2], (64, 32, 4, 4)), conv2_b=nrm(ks[3], (64,)),
        conv3_w=nrm(ks[4], (128, 64, 3, 3)), conv3_b=nrm(ks[5], (128,)),
    )
    h1, w1 = (H - 8) // 4 + 1, (W - 8) // 4 + 1
    h2, w2 = (h1 - 4) // 2 + 1, (w1 - 4) // 2 + 1
    h3, w3 = (h2 - 3) // 1 + 1, (w2 - 3) // 1 + 1
    emb_out = 128 * h3 * w3
    params.update(
        critic1_w=nrm(ks[6], (emb_out, hidden_size)), critic1_b=nrm(ks[7], (hidden_size,)),
        critic2_w=nrm(ks[8], (hidden_size, 1)), critic2_b=nrm(ks[9], (1,)),
        actor1_w=nrm(ks[10], (emb_out, hidden_size)), actor1_b=nrm(ks[11], (hidden_size,)),
        actor2_w=nrm(ks[12], (hidden_size, output_dim)), actor2_b=nrm(ks[13], (output_dim,)),
    )
    return params


def prepare_params(params, input_dim, output_dim):
    """One-time weight repacking (bf16 matmul weights, merged heads) and the
    conv1->conv2 fused im2col index table.  All hoisted out of the forward."""
    C, H, W = input_dim
    h1, w1 = (H - 8) // 4 + 1, (W - 8) // 4 + 1
    h2, w2 = (h1 - 4) // 2 + 1, (w1 - 4) // 2 + 1
    h3, w3 = (h2 - 3) // 1 + 1, (w2 - 3) // 1 + 1
    assert h3 == 1 and w3 == 1, "fused kernel is specialized to conv stacks ending at 1x1"

    c1 = params["conv1_w"].shape[0]        # 32
    c2 = params["conv2_w"].shape[0]        # 64
    k2 = params["conv2_w"].shape[2]        # 4
    n_p2, n_k2 = h2 * w2, k2 * k2          # 9, 16

    # Fused conv1-im2col / conv2-im2col gather table: one row per
    # (conv2 kernel position k, conv2 output pixel p2); the conv2 selection
    # step is thereby folded into the wrapper-side gather (no sel matmul).
    idx = np.empty((n_k2 * n_p2, C * 64), dtype=np.int32)
    for ki in range(k2):
        for kj in range(k2):
            k = ki * k2 + kj
            for oy in range(h2):
                for ox in range(w2):
                    p2 = oy * w2 + ox
                    qy, qx = 2 * oy + ki, 2 * ox + kj          # conv1 output pixel
                    r = k * n_p2 + p2
                    col = 0
                    for ci in range(C):
                        for u in range(8):
                            for v in range(8):
                                idx[r, col] = ci * H * W + (4 * qy + u) * W + (4 * qx + v)
                                col += 1

    f32, bf16 = jnp.float32, jnp.bfloat16
    hidden = params["critic1_w"].shape[1]
    n_pad = 128                            # lane-dense packed head-output width
    assert output_dim + 1 <= n_pad

    # merged 2nd-layer head: block-diagonal (2*hidden, 128); col 0 = value,
    # cols 1..1+output_dim = actor logits, remaining lanes stay exactly 0.
    wh2 = np.zeros((2 * hidden, n_pad), np.float32)
    wh2[:hidden, 0:1] = np.asarray(params["critic2_w"], np.float32)
    wh2[hidden:, 1:1 + output_dim] = np.asarray(params["actor2_w"], np.float32)
    bh2 = np.zeros((1, n_pad), np.float32)
    bh2[0, 0] = float(np.asarray(params["critic2_b"])[0])
    bh2[0, 1:1 + output_dim] = np.asarray(params["actor2_b"], np.float32)

    return dict(
        gather_idx=jnp.asarray(idx),                                                       # (144, C*64)
        w1=jnp.asarray(params["conv1_w"]).reshape(c1, C * 64).T.astype(bf16),              # (C*64, 32)
        b1=jnp.asarray(params["conv1_b"]).reshape(1, -1).astype(f32),
        w2=jnp.asarray(params["conv2_w"]).transpose(2, 3, 1, 0).reshape(n_k2 * c1, c2).astype(bf16),   # (512, 64)
        b2=jnp.asarray(params["conv2_b"]).reshape(1, -1).astype(f32),
        w3=jnp.asarray(params["conv3_w"]).transpose(2, 3, 1, 0).reshape(n_p2 * c2, 128).astype(bf16),  # (576, 128)
        b3=jnp.asarray(params["conv3_b"]).reshape(1, -1).astype(f32),
        wh1=jnp.concatenate([params["critic1_w"], params["actor1_w"]], axis=1).astype(bf16),           # (128, 256)
        bh1=jnp.concatenate([params["critic1_b"], params["actor1_b"]]).reshape(1, -1).astype(f32),
        wh2=jnp.asarray(wh2).astype(bf16),                                                 # (256, 128)
        bh2=jnp.asarray(bh2).astype(f32),
    )


# --------------------------------------------------------------------------
# forward
# --------------------------------------------------------------------------


def make_acn_forward(output_dim, batch_tile=8):
    assert batch_tile % 8 == 0, "batch tile must keep row slices 8-aligned"
    kernel = functools.partial(_acn_fused_kernel, out_dim=output_dim)

    @jax.jit
    def forward(prep, x):
        if x.ndim == 3:                      # single observation, like x.unsqueeze(0)
            x = x[None]
        B = x.shape[0]
        bt = batch_tile
        T = -(-B // bt)                      # cdiv
        pad = T * bt - B

        idx = prep["gather_idx"]
        R, CK = idx.shape                    # 144, C*64

        # Batched im2col gather (one XLA op) + layout plumbing so every
        # in-kernel row slice is contiguous: tile row = (k*9 + p2)*bt + b.
        x_flat = x.reshape(B, -1)
        if pad:
            x_flat = jnp.pad(x_flat, ((0, pad), (0, 0)))
        cols = jnp.take(x_flat, idx.reshape(-1), axis=1).reshape(T, bt, R, CK)
        cols = cols.transpose(0, 2, 1, 3).reshape(T, R * bt, CK).astype(jnp.bfloat16)

        weights = (prep["w1"], prep["b1"], prep["w2"], prep["b2"],
                   prep["w3"], prep["b3"], prep["wh1"], prep["bh1"],
                   prep["wh2"], prep["bh2"])
        n_pad = prep["wh2"].shape[1]

        in_specs = [pl.BlockSpec((None, R * bt, CK), lambda t: (t, 0, 0))]
        in_specs += [_resident_spec(w.shape) for w in weights]   # fetched once, VMEM-resident

        out = pl.pallas_call(
            kernel,
            out_shape=jax.ShapeDtypeStruct((T * bt, n_pad), jnp.float32),
            grid=(T,),
            in_specs=in_specs,
            out_specs=pl.BlockSpec((bt, n_pad), lambda t: (t, 0)),
            compiler_params=pltpu.CompilerParams(
                dimension_semantics=("parallel",)),     # 2x on v7x's two TCs
        )(cols, *weights)

        value = out[:B, 0:1]                        # (B, 1)
        log_probs = out[:B, 1:1 + output_dim]       # (B, output_dim) -- Categorical's normalized logits
        return value, log_probs

    return forward


# --------------------------------------------------------------------------
# pure-JAX reference (batched)
# --------------------------------------------------------------------------


def acn_reference(params, x):
    """Pure-JAX reference (XLA conv + matmuls) for correctness checking."""
    def conv_relu(h, w, b, stride):
        out = jax.lax.conv_general_dilated(
            h, w, window_strides=(stride, stride), padding="VALID",
            dimension_numbers=("NCHW", "OIHW", "NCHW"))
        return jax.nn.relu(out + b[None, :, None, None])

    h = conv_relu(x, params["conv1_w"], params["conv1_b"], 4)
    h = conv_relu(h, params["conv2_w"], params["conv2_b"], 2)
    h = conv_relu(h, params["conv3_w"], params["conv3_b"], 1)
    emb = h.reshape(x.shape[0], -1)
    v = emb @ params["critic1_w"] + params["critic1_b"]
    value = v @ params["critic2_w"] + params["critic2_b"]
    a = emb @ params["actor1_w"] + params["actor1_b"]
    logits = a @ params["actor2_w"] + params["actor2_b"]
    return value, jax.nn.log_softmax(logits, axis=-1)


# --------------------------------------------------------------------------


if __name__ == "__main__":
    # Smallest spatial extent compatible with the 8/4 -> 4/2 -> 3/1 conv stack is 36.
    input_dim = (4, 36, 36)   # (C, H, W)
    output_dim = 6
    batch = 16                # two grid tiles of 8 observations each

    key = jax.random.PRNGKey(0)
    pkey, xkey = jax.random.split(key)
    params = init_params(pkey, input_dim, output_dim)
    x = jax.random.normal(xkey, (batch,) + input_dim, dtype=jnp.float32)

    prep = prepare_params(params, input_dim, output_dim)   # one-time weight repack
    forward = make_acn_forward(output_dim, batch_tile=8)

    value, policy_logprobs = forward(prep, x)
    jax.block_until_ready((value, policy_logprobs))

    assert value.shape == (batch, 1)
    assert policy_logprobs.shape == (batch, output_dim)

    # numerical sanity check against a plain-XLA reference (loose tol: kernel
    # uses bf16 weights/activations with f32 accumulation).
    ref_value, ref_logp = jax.jit(acn_reference)(params, x)
    assert float(jnp.max(jnp.abs(value - ref_value))) < 5e-2
    assert float(jnp.max(jnp.abs(policy_logprobs - ref_logp))) < 5e-2
    # log-probs must be normalized
    assert float(jnp.max(jnp.abs(jnp.sum(jnp.exp(policy_logprobs), -1) - 1.0))) < 1e-3

    print("KERNEL_OK")
</pallas_src>

<mosaic_0001>
module attributes {stable_mosaic.version = 11 : i64} {
  func.func @_acn_fused_kernel(%arg0: i32, %arg1: memref<1x1152x256xbf16, #tpu.memory_space<vmem>>, %arg2: memref<256x32xbf16, #tpu.memory_space<vmem>>, %arg3: memref<1x32xf32, #tpu.memory_space<vmem>>, %arg4: memref<512x64xbf16, #tpu.memory_space<vmem>>, %arg5: memref<1x64xf32, #tpu.memory_space<vmem>>, %arg6: memref<576x128xbf16, #tpu.memory_space<vmem>>, %arg7: memref<1x128xf32, #tpu.memory_space<vmem>>, %arg8: memref<128x256xbf16, #tpu.memory_space<vmem>>, %arg9: memref<1x256xf32, #tpu.memory_space<vmem>>, %arg10: memref<256x128xbf16, #tpu.memory_space<vmem>>, %arg11: memref<1x128xf32, #tpu.memory_space<vmem>>, %arg12: memref<8x128xf32, #tpu.memory_space<vmem>>) attributes {dimension_semantics = [#tpu.dimension_semantics<parallel>], iteration_bounds = array<i64: 2>, scalar_prefetch = 0 : i64, scratch_operands = 0 : i64, tpu.core_type = #tpu.core_type<tc>, window_params = [{transform_indices = @transform_0, window_bounds = array<i64: 1, 1152, 256>}, {pipeline_mode = #tpu.pipeline_mode<synchronous>, transform_indices = @transform_1, window_bounds = array<i64: 256, 32>}, {pipeline_mode = #tpu.pipeline_mode<synchronous>, transform_indices = @transform_2, window_bounds = array<i64: 1, 32>}, {pipeline_mode = #tpu.pipeline_mode<synchronous>, transform_indices = @transform_3, window_bounds = array<i64: 512, 64>}, {pipeline_mode = #tpu.pipeline_mode<synchronous>, transform_indices = @transform_4, window_bounds = array<i64: 1, 64>}, {pipeline_mode = #tpu.pipeline_mode<synchronous>, transform_indices = @transform_5, window_bounds = array<i64: 576, 128>}, {pipeline_mode = #tpu.pipeline_mode<synchronous>, transform_indices = @transform_6, window_bounds = array<i64: 1, 128>}, {pipeline_mode = #tpu.pipeline_mode<synchronous>, transform_indices = @transform_7, window_bounds = array<i64: 128, 256>}, {pipeline_mode = #tpu.pipeline_mode<synchronous>, transform_indices = @transform_8, window_bounds = array<i64: 1, 256>}, {pipeline_mode = #tpu.pipeline_mode<synchronous>, transform_indices = @transform_9, window_bounds = array<i64: 256, 128>}, {pipeline_mode = #tpu.pipeline_mode<synchronous>, transform_indices = @transform_10, window_bounds = array<i64: 1, 128>}, {transform_indices = @transform_11, window_bounds = array<i64: 8, 128>}]} {
    %c0 = arith.constant 0 : index
    %c0_0 = arith.constant 0 : index
    %c0_1 = arith.constant 0 : index
    %0 = vector.load %arg1[%c0, %c0_0, %c0_1] : memref<1x1152x256xbf16, #tpu.memory_space<vmem>>, vector<1x1152x256xbf16>
    %1 = vector.shape_cast %0 : vector<1x1152x256xbf16> to vector<1152x256xbf16>
    %c0_2 = arith.constant 0 : index
    %c0_3 = arith.constant 0 : index
    %2 = vector.load %arg2[%c0_2, %c0_3] : memref<256x32xbf16, #tpu.memory_space<vmem>>, vector<256x32xbf16>
    %cst = arith.constant dense<0.000000e+00> : vector<1152x32xf32>
    %3 = tpu.matmul %1, %2, %cst {dimension_numbers = #tpu.dot_dimension_numbers<[1], [0], [0], [1], [0, 0, 1, 1], [], []>} : vector<1152x256xbf16>, vector<256x32xbf16>, vector<1152x32xf32> -> vector<1152x32xf32>
    %c0_4 = arith.constant 0 : index
    %c0_5 = arith.constant 0 : index
    %4 = vector.load %arg3[%c0_4, %c0_5] : memref<1x32xf32, #tpu.memory_space<vmem>>, vector<1x32xf32>
    %5 = vector.broadcast %4 : vector<1x32xf32> to vector<1152x32xf32>
    %6 = arith.addf %3, %5 : vector<1152x32xf32>
    %cst_6 = arith.constant 0.000000e+00 : f32
    %7 = vector.broadcast %cst_6 : f32 to vector<1152x32xf32>
    %8 = arith.maximumf %6, %7 : vector<1152x32xf32>
    %c0_7 = arith.constant 0 : index
    %c0_8 = arith.constant 0 : index
    %9 = vector.load %arg4[%c0_7, %c0_8] : memref<512x64xbf16, #tpu.memory_space<vmem>>, vector<512x64xbf16>
    %10 = vector.extract_strided_slice %8 {offsets = [0, 0], sizes = [72, 32], strides = [1, 1]} : vector<1152x32xf32> to vector<72x32xf32>
    %11 = arith.truncf %10 : vector<72x32xf32> to vector<72x32xbf16>
    %12 = vector.extract_strided_slice %9 {offsets = [0, 0], sizes = [32, 64], strides = [1, 1]} : vector<512x64xbf16> to vector<32x64xbf16>
    %cst_9 = arith.constant dense<0.000000e+00> : vector<72x64xf32>
    %13 = tpu.matmul %11, %12, %cst_9 {dimension_numbers = #tpu.dot_dimension_numbers<[1], [0], [0], [1], [0, 0, 1, 1], [], []>} : vector<72x32xbf16>, vector<32x64xbf16>, vector<72x64xf32> -> vector<72x64xf32>
    %14 = vector.extract_strided_slice %8 {offsets = [72, 0], sizes = [72, 32], strides = [1, 1]} : vector<1152x32xf32> to vector<72x32xf32>
    %15 = arith.truncf %14 : vector<72x32xf32> to vector<72x32xbf16>
    %16 = vector.extract_strided_slice %9 {offsets = [32, 0], sizes = [32, 64], strides = [1, 1]} : vector<512x64xbf16> to vector<32x64xbf16>
    %cst_10 = arith.constant dense<0.000000e+00> : vector<72x64xf32>
    %17 = tpu.matmul %15, %16, %cst_10 {dimension_numbers = #tpu.dot_dimension_numbers<[1], [0], [0], [1], [0, 0, 1, 1], [], []>} : vector<72x32xbf16>, vector<32x64xbf16>, vector<72x64xf32> -> vector<72x64xf32>
    %18 = vector.extract_strided_slice %8 {offsets = [144, 0], sizes = [72, 32], strides = [1, 1]} : vector<1152x32xf32> to vector<72x32xf32>
    %19 = arith.truncf %18 : vector<72x32xf32> to vector<72x32xbf16>
    %20 = vector.extract_strided_slice %9 {offsets = [64, 0], sizes = [32, 64], strides = [1, 1]} : vector<512x64xbf16> to vector<32x64xbf16>
    %cst_11 = arith.constant dense<0.000000e+00> : vector<72x64xf32>
    %21 = tpu.matmul %19, %20, %cst_11 {dimension_numbers = #tpu.dot_dimension_numbers<[1], [0], [0], [1], [0, 0, 1, 1], [], []>} : vector<72x32xbf16>, vector<32x64xbf16>, vector<72x64xf32> -> vector<72x64xf32>
    %22 = vector.extract_strided_slice %8 {offsets = [216, 0], sizes = [72, 32], strides = [1, 1]} : vector<1152x32xf32> to vector<72x32xf32>
    %23 = arith.truncf %22 : vector<72x32xf32> to vector<72x32xbf16>
    %24 = vector.extract_strided_slice %9 {offsets = [96, 0], sizes = [32, 64], strides = [1, 1]} : vector<512x64xbf16> to vector<32x64xbf16>
    %cst_12 = arith.constant dense<0.000000e+00> : vector<72x64xf32>
    %25 = tpu.matmul %23, %24, %cst_12 {dimension_numbers = #tpu.dot_dimension_numbers<[1], [0], [0], [1], [0, 0, 1, 1], [], []>} : vector<72x32xbf16>, vector<32x64xbf16>, vector<72x64xf32> -> vector<72x64xf32>
    %26 = vector.extract_strided_slice %8 {offsets = [288, 0], sizes = [72, 32], strides = [1, 1]} : vector<1152x32xf32> to vector<72x32xf32>
    %27 = arith.truncf %26 : vector<72x32xf32> to vector<72x32xbf16>
    %28 = vector.extract_strided_slice %9 {offsets = [128, 0], sizes = [32, 64], strides = [1, 1]} : vector<512x64xbf16> to vector<32x64xbf16>
    %cst_13 = arith.constant dense<0.000000e+00> : vector<72x64xf32>
    %29 = tpu.matmul %27, %28, %cst_13 {dimension_numbers = #tpu.dot_dimension_numbers<[1], [0], [0], [1], [0, 0, 1, 1], [], []>} : vector<72x32xbf16>, vector<32x64xbf16>, vector<72x64xf32> -> vector<72x64xf32>
    %30 = vector.extract_strided_slice %8 {offsets = [360, 0], sizes = [72, 32], strides = [1, 1]} : vector<1152x32xf32> to vector<72x32xf32>
    %31 = arith.truncf %30 : vector<72x32xf32> to vector<72x32xbf16>
    %32 = vector.extract_strided_slice %9 {offsets = [160, 0], sizes = [32, 64], strides = [1, 1]} : vector<512x64xbf16> to vector<32x64xbf16>
    %cst_14 = arith.constant dense<0.000000e+00> : vector<72x64xf32>
    %33 = tpu.matmul %31, %32, %cst_14 {dimension_numbers = #tpu.dot_dimension_numbers<[1], [0], [0], [1], [0, 0, 1, 1], [], []>} : vector<72x32xbf16>, vector<32x64xbf16>, vector<72x64xf32> -> vector<72x64xf32>
    %34 = vector.extract_strided_slice %8 {offsets = [432, 0], sizes = [72, 32], strides = [1, 1]} : vector<1152x32xf32> to vector<72x32xf32>
    %35 = arith.truncf %34 : vector<72x32xf32> to vector<72x32xbf16>
    %36 = vector.extract_strided_slice %9 {offsets = [192, 0], sizes = [32, 64], strides = [1, 1]} : vector<512x64xbf16> to vector<32x64xbf16>
    %cst_15 = arith.constant dense<0.000000e+00> : vector<72x64xf32>
    %37 = tpu.matmul %35, %36, %cst_15 {dimension_numbers = #tpu.dot_dimension_numbers<[1], [0], [0], [1], [0, 0, 1, 1], [], []>} : vector<72x32xbf16>, vector<32x64xbf16>, vector<72x64xf32> -> vector<72x64xf32>
    %38 = vector.extract_strided_slice %8 {offsets = [504, 0], sizes = [72, 32], strides = [1, 1]} : vector<1152x32xf32> to vector<72x32xf32>
    %39 = arith.truncf %38 : vector<72x32xf32> to vector<72x32xbf16>
    %40 = vector.extract_strided_slice %9 {offsets = [224, 0], sizes = [32, 64], strides = [1, 1]} : vector<512x64xbf16> to vector<32x64xbf16>
    %cst_16 = arith.constant dense<0.000000e+00> : vector<72x64xf32>
    %41 = tpu.matmul %39, %40, %cst_16 {dimension_numbers = #tpu.dot_dimension_numbers<[1], [0], [0], [1], [0, 0, 1, 1], [], []>} : vector<72x32xbf16>, vector<32x64xbf16>, vector<72x64xf32> -> vector<72x64xf32>
    %42 = vector.extract_strided_slice %8 {offsets = [576, 0], sizes = [72, 32], strides = [1, 1]} : vector<1152x32xf32> to vector<72x32xf32>
    %43 = arith.truncf %42 : vector<72x32xf32> to vector<72x32xbf16>
    %44 = vector.extract_strided_slice %9 {offsets = [256, 0], sizes = [32, 64], strides = [1, 1]} : vector<512x64xbf16> to vector<32x64xbf16>
    %cst_17 = arith.constant dense<0.000000e+00> : vector<72x64xf32>
    %45 = tpu.matmul %43, %44, %cst_17 {dimension_numbers = #tpu.dot_dimension_numbers<[1], [0], [0], [1], [0, 0, 1, 1], [], []>} : vector<72x32xbf16>, vector<32x64xbf16>, vector<72x64xf32> -> vector<72x64xf32>
    %46 = vector.extract_strided_slice %8 {offsets = [648, 0], sizes = [72, 32], strides = [1, 1]} : vector<1152x32xf32> to vector<72x32xf32>
    %47 = arith.truncf %46 : vector<72x32xf32> to vector<72x32xbf16>
    %48 = vector.extract_strided_slice %9 {offsets = [288, 0], sizes = [32, 64], strides = [1, 1]} : vector<512x64xbf16> to vector<32x64xbf16>
    %cst_18 = arith.constant dense<0.000000e+00> : vector<72x64xf32>
    %49 = tpu.matmul %47, %48, %cst_18 {dimension_numbers = #tpu.dot_dimension_numbers<[1], [0], [0], [1], [0, 0, 1, 1], [], []>} : vector<72x32xbf16>, vector<32x64xbf16>, vector<72x64xf32> -> vector<72x64xf32>
    %50 = vector.extract_strided_slice %8 {offsets = [720, 0], sizes = [72, 32], strides = [1, 1]} : vector<1152x32xf32> to vector<72x32xf32>
    %51 = arith.truncf %50 : vector<72x32xf32> to vector<72x32xbf16>
    %52 = vector.extract_strided_slice %9 {offsets = [320, 0], sizes = [32, 64], strides = [1, 1]} : vector<512x64xbf16> to vector<32x64xbf16>
    %cst_19 = arith.constant dense<0.000000e+00> : vector<72x64xf32>
    %53 = tpu.matmul %51, %52, %cst_19 {dimension_numbers = #tpu.dot_dimension_numbers<[1], [0], [0], [1], [0, 0, 1, 1], [], []>} : vector<72x32xbf16>, vector<32x64xbf16>, vector<72x64xf32> -> vector<72x64xf32>
    %54 = vector.extract_strided_slice %8 {offsets = [792, 0], sizes = [72, 32], strides = [1, 1]} : vector<1152x32xf32> to vector<72x32xf32>
    %55 = arith.truncf %54 : vector<72x32xf32> to vector<72x32xbf16>
    %56 = vector.extract_strided_slice %9 {offsets = [352, 0], sizes = [32, 64], strides = [1, 1]} : vector<512x64xbf16> to vector<32x64xbf16>
    %cst_20 = arith.constant dense<0.000000e+00> : vector<72x64xf32>
    %57 = tpu.matmul %55, %56, %cst_20 {dimension_numbers = #tpu.dot_dimension_numbers<[1], [0], [0], [1], [0, 0, 1, 1], [], []>} : vector<72x32xbf16>, vector<32x64xbf16>, vector<72x64xf32> -> vector<72x64xf32>
    %58 = vector.extract_strided_slice %8 {offsets = [864, 0], sizes = [72, 32], strides = [1, 1]} : vector<1152x32xf32> to vector<72x32xf32>
    %59 = arith.truncf %58 : vector<72x32xf32> to vector<72x32xbf16>
    %60 = vector.extract_strided_slice %9 {offsets = [384, 0], sizes = [32, 64], strides = [1, 1]} : vector<512x64xbf16> to vector<32x64xbf16>
    %cst_21 = arith.constant dense<0.000000e+00> : vector<72x64xf32>
    %61 = tpu.matmul %59, %60, %cst_21 {dimension_numbers = #tpu.dot_dimension_numbers<[1], [0], [0], [1], [0, 0, 1, 1], [], []>} : vector<72x32xbf16>, vector<32x64xbf16>, vector<72x64xf32> -> vector<72x64xf32>
    %62 = vector.extract_strided_slice %8 {offsets = [936, 0], sizes = [72, 32], strides = [1, 1]} : vector<1152x32xf32> to vector<72x32xf32>
    %63 = arith.truncf %62 : vector<72x32xf32> to vector<72x32xbf16>
    %64 = vector.extract_strided_slice %9 {offsets = [416, 0], sizes = [32, 64], strides = [1, 1]} : vector<512x64xbf16> to vector<32x64xbf16>
    %cst_22 = arith.constant dense<0.000000e+00> : vector<72x64xf32>
    %65 = tpu.matmul %63, %64, %cst_22 {dimension_numbers = #tpu.dot_dimension_numbers<[1], [0], [0], [1], [0, 0, 1, 1], [], []>} : vector<72x32xbf16>, vector<32x64xbf16>, vector<72x64xf32> -> vector<72x64xf32>
    %66 = vector.extract_strided_slice %8 {offsets = [1008, 0], sizes = [72, 32], strides = [1, 1]} : vector<1152x32xf32> to vector<72x32xf32>
    %67 = arith.truncf %66 : vector<72x32xf32> to vector<72x32xbf16>
    %68 = vector.extract_strided_slice %9 {offsets = [448, 0], sizes = [32, 64], strides = [1, 1]} : vector<512x64xbf16> to vector<32x64xbf16>
    %cst_23 = arith.constant dense<0.000000e+00> : vector<72x64xf32>
    %69 = tpu.matmul %67, %68, %cst_23 {dimension_numbers = #tpu.dot_dimension_numbers<[1], [0], [0], [1], [0, 0, 1, 1], [], []>} : vector<72x32xbf16>, vector<32x64xbf16>, vector<72x64xf32> -> vector<72x64xf32>
    %70 = vector.extract_strided_slice %8 {offsets = [1080, 0], sizes = [72, 32], strides = [1, 1]} : vector<1152x32xf32> to vector<72x32xf32>
    %71 = arith.truncf %70 : vector<72x32xf32> to vector<72x32xbf16>
    %72 = vector.extract_strided_slice %9 {offsets = [480, 0], sizes = [32, 64], strides = [1, 1]} : vector<512x64xbf16> to vector<32x64xbf16>
    %cst_24 = arith.constant dense<0.000000e+00> : vector<72x64xf32>
    %73 = tpu.matmul %71, %72, %cst_24 {dimension_numbers = #tpu.dot_dimension_numbers<[1], [0], [0], [1], [0, 0, 1, 1], [], []>} : vector<72x32xbf16>, vector<32x64xbf16>, vector<72x64xf32> -> vector<72x64xf32>
    %74 = arith.addf %13, %17 : vector<72x64xf32>
    %75 = arith.addf %21, %25 : vector<72x64xf32>
    %76 = arith.addf %29, %33 : vector<72x64xf32>
    %77 = arith.addf %37, %41 : vector<72x64xf32>
    %78 = arith.addf %45, %49 : vector<72x64xf32>
    %79 = arith.addf %53, %57 : vector<72x64xf32>
    %80 = arith.addf %61, %65 : vector<72x64xf32>
    %81 = arith.addf %69, %73 : vector<72x64xf32>
    %82 = arith.addf %74, %75 : vector<72x64xf32>
    %83 = arith.addf %76, %77 : vector<72x64xf32>
    %84 = arith.addf %78, %79 : vector<72x64xf32>
    %85 = arith.addf %80, %81 : vector<72x64xf32>
    %86 = arith.addf %82, %83 : vector<72x64xf32>
    %87 = arith.addf %84, %85 : vector<72x64xf32>
    %88 = arith.addf %86, %87 : vector<72x64xf32>
    %c0_25 = arith.constant 0 : index
    %c0_26 = arith.constant 0 : index
    %89 = vector.load %arg5[%c0_25, %c0_26] : memref<1x64xf32, #tpu.memory_space<vmem>>, vector<1x64xf32>
    %90 = vector.broadcast %89 : vector<1x64xf32> to vector<72x64xf32>
    %91 = arith.addf %88, %90 : vector<72x64xf32>
    %cst_27 = arith.constant 0.000000e+00 : f32
    %92 = vector.broadcast %cst_27 : f32 to vector<72x64xf32>
    %93 = arith.maximumf %91, %92 : vector<72x64xf32>
    %c0_28 = arith.constant 0 : index
    %c0_29 = arith.constant 0 : index
    %94 = vector.load %arg6[%c0_28, %c0_29] : memref<576x128xbf16, #tpu.memory_space<vmem>>, vector<576x128xbf16>
    %95 = vector.extract_strided_slice %93 {offsets = [0, 0], sizes = [8, 64], strides = [1, 1]} : vector<72x64xf32> to vector<8x64xf32>
    %96 = arith.truncf %95 : vector<8x64xf32> to vector<8x64xbf16>
    %97 = vector.extract_strided_slice %94 {offsets = [0, 0], sizes = [64, 128], strides = [1, 1]} : vector<576x128xbf16> to vector<64x128xbf16>
    %cst_30 = arith.constant dense<0.000000e+00> : vector<8x128xf32>
    %98 = tpu.matmul %96, %97, %cst_30 {dimension_numbers = #tpu.dot_dimension_numbers<[1], [0], [0], [1], [0, 0, 1, 1], [], []>} : vector<8x64xbf16>, vector<64x128xbf16>, vector<8x128xf32> -> vector<8x128xf32>
    %99 = vector.extract_strided_slice %93 {offsets = [8, 0], sizes = [8, 64], strides = [1, 1]} : vector<72x64xf32> to vector<8x64xf32>
    %100 = arith.truncf %99 : vector<8x64xf32> to vector<8x64xbf16>
    %101 = vector.extract_strided_slice %94 {offsets = [64, 0], sizes = [64, 128], strides = [1, 1]} : vector<576x128xbf16> to vector<64x128xbf16>
    %cst_31 = arith.constant dense<0.000000e+00> : vector<8x128xf32>
    %102 = tpu.matmul %100, %101, %cst_31 {dimension_numbers = #tpu.dot_dimension_numbers<[1], [0], [0], [1], [0, 0, 1, 1], [], []>} : vector<8x64xbf16>, vector<64x128xbf16>, vector<8x128xf32> -> vector<8x128xf32>
    %103 = vector.extract_strided_slice %93 {offsets = [16, 0], sizes = [8, 64], strides = [1, 1]} : vector<72x64xf32> to vector<8x64xf32>
    %104 = arith.truncf %103 : vector<8x64xf32> to vector<8x64xbf16>
    %105 = vector.extract_strided_slice %94 {offsets = [128, 0], sizes = [64, 128], strides = [1, 1]} : vector<576x128xbf16> to vector<64x128xbf16>
    %cst_32 = arith.constant dense<0.000000e+00> : vector<8x128xf32>
    %106 = tpu.matmul %104, %105, %cst_32 {dimension_numbers = #tpu.dot_dimension_numbers<[1], [0], [0], [1], [0, 0, 1, 1], [], []>} : vector<8x64xbf16>, vector<64x128xbf16>, vector<8x128xf32> -> vector<8x128xf32>
    %107 = vector.extract_strided_slice %93 {offsets = [24, 0], sizes = [8, 64], strides = [1, 1]} : vector<72x64xf32> to vector<8x64xf32>
    %108 = arith.truncf %107 : vector<8x64xf32> to vector<8x64xbf16>
    %109 = vector.extract_strided_slice %94 {offsets = [192, 0], sizes = [64, 128], strides = [1, 1]} : vector<576x128xbf16> to vector<64x128xbf16>
    %cst_33 = arith.constant dense<0.000000e+00> : vector<8x128xf32>
    %110 = tpu.matmul %108, %109, %cst_33 {dimension_numbers = #tpu.dot_dimension_numbers<[1], [0], [0], [1], [0, 0, 1, 1], [], []>} : vector<8x64xbf16>, vector<64x128xbf16>, vector<8x128xf32> -> vector<8x128xf32>
    %111 = vector.extract_strided_slice %93 {offsets = [32, 0], sizes = [8, 64], strides = [1, 1]} : vector<72x64xf32> to vector<8x64xf32>
    %112 = arith.truncf %111 : vector<8x64xf32> to vector<8x64xbf16>
    %113 = vector.extract_strided_slice %94 {offsets = [256, 0], sizes = [64, 128], strides = [1, 1]} : vector<576x128xbf16> to vector<64x128xbf16>
    %cst_34 = arith.constant dense<0.000000e+00> : vector<8x128xf32>
    %114 = tpu.matmul %112, %113, %cst_34 {dimension_numbers = #tpu.dot_dimension_numbers<[1], [0], [0], [1], [0, 0, 1, 1], [], []>} : vector<8x64xbf16>, vector<64x128xbf16>, vector<8x128xf32> -> vector<8x128xf32>
    %115 = vector.extract_strided_slice %93 {offsets = [40, 0], sizes = [8, 64], strides = [1, 1]} : vector<72x64xf32> to vector<8x64xf32>
    %116 = arith.truncf %115 : vector<8x64xf32> to vector<8x64xbf16>
    %117 = vector.extract_strided_slice %94 {offsets = [320, 0], sizes = [64, 128], strides = [1, 1]} : vector<576x128xbf16> to vector<64x128xbf16>
    %cst_35 = arith.constant dense<0.000000e+00> : vector<8x128xf32>
    %118 = tpu.matmul %116, %117, %cst_35 {dimension_numbers = #tpu.dot_dimension_numbers<[1], [0], [0], [1], [0, 0, 1, 1], [], []>} : vector<8x64xbf16>, vector<64x128xbf16>, vector<8x128xf32> -> vector<8x128xf32>
    %119 = vector.extract_strided_slice %93 {offsets = [48, 0], sizes = [8, 64], strides = [1, 1]} : vector<72x64xf32> to vector<8x64xf32>
    %120 = arith.truncf %119 : vector<8x64xf32> to vector<8x64xbf16>
    %121 = vector.extract_strided_slice %94 {offsets = [384, 0], sizes = [64, 128], strides = [1, 1]} : vector<576x128xbf16> to vector<64x128xbf16>
    %cst_36 = arith.constant dense<0.000000e+00> : vector<8x128xf32>
    %122 = tpu.matmul %120, %121, %cst_36 {dimension_numbers = #tpu.dot_dimension_numbers<[1], [0], [0], [1], [0, 0, 1, 1], [], []>} : vector<8x64xbf16>, vector<64x128xbf16>, vector<8x128xf32> -> vector<8x128xf32>
    %123 = vector.extract_strided_slice %93 {offsets = [56, 0], sizes = [8, 64], strides = [1, 1]} : vector<72x64xf32> to vector<8x64xf32>
    %124 = arith.truncf %123 : vector<8x64xf32> to vector<8x64xbf16>
    %125 = vector.extract_strided_slice %94 {offsets = [448, 0], sizes = [64, 128], strides = [1, 1]} : vector<576x128xbf16> to vector<64x128xbf16>
    %cst_37 = arith.constant dense<0.000000e+00> : vector<8x128xf32>
    %126 = tpu.matmul %124, %125, %cst_37 {dimension_numbers = #tpu.dot_dimension_numbers<[1], [0], [0], [1], [0, 0, 1, 1], [], []>} : vector<8x64xbf16>, vector<64x128xbf16>, vector<8x128xf32> -> vector<8x128xf32>
    %127 = vector.extract_strided_slice %93 {offsets = [64, 0], sizes = [8, 64], strides = [1, 1]} : vector<72x64xf32> to vector<8x64xf32>
    %128 = arith.truncf %127 : vector<8x64xf32> to vector<8x64xbf16>
    %129 = vector.extract_strided_slice %94 {offsets = [512, 0], sizes = [64, 128], strides = [1, 1]} : vector<576x128xbf16> to vector<64x128xbf16>
    %cst_38 = arith.constant dense<0.000000e+00> : vector<8x128xf32>
    %130 = tpu.matmul %128, %129, %cst_38 {dimension_numbers = #tpu.dot_dimension_numbers<[1], [0], [0], [1], [0, 0, 1, 1], [], []>} : vector<8x64xbf16>, vector<64x128xbf16>, vector<8x128xf32> -> vector<8x128xf32>
    %131 = arith.addf %98, %102 : vector<8x128xf32>
    %132 = arith.addf %106, %110 : vector<8x128xf32>
    %133 = arith.addf %114, %118 : vector<8x128xf32>
    %134 = arith.addf %122, %126 : vector<8x128xf32>
    %135 = arith.addf %131, %132 : vector<8x128xf32>
    %136 = arith.addf %133, %134 : vector<8x128xf32>
    %137 = arith.addf %135, %136 : vector<8x128xf32>
    %138 = arith.addf %137, %130 : vector<8x128xf32>
    %c0_39 = arith.constant 0 : index
    %c0_40 = arith.constant 0 : index
    %139 = vector.load %arg7[%c0_39, %c0_40] : memref<1x128xf32, #tpu.memory_space<vmem>>, vector<1x128xf32>
    %140 = vector.broadcast %139 : vector<1x128xf32> to vector<8x128xf32>
    %141 = arith.addf %138, %140 : vector<8x128xf32>
    %cst_41 = arith.constant 0.000000e+00 : f32
    %142 = vector.broadcast %cst_41 : f32 to vector<8x128xf32>
    %143 = arith.maximumf %141, %142 : vector<8x128xf32>
    %144 = arith.truncf %143 : vector<8x128xf32> to vector<8x128xbf16>
    %c0_42 = arith.constant 0 : index
    %c0_43 = arith.constant 0 : index
    %145 = vector.load %arg8[%c0_42, %c0_43] : memref<128x256xbf16, #tpu.memory_space<vmem>>, vector<128x256xbf16>
    %cst_44 = arith.constant dense<0.000000e+00> : vector<8x256xf32>
    %146 = tpu.matmul %144, %145, %cst_44 {dimension_numbers = #tpu.dot_dimension_numbers<[1], [0], [0], [1], [0, 0, 1, 1], [], []>} : vector<8x128xbf16>, vector<128x256xbf16>, vector<8x256xf32> -> vector<8x256xf32>
    %c0_45 = arith.constant 0 : index
    %c0_46 = arith.constant 0 : index
    %147 = vector.load %arg9[%c0_45, %c0_46] : memref<1x256xf32, #tpu.memory_space<vmem>>, vector<1x256xf32>
    %148 = vector.broadcast %147 : vector<1x256xf32> to vector<8x256xf32>
    %149 = arith.addf %146, %148 : vector<8x256xf32>
    %150 = arith.truncf %149 : vector<8x256xf32> to vector<8x256xbf16>
    %c0_47 = arith.constant 0 : index
    %c0_48 = arith.constant 0 : index
    %151 = vector.load %arg10[%c0_47, %c0_48] : memref<256x128xbf16, #tpu.memory_space<vmem>>, vector<256x128xbf16>
    %cst_49 = arith.constant dense<0.000000e+00> : vector<8x128xf32>
    %152 = tpu.matmul %150, %151, %cst_49 {dimension_numbers = #tpu.dot_dimension_numbers<[1], [0], [0], [1], [0, 0, 1, 1], [], []>} : vector<8x256xbf16>, vector<256x128xbf16>, vector<8x128xf32> -> vector<8x128xf32>
    %c0_50 = arith.constant 0 : index
    %c0_51 = arith.constant 0 : index
    %153 = vector.load %arg11[%c0_50, %c0_51] : memref<1x128xf32, #tpu.memory_space<vmem>>, vector<1x128xf32>
    %154 = vector.broadcast %153 : vector<1x128xf32> to vector<8x128xf32>
    %155 = arith.addf %152, %154 : vector<8x128xf32>
    %156 = tpu.iota {dimensions = array<i32: 1>} : vector<8x128xi32>
    %c1_i32 = arith.constant 1 : i32
    %157 = vector.broadcast %c1_i32 : i32 to vector<8x128xi32>
    %158 = arith.cmpi sge, %156, %157 : vector<8x128xi32>
    %c7_i32 = arith.constant 7 : i32
    %159 = vector.broadcast %c7_i32 : i32 to vector<8x128xi32>
    %160 = arith.cmpi slt, %156, %159 : vector<8x128xi32>
    %161 = arith.andi %158, %160 : vector<8x128xi1>
    %cst_52 = arith.constant -1.000000e+30 : f32
    %162 = vector.broadcast %cst_52 : f32 to vector<8x128xf32>
    %163 = arith.select %161, %155, %162 : vector<8x128xi1>, vector<8x128xf32>
    %cst_53 = arith.constant dense<0xFF800000> : vector<8xf32>
    %164 = vector.multi_reduction <maximumf>, %163, %cst_53 [1] : vector<8x128xf32> to vector<8xf32>
    %165 = vector.shape_cast %164 : vector<8xf32> to vector<8x1xf32>
    %166 = vector.broadcast %165 : vector<8x1xf32> to vector<8x128xf32>
    %167 = arith.subf %163, %166 : vector<8x128xf32>
    %168 = math.exp %167 : vector<8x128xf32>
    %cst_54 = arith.constant 0.000000e+00 : f32
    %169 = vector.broadcast %cst_54 : f32 to vector<8x128xf32>
    %170 = arith.select %161, %168, %169 : vector<8x128xi1>, vector<8x128xf32>
    %cst_55 = arith.constant dense<0.000000e+00> : vector<8xf32>
    %171 = vector.multi_reduction <add>, %170, %cst_55 [1] : vector<8x128xf32> to vector<8xf32>
    %172 = vector.shape_cast %171 : vector<8xf32> to vector<8x1xf32>
    %173 = math.log %172 : vector<8x1xf32>
    %174 = arith.addf %173, %165 : vector<8x1xf32>
    %175 = vector.broadcast %174 : vector<8x1xf32> to vector<8x128xf32>
    %176 = arith.subf %155, %175 : vector<8x128xf32>
    %177 = arith.select %161, %176, %155 : vector<8x128xi1>, vector<8x128xf32>
    %c0_56 = arith.constant 0 : index
    %c0_57 = arith.constant 0 : index
    %178 = vector.load %arg12[%c0_56, %c0_57] : memref<8x128xf32, #tpu.memory_space<vmem>>, vector<8x128xf32>
    tpu.vector_store %arg12[%c0_56, %c0_57], %177 {strides = array<i32>} : memref<8x128xf32, #tpu.memory_space<vmem>>, vector<8x128xf32>,
    return
  }
  func.func @transform_0(%arg0: i32) -> (i32, i32, i32) {
    %c0_i32 = arith.constant 0 : i32
    %c0_i32_0 = arith.constant 0 : i32
    %c0_i32_1 = arith.constant 0 : i32
    return %arg0, %c0_i32, %c0_i32_0 : i32, i32, i32
  }
  func.func @transform_1(%arg0: i32) -> (i32, i32) {
    %c0_i32 = arith.constant 0 : i32
    %c0_i32_0 = arith.constant 0 : i32
    %c0_i32_1 = arith.constant 0 : i32
    return %c0_i32, %c0_i32_0 : i32, i32
  }
  func.func @transform_2(%arg0: i32) -> (i32, i32) {
    %c0_i32 = arith.constant 0 : i32
    %c0_i32_0 = arith.constant 0 : i32
    %c0_i32_1 = arith.constant 0 : i32
    return %c0_i32, %c0_i32_0 : i32, i32
  }
  func.func @transform_3(%arg0: i32) -> (i32, i32) {
    %c0_i32 = arith.constant 0 : i32
    %c0_i32_0 = arith.constant 0 : i32
    %c0_i32_1 = arith.constant 0 : i32
    return %c0_i32, %c0_i32_0 : i32, i32
  }
  func.func @transform_4(%arg0: i32) -> (i32, i32) {
    %c0_i32 = arith.constant 0 : i32
    %c0_i32_0 = arith.constant 0 : i32
    %c0_i32_1 = arith.constant 0 : i32
    return %c0_i32, %c0_i32_0 : i32, i32
  }
  func.func @transform_5(%arg0: i32) -> (i32, i32) {
    %c0_i32 = arith.constant 0 : i32
    %c0_i32_0 = arith.constant 0 : i32
    %c0_i32_1 = arith.constant 0 : i32
    return %c0_i32, %c0_i32_0 : i32, i32
  }
  func.func @transform_6(%arg0: i32) -> (i32, i32) {
    %c0_i32 = arith.constant 0 : i32
    %c0_i32_0 = arith.constant 0 : i32
    %c0_i32_1 = arith.constant 0 : i32
    return %c0_i32, %c0_i32_0 : i32, i32
  }
  func.func @transform_7(%arg0: i32) -> (i32, i32) {
    %c0_i32 = arith.constant 0 : i32
    %c0_i32_0 = arith.constant 0 : i32
    %c0_i32_1 = arith.constant 0 : i32
    return %c0_i32, %c0_i32_0 : i32, i32
  }
  func.func @transform_8(%arg0: i32) -> (i32, i32) {
    %c0_i32 = arith.constant 0 : i32
    %c0_i32_0 = arith.constant 0 : i32
    %c0_i32_1 = arith.constant 0 : i32
    return %c0_i32, %c0_i32_0 : i32, i32
  }
  func.func @transform_9(%arg0: i32) -> (i32, i32) {
    %c0_i32 = arith.constant 0 : i32
    %c0_i32_0 = arith.constant 0 : i32
    %c0_i32_1 = arith.constant 0 : i32
    return %c0_i32, %c0_i32_0 : i32, i32
  }
  func.func @transform_10(%arg0: i32) -> (i32, i32) {
    %c0_i32 = arith.constant 0 : i32
    %c0_i32_0 = arith.constant 0 : i32
    %c0_i32_1 = arith.constant 0 : i32
    return %c0_i32, %c0_i32_0 : i32, i32
  }
  func.func @transform_11(%arg0: i32) -> (i32, i32) {
    %c0_i32 = arith.constant 0 : i32
    %c0_i32_0 = arith.constant 0 : i32
    return %arg0, %c0_i32 : i32, i32
  }
}

</mosaic_0001>

<bundles_post_ra>
// kernel: forward.1
= control target key start
LH: loop header
LB: loop body
LE: loop exit
PB: predicated region body
PF: predicated region fallthrough
CT: control target
= control target key end

     0   :  { %s6515_s17 = smov 0   ;;  %s8012_s0 = inlined_call_operand.vmem [shape: bf16[2,1152,256], index: 0, kind: input, shape index: {}]   ;;  %s8013_s1 = inlined_call_operand.vmem [shape: bf16[256,32], index: 1, kind: input, shape index: {}]   ;;  %s8014_s2 = inlined_call_operand.vmem [shape: f32[1,32], index: 2, kind: input, shape index: {}]   ;;  %s8015_s3 = inlined_call_operand.vmem [shape: bf16[512,64], index: 3, kind: input, shape index: {}]   ;;  %s8016_s4 = inlined_call_operand.vmem [shape: f32[1,64], index: 4, kind: input, shape index: {}]   ;;  %s8017_s5 = inlined_call_operand.vmem [shape: bf16[576,128], index: 5, kind: input, shape index: {}]   ;;  %s8018_s6 = inlined_call_operand.vmem [shape: f32[1,128], index: 6, kind: input, shape index: {}]   ;;  %s8019_s7 = inlined_call_operand.vmem [shape: bf16[128,256], index: 7, kind: input, shape index: {}]   ;;  %s8020_s8 = inlined_call_operand.vmem [shape: f32[1,256], index: 8, kind: input, shape index: {}]   ;;  %s8021_s9 = inlined_call_operand.vmem [shape: bf16[256,128], index: 9, kind: input, shape index: {}]   ;;  %s8022_s10 = inlined_call_operand.vmem [shape: f32[1,128], index: 10, kind: input, shape index: {}]   ;;  %s8023_s11 = inlined_call_operand.vmem [shape: f32[16,128], index: 11, kind: output, shape index: {}]  }
   0x1 LB: > { %s5053_s18 = sadd.s32 4294967295, %s6450_s17   ;;  %p5057_p0 = scmp.ge.s32.totalorder %s6450_s17, 1  ;;  %s6450_s17 = sphi %s6515_s17, %s21_s17  }
   0x2   : > { %p337_p1 = scmp.lt.s32.totalorder %s6450_s17, 3 }
   0x4   : > { %p338_p2 = pnand %p5057_p0, %p337_p1 }
   0x6   : > { %341 = sbr.rel (%p338_p2) target bundleno = 2433 (0x981), region = 64 }
   0xd   : > { %v6098_v0 = vld [vmem:[%s8013_s1] sm:$0xff]   ;;  %v8024_v1 = vmov 0   ;;  %v6099_v2 = vld [vmem:[%s8013_s1 + $0x8] sm:$0xff]   ;;  %p376_p3 = scmp.lt.s32.totalorder %s5053_s18, 1  ;;  %v6100_v3 = vld [vmem:[%s8013_s1 + $0x10] sm:$0xff]   ;;  %v8025_v50 = vmov 0.0  }
   0xe   : > { %1385 = vmatprep.subr.bf16.mxu0 %v8024_v1  ;;  %v6101_v4 = vld [vmem:[%s8013_s1 + $0x18] sm:$0xff]   ;;  %v6102_v5 = vld [vmem:[%s8013_s1 + $0x20] sm:$0xff]   ;;  %v6103_v7 = vld [vmem:[%s8013_s1 + $0x28] sm:$0xff]   ;;  %5594 = vmatprep.subr.bf16.mxu1 %v8025_v50  ;;  %vm6454_vm0 = vmmov 0   ;;  %vm2224_vm1 = vcmask 261120   ;;  %vm4053_vm2 = vcmask 523264  }
   0xf   : > { %1386 = vmatpush1.bf16.msra.mxu0 %v6098_v0  ;;  %s8110_s18 = smov (!%p376_p3, %s5053_s18), 1  ;;  %v6104_v8 = vld [vmem:[%s8013_s1 + $0x30] sm:$0xff]   ;;  %v6105_v9 = vld [vmem:[%s8013_s1 + $0x38] sm:$0xff]   ;;  %v6106_v10 = vld [vmem:[%s8013_s1 + $0x40] sm:$0xff]   ;;  %5598 = vmatprep.mubr.msk.bf16.mxu1 %vm6454_vm0, %v8025_v50 }
  0x10   : > { %1387 = vmatprep.subr.bf16.mxu0 %v8024_v1  ;;  %s6086_s27 = smul.u32 1152, %s8110_s18  ;;  %v6107_v11 = vld [vmem:[%s8013_s1 + $0x48] sm:$0xff]   ;;  %v6108_v12 = vld [vmem:[%s8013_s1 + $0x50] sm:$0xff]   ;;  %v6109_v13 = vld [vmem:[%s8013_s1 + $0x58] sm:$0xff]   ;;  %s5059_s15 = sshll.u32 %s8110_s18, 3 }
  0x11   : > { %v6110_v14 = vld [vmem:[%s8013_s1 + $0x60] sm:$0xff]   ;;  %v6111_v15 = vld [vmem:[%s8013_s1 + $0x68] sm:$0xff]   ;;  %v6112_v16 = vld [vmem:[%s8013_s1 + $0x70] sm:$0xff]   ;;  %s384_s19 = scalar_lea.vmem %s8023_s11, %s5059_s15 }
  0x12   : > { %s6548_s13 = scalar_lea.vmem %s8012_s0, %s6086_s27  ;;  %v6113_v17 = vld [vmem:[%s8013_s1 + $0x78] sm:$0xff]   ;;  %v6210_v51 = vld [vmem:[%s8015_s3 + $0x10] sm:$0xff]  }
  0x13   : > { %1388 = vmatpush1.bf16.msra.mxu0 %v6099_v2  ;;  %v6116_v6 = vld [vmem:[%s6548_s13 + $0x4] ss:$8 sps:$4 sm:$0xff]   ;;  %v6114_v18 = vld [vmem:[%s6548_s13] ss:$8 sps:$4 sm:$0xff]   ;;  %v6117_v19 = vld [vmem:[%s6548_s13 + $0x14] ss:$8 sps:$4 sm:$0xff]   ;;  %5595 = vmatpush3.bf16.msra.mxu1 %v6210_v51 }
  0x14   : > { %1389 = vmatprep.subr.bf16.mxu0 %v8024_v1  ;;  %1417 = vmatprep.mubr.bf16.mxu0 %v6116_v6  ;;  %v6119_v20 = vld [vmem:[%s6548_s13 + $0x10] ss:$8 sps:$4 sm:$0xff]   ;;  %v6120_v21 = vld [vmem:[%s6548_s13 + $0x24] ss:$8 sps:$4 sm:$0xff]   ;;  %v6122_v22 = vld [vmem:[%s6548_s13 + $0x20] ss:$8 sps:$4 sm:$0xff]  }
  0x15   : > { %v6123_v23 = vld [vmem:[%s6548_s13 + $0x34] ss:$8 sps:$4 sm:$0xff]   ;;  %v6125_v24 = vld [vmem:[%s6548_s13 + $0x30] ss:$8 sps:$4 sm:$0xff]   ;;  %v6126_v25 = vld [vmem:[%s6548_s13 + $0x44] ss:$8 sps:$4 sm:$0xff]   ;;  %5596 = vmatprep.subr.bf16.mxu1 %v8025_v50 }
  0x16   : > { %v6128_v26 = vld [vmem:[%s6548_s13 + $0x40] ss:$8 sps:$4 sm:$0xff]   ;;  %v6129_v27 = vld [vmem:[%s6548_s13 + $0x54] ss:$8 sps:$4 sm:$0xff]   ;;  %v6131_v28 = vld [vmem:[%s6548_s13 + $0x50] ss:$8 sps:$4 sm:$0xff]  }
  0x17   : > { %1390 = vmatpush1.bf16.msra.mxu0 %v6100_v3  ;;  %v6132_v29 = vld [vmem:[%s6548_s13 + $0x64] ss:$8 sps:$4 sm:$0xff]   ;;  %v6134_v30 = vld [vmem:[%s6548_s13 + $0x60] ss:$8 sps:$4 sm:$0xff]   ;;  %v6135_v31 = vld [vmem:[%s6548_s13 + $0x74] ss:$8 sps:$4 sm:$0xff]  }
  0x18   : > { %1391 = vmatprep.subr.bf16.mxu0 %v8024_v1  ;;  %v6137_v32 = vld [vmem:[%s6548_s13 + $0x70] ss:$8 sps:$4 sm:$0xff]   ;;  %v6138_v33 = vld [vmem:[%s6548_s13 + $0x84] ss:$8 sps:$4 sm:$0xff]   ;;  %v6140_v34 = vld [vmem:[%s6548_s13 + $0x80] ss:$8 sps:$4 sm:$0xff]  }
  0x19   : > { %v6141_v35 = vld [vmem:[%s6548_s13 + $0x94] ss:$8 sps:$4 sm:$0xff]   ;;  %v6143_v36 = vld [vmem:[%s6548_s13 + $0x90] ss:$8 sps:$4 sm:$0xff]   ;;  %v6144_v37 = vld [vmem:[%s6548_s13 + $0xa4] ss:$8 sps:$4 sm:$0xff]  }
  0x1a   : > { %v6146_v38 = vld [vmem:[%s6548_s13 + $0xa0] ss:$8 sps:$4 sm:$0xff]   ;;  %v6147_v39 = vld [vmem:[%s6548_s13 + $0xb4] ss:$8 sps:$4 sm:$0xff]   ;;  %v6149_v40 = vld [vmem:[%s6548_s13 + $0xb0] ss:$8 sps:$4 sm:$0xff]  }
  0x1b   : > { %1392 = vmatpush1.bf16.msra.mxu0 %v6101_v4  ;;  %v6150_v41 = vld [vmem:[%s6548_s13 + $0xc4] ss:$8 sps:$4 sm:$0xff]   ;;  %v6152_v42 = vld [vmem:[%s6548_s13 + $0xc0] ss:$8 sps:$4 sm:$0xff]   ;;  %v6153_v43 = vld [vmem:[%s6548_s13 + $0xd4] ss:$8 sps:$4 sm:$0xff]  }
  0x1c   : > { %1393 = vmatprep.subr.bf16.mxu0 %v8024_v1  ;;  %v6155_v44 = vld [vmem:[%s6548_s13 + $0xd0] ss:$8 sps:$4 sm:$0xff]   ;;  %v6156_v45 = vld [vmem:[%s6548_s13 + $0xe4] ss:$8 sps:$4 sm:$0xff]   ;;  %v6158_v46 = vld [vmem:[%s6548_s13 + $0xe0] ss:$8 sps:$4 sm:$0xff]  }
  0x1d   : > { %v6159_v47 = vld [vmem:[%s6548_s13 + $0xf4] ss:$8 sps:$4 sm:$0xff]   ;;  %v6161_v48 = vld [vmem:[%s6548_s13 + $0xf0] ss:$8 sps:$4 sm:$0xff]   ;;  %v6162_v49 = vld [vmem:[%s6548_s13 + $0x104] ss:$8 sps:$4 sm:$0xff]  }
  0x1e   : > { %v6164_v52 = vld [vmem:[%s6548_s13 + $0x100] ss:$8 sps:$4 sm:$0xff]   ;;  %v6165_v53 = vld [vmem:[%s6548_s13 + $0x114] ss:$8 sps:$4 sm:$0xff]   ;;  %v6167_v55 = vld [vmem:[%s6548_s13 + $0x110] ss:$8 sps:$4 sm:$0xff]  }
  0x1f   : > { %1394 = vmatpush1.bf16.msra.mxu0 %v6102_v5  ;;  %v6213_v54 = vld [vmem:[%s8015_s3 + $0x18] sm:$0xff]   ;;  %v6168_v56 = vld [vmem:[%s6548_s13 + $0x124] ss:$8 sps:$4 sm:$0xff]   ;;  %v6170_v57 = vld [vmem:[%s6548_s13 + $0x120] ss:$8 sps:$4 sm:$0xff]  }
  0x20   : > { %1395 = vmatprep.subr.bf16.mxu0 %v8024_v1  ;;  %5597 = vmatpush3.bf16.msra.mxu1 %v6213_v54  ;;  %v6171_v58 = vld [vmem:[%s6548_s13 + $0x134] ss:$8 sps:$4 sm:$0xff]   ;;  %v6173_v59 = vld [vmem:[%s6548_s13 + $0x130] ss:$8 sps:$4 sm:$0xff]   ;;  %v6174_v60 = vld [vmem:[%s6548_s13 + $0x144] ss:$8 sps:$4 sm:$0xff]  }
  0x21   : > { %5618 = vmatprep.subr.bf16.mxu1 %v8025_v50  ;;  %v6176_v61 = vld [vmem:[%s6548_s13 + $0x140] ss:$8 sps:$4 sm:$0xff]   ;;  %v6177_v62 = vld [vmem:[%s6548_s13 + $0x154] ss:$8 sps:$4 sm:$0xff]   ;;  %v6179_v63 = vld [vmem:[%s6548_s13 + $0x150] ss:$8 sps:$4 sm:$0xff]  }
  0x22   : > { %v6180_v0 = vld [vmem:[%s6548_s13 + $0x164] ss:$8 sps:$4 sm:$0xff]   ;;  %v6182_v2 = vld [vmem:[%s6548_s13 + $0x160] ss:$8 sps:$4 sm:$0xff]   ;;  %v6183_v3 = vld [vmem:[%s6548_s13 + $0x174] ss:$8 sps:$4 sm:$0xff]  }
  0x23   : > { %1396 = vmatpush1.bf16.msra.mxu0 %v6103_v7  ;;  %v6185_v4 = vld [vmem:[%s6548_s13 + $0x170] ss:$8 sps:$4 sm:$0xff]   ;;  %v6186_v5 = vld [vmem:[%s6548_s13 + $0x184] ss:$8 sps:$4 sm:$0xff]   ;;  %v6188_v6 = vld [vmem:[%s6548_s13 + $0x180] ss:$8 sps:$4 sm:$0xff]  }
  0x24   : > { %1397 = vmatprep.subr.bf16.mxu0 %v8024_v1  ;;  %v6189_v7 = vld [vmem:[%s6548_s13 + $0x194] ss:$8 sps:$4 sm:$0xff]  }
  0x27   : > { %1398 = vmatpush1.bf16.msra.mxu0 %v6104_v8  ;;  %v6191_v8 = vld [vmem:[%s6548_s13 + $0x190] ss:$8 sps:$4 sm:$0xff]  }
  0x28   : > { %1399 = vmatprep.subr.bf16.mxu0 %v8024_v1 }
  0x2b   : > { %1400 = vmatpush1.bf16.msra.mxu0 %v6105_v9  ;;  %v6192_v9 = vld [vmem:[%s6548_s13 + $0x1a4] ss:$8 sps:$4 sm:$0xff]  }
  0x2c   : > { %1401 = vmatprep.subr.bf16.mxu0 %v8024_v1 }
  0x2f   : > { %1402 = vmatpush1.bf16.msra.mxu0 %v6106_v10  ;;  %v6194_v10 = vld [vmem:[%s6548_s13 + $0x1a0] ss:$8 sps:$4 sm:$0xff]  }
  0x30   : > { %1403 = vmatprep.subr.bf16.mxu0 %v8024_v1 }
  0x33   : > { %1404 = vmatpush1.bf16.msra.mxu0 %v6107_v11  ;;  %v6195_v11 = vld [vmem:[%s6548_s13 + $0x1b4] ss:$8 sps:$4 sm:$0xff]  }
  0x34   : > { %1405 = vmatprep.subr.bf16.mxu0 %v8024_v1 }
  0x37   : > { %1406 = vmatpush1.bf16.msra.mxu0 %v6108_v12  ;;  %v6665_v12 = vld [vmem:[%s8014_s2] ss:$0 sm:$0xff] }
  0x38   : > { %1407 = vmatprep.subr.bf16.mxu0 %v8024_v1 }
  0x3b   : > { %1408 = vmatpush1.bf16.msra.mxu0 %v6109_v13 }
  0x3c   : > { %1409 = vmatprep.subr.bf16.mxu0 %v8024_v1 }
  0x3f   : > { %1410 = vmatpush1.bf16.msra.mxu0 %v6110_v14 }
  0x40   : > { %1411 = vmatprep.subr.bf16.mxu0 %v8024_v1 }
  0x43   : > { %1412 = vmatpush1.bf16.msra.mxu0 %v6111_v15 }
  0x44   : > { %1413 = vmatprep.subr.bf16.mxu0 %v8024_v1 }
  0x47   : > { %1414 = vmatpush1.bf16.msra.mxu0 %v6112_v16  ;;  %v6197_v16 = vld [vmem:[%s6548_s13 + $0x1b0] ss:$8 sps:$4 sm:$0xff]  }
  0x48   : > { %1415 = vmatprep.subr.bf16.mxu0 %v8024_v1 }
  0x4b   : > { %1416 = vmatpush1.bf16.msra.mxu0 %v6113_v17 }
  0x4c   : > { %5978 = vmatprep.subr.bf16.mxu0 %v8025_v50 }
  0x4e   : > { %1418 = vmatmul.mubr.bf16.vlgmr.msra.gmra.mrb[0].mxu0 %v6114_v18  ;;  %v6198_v18 = vld [vmem:[%s6548_s13 + $0x1c4] ss:$8 sps:$4 sm:$0xff]  }
  0x4f   : > { %1425 = vmatprep.mubr.bf16.mxu0 %v6117_v19 }
  0x56   : > { %1426 = vmatmul.mubr.bf16.gmra.mrb[4].mxu0 %v6119_v20 }
  0x57   : > { %1433 = vmatprep.mubr.bf16.mxu0 %v6120_v21 }
  0x5e   : > { %1434 = vmatmul.mubr.bf16.gmra.mrb[8].mxu0 %v6122_v22 }
  0x5f   : > { %1441 = vmatprep.mubr.bf16.mxu0 %v6123_v23 }
  0x66   : > { %1442 = vmatmul.mubr.bf16.gmra.mrb[12].mxu0 %v6125_v24 }
  0x67   : > { %1449 = vmatprep.mubr.bf16.mxu0 %v6126_v25 }
  0x6e   : > { %1450 = vmatmul.mubr.bf16.gmra.mrb[16].mxu0 %v6128_v26 }
  0x6f   : > { %1457 = vmatprep.mubr.bf16.mxu0 %v6129_v27  ;;  %v6200_v27 = vld [vmem:[%s6548_s13 + $0x1c0] ss:$8 sps:$4 sm:$0xff]  }
  0x76   : > { %1458 = vmatmul.mubr.bf16.gmra.mrb[20].mxu0 %v6131_v28 }
  0x77   : > { %1465 = vmatprep.mubr.bf16.mxu0 %v6132_v29  ;;  %v6201_v29 = vld [vmem:[%s6548_s13 + $0x1d4] ss:$8 sps:$4 sm:$0xff]  }
  0x7e   : > { %1466 = vmatmul.mubr.bf16.gmra.mrb[24].mxu0 %v6134_v30 }
  0x7f   : > { %1473 = vmatprep.mubr.bf16.mxu0 %v6135_v31 }
  0x86   : > { %1474 = vmatmul.mubr.bf16.gmra.mrb[28].mxu0 %v6137_v32 }
  0x87   : > { %1481 = vmatprep.mubr.bf16.mxu0 %v6138_v33 }
  0x8e   : > { %1482 = vmatmul.mubr.bf16.gmra.mrb[32].mxu0 %v6140_v34 }
  0x8f   : > { %1489 = vmatprep.mubr.bf16.mxu0 %v6141_v35 }
  0x96   : > { %1490 = vmatmul.mubr.bf16.gmra.mrb[36].mxu0 %v6143_v36 }
  0x97   : > { %1497 = vmatprep.mubr.bf16.mxu0 %v6144_v37 }
  0x9e   : > { %1498 = vmatmul.mubr.bf16.gmra.mrb[40].mxu0 %v6146_v38  ;;  %v6203_v38 = vld [vmem:[%s6548_s13 + $0x1d0] ss:$8 sps:$4 sm:$0xff]  }
  0x9f   : > { %1505 = vmatprep.mubr.bf16.mxu0 %v6147_v39 }
  0xa6   : > { %1506 = vmatmul.mubr.bf16.gmra.mrb[44].mxu0 %v6149_v40  ;;  %v6204_v40 = vld [vmem:[%s6548_s13 + $0x1e4] ss:$8 sps:$4 sm:$0xff]  }
  0xa7   : > { %1513 = vmatprep.mubr.bf16.mxu0 %v6150_v41 }
  0xae   : > { %1514 = vmatmul.mubr.bf16.gmra.mrb[48].mxu0 %v6152_v42 }
  0xaf   : > { %1521 = vmatprep.mubr.bf16.mxu0 %v6153_v43 }
  0xb6   : > { %1522 = vmatmul.mubr.bf16.gmra.mrb[52].mxu0 %v6155_v44 }
  0xb7   : > { %1529 = vmatprep.mubr.bf16.mxu0 %v6156_v45 }
  0xbe   : > { %1530 = vmatmul.mubr.bf16.gmra.mrb[56].mxu0 %v6158_v46 }
  0xbf   : > { %1537 = vmatprep.mubr.bf16.mxu0 %v6159_v47 }
  0xc6   : > { %1538 = vmatmul.mubr.bf16.gmra.mrb[60].mxu0 %v6161_v48 }
  0xc7   : > { %1545 = vmatprep.mubr.bf16.mxu0 %v6162_v49  ;;  %v6206_v49 = vld [vmem:[%s6548_s13 + $0x1e0] ss:$8 sps:$4 sm:$0xff]  }
  0xce   : > { %1546 = vmatmul.mubr.bf16.gmra.mrb[64].mxu0 %v6164_v52  ;;  %v6207_v52 = vld [vmem:[%s6548_s13 + $0x1f4] ss:$8 sps:$4 sm:$0xff]  }
  0xcf   : > { %1553 = vmatprep.mubr.bf16.mxu0 %v6165_v53 }
  0xd6   : > { %1554 = vmatmul.mubr.bf16.gmra.mrb[68].mxu0 %v6167_v55 }
  0xd7   : > { %1561 = vmatprep.mubr.bf16.mxu0 %v6168_v56 }
  0xde   : > { %1562 = vmatmul.mubr.bf16.gmra.mrb[72].mxu0 %v6170_v57 }
  0xdf   : > { %1569 = vmatprep.mubr.bf16.mxu0 %v6171_v58 }
  0xe6   : > { %1570 = vmatmul.mubr.bf16.gmra.mrb[76].mxu0 %v6173_v59 }
  0xe7   : > { %1577 = vmatprep.mubr.bf16.mxu0 %v6174_v60  ;;  %v6209_v60 = vld [vmem:[%s6548_s13 + $0x1f0] ss:$8 sps:$4 sm:$0xff]  }
  0xee   : > { %1578 = vmatmul.mubr.bf16.gmra.mrb[80].mxu0 %v6176_v61 }
  0xef   : > { %1585 = vmatprep.mubr.bf16.mxu0 %v6177_v62  ;;  %v6211_v62 = vld [vmem:[%s6548_s13 + $0x204] ss:$8 sps:$4 sm:$0xff]  }
  0xf6   : > { %1586 = vmatmul.mubr.bf16.gmra.mrb[84].mxu0 %v6179_v63 }
  0xf7   : > { %1593 = vmatprep.mubr.bf16.mxu0 %v6180_v0 }
  0xfe   : > { %1594 = vmatmul.mubr.bf16.gmra.mrb[88].mxu0 %v6182_v2 }
  0xff   : > { %1601 = vmatprep.mubr.bf16.mxu0 %v6183_v3 }
 0x106   : > { %1602 = vmatmul.mubr.bf16.gmra.mrb[92].mxu0 %v6185_v4 }
 0x107   : > { %1609 = vmatprep.mubr.bf16.mxu0 %v6186_v5  ;;  %v6214_v5 = vld [vmem:[%s6548_s13 + $0x200] ss:$8 sps:$4 sm:$0xff]  }
 0x10e   : > { %1610 = vmatmul.mubr.bf16.gmra.mrb[96].mxu0 %v6188_v6 }
 0x10f   : > { %1617 = vmatprep.mubr.bf16.mxu0 %v6189_v7  ;;  %v6215_v7 = vld [vmem:[%s6548_s13 + $0x214] ss:$8 sps:$4 sm:$0xff]  }
 0x116   : > { %1618 = vmatmul.mubr.bf16.gmra.mrb[100].mxu0 %v6191_v8 }
 0x117   : > { %1625 = vmatprep.mubr.bf16.mxu0 %v6192_v9 }
 0x11e   : > { %1626 = vmatmul.mubr.bf16.gmra.mrb[104].mxu0 %v6194_v10 }
 0x11f   : > { %1633 = vmatprep.mubr.bf16.mxu0 %v6195_v11  ;;  %v6239_v11 = vld [vmem:[%s8015_s3 + $0x30] sm:$0xff]  }
 0x121   : > { %v1419_v13 = vpop.f32.mrb[0].mxu0 }
 0x122   : > { %v1420_v14 = vadd.f32 %v6665_v12, %v1419_v13  ;;  %v1421_v15 = vpop.f32.mrb[1].mxu0 }
 0x123   : > { %v1422_v17 = vpop.f32.mrb[2].mxu0 }
 0x124   : > { %v1423_v19 = vadd.f32 %v6665_v12, %v1422_v17  ;;  %v1424_v20 = vpop.f32.mrb[3].mxu0  ;;  %v1994_v21 = vmax.f32 %v1420_v14, 0.0 }
 0x126   : > { %v1995_v22 = vmax.f32 %v1423_v19, 0.0  ;;  %1634 = vmatmul.mubr.bf16.gmra.mrb[108].mxu0 %v6197_v16  ;;  %v6242_v16 = vld [vmem:[%s8015_s3 + $0x38] sm:$0xff]  }
 0x127   : > { %1641 = vmatprep.mubr.bf16.mxu0 %v6198_v18  ;;  %v6217_v19 = vld [vmem:[%s6548_s13 + $0x210] ss:$8 sps:$4 sm:$0xff]  }
 0x128   : > { %v6671_v23 = vpack.c.bf16 %v1995_v22, %v1994_v21  ;;  %v6218_v21 = vld [vmem:[%s6548_s13 + $0x224] ss:$8 sps:$4 sm:$0xff]  }
 0x129   : > { %v1427_v24 = vpop.f32.mrb[4].mxu0 }
 0x12a   : > { %v1428_v25 = vadd.f32 %v6665_v12, %v1427_v24  ;;  %v1429_v26 = vpop.f32.mrb[5].mxu0 }
 0x12b   : > { %v1430_v28 = vpop.f32.mrb[6].mxu0 }
 0x12c   : > { %v1431_v30 = vadd.f32 %v6665_v12, %v1430_v28  ;;  %v1432_v31 = vpop.f32.mrb[7].mxu0  ;;  %v1996_v32 = vmax.f32 %v1428_v25, 0.0 }
 0x12d   : > { %v6220_v31 = vld [vmem:[%s6548_s13 + $0x220] ss:$8 sps:$4 sm:$0xff]  }
 0x12e   : > { %v1997_v33 = vmax.f32 %v1431_v30, 0.0  ;;  %1642 = vmatmul.mubr.bf16.gmra.mrb[112].mxu0 %v6200_v27 }
 0x12f   : > { %1649 = vmatprep.mubr.bf16.mxu0 %v6201_v29 }
 0x130   : > { %v6677_v34 = vpack.c.bf16 %v1997_v33, %v1996_v32  ;;  %v6221_v33 = vld [vmem:[%s6548_s13 + $0x234] ss:$8 sps:$4 sm:$0xff]  }
 0x131   : > { %v1435_v35 = vpop.f32.mrb[8].mxu0 }
 0x132   : > { %v1436_v36 = vadd.f32 %v6665_v12, %v1435_v35  ;;  %v1437_v37 = vpop.f32.mrb[9].mxu0 }
 0x133   : > { %v1438_v39 = vpop.f32.mrb[10].mxu0 }
 0x134   : > { %v1439_v41 = vadd.f32 %v6665_v12, %v1438_v39  ;;  %v1440_v42 = vpop.f32.mrb[11].mxu0  ;;  %v1998_v43 = vmax.f32 %v1436_v36, 0.0 }
 0x136   : > { %v1999_v44 = vmax.f32 %v1439_v41, 0.0  ;;  %1650 = vmatmul.mubr.bf16.gmra.mrb[116].mxu0 %v6203_v38 }
 0x137   : > { %1657 = vmatprep.mubr.bf16.mxu0 %v6204_v40 }
 0x138   : > { %v6683_v45 = vpack.c.bf16 %v1999_v44, %v1998_v43  ;;  %v6223_v43 = vld [vmem:[%s6548_s13 + $0x230] ss:$8 sps:$4 sm:$0xff]  }
 0x139   : > { %v1443_v46 = vpop.f32.mrb[12].mxu0 }
 0x13a   : > { %v1444_v47 = vadd.f32 %v6665_v12, %v1443_v46  ;;  %v1445_v48 = vpop.f32.mrb[13].mxu0  ;;  %v6224_v46 = vld [vmem:[%s6548_s13 + $0x244] ss:$8 sps:$4 sm:$0xff]  }
 0x13b   : > { %v1446_v51 = vpop.f32.mrb[14].mxu0 }
 0x13c   : > { %v1447_v53 = vadd.f32 %v6665_v12, %v1446_v51  ;;  %v1448_v54 = vpop.f32.mrb[15].mxu0  ;;  %v2000_v55 = vmax.f32 %v1444_v47, 0.0 }
 0x13e   : > { %v2001_v56 = vmax.f32 %v1447_v53, 0.0  ;;  %1658 = vmatmul.mubr.bf16.gmra.mrb[120].mxu0 %v6206_v49 }
 0x13f   : > { %1665 = vmatprep.mubr.bf16.mxu0 %v6207_v52 }
 0x140   : > { %v6689_v57 = vpack.c.bf16 %v2001_v56, %v2000_v55 }
 0x141   : > { %v6691_v58 = vpop.f32.mrb[16].mxu0 }
 0x142   : > { %v1453_v59 = vpop.f32.mrb[17].mxu0 }
 0x143   : > { %v1454_v61 = vpop.f32.mrb[18].mxu0  ;;  %v6226_v59 = vld [vmem:[%s6548_s13 + $0x240] ss:$8 sps:$4 sm:$0xff]  }
 0x144   : > { %v1456_v63 = vpop.f32.mrb[19].mxu0  ;;  %v1455_v0 = vadd.f32 %v6665_v12, %v1454_v61  ;;  %v6227_v61 = vld [vmem:[%s6548_s13 + $0x254] ss:$8 sps:$4 sm:$0xff]  }
 0x146   : > { %1666 = vmatmul.mubr.bf16.gmra.mrb[124].mxu0 %v6209_v60  ;;  %v2003_v8 = vmax.f32 %v1455_v0, 0.0 }
 0x147   : > { %1673 = vmatprep.mubr.bf16.mxu0 %v6211_v62 }
 0x149   : > { %v1459_v2 = vpop.f32.mrb[20].mxu0 }
 0x14a   : > { %v1460_v3 = vadd.f32 %v6665_v12, %v1459_v2  ;;  %v1461_v4 = vpop.f32.mrb[21].mxu0 }
 0x14b   : > { %v1462_v6 = vpop.f32.mrb[22].mxu0 }
 0x14c   : > { %v2004_v9 = vmax.f32 %v1460_v3, 0.0  ;;  %v1464_v10 = vpop.f32.mrb[23].mxu0  ;;  %v1463_v14 = vadd.f32 %v6665_v12, %v1462_v6 }
 0x14d   : > { %v6230_v10 = vld [vmem:[%s6548_s13 + $0x264] ss:$8 sps:$4 sm:$0xff]  }
 0x14e   : > { %v2207_v13 = vpack.c.bf16 %v2004_v9, %v2003_v8  ;;  %1674 = vmatmul.mubr.bf16.gmra.mrb[128].mxu0 %v6214_v5  ;;  %v2005_v22 = vmax.f32 %v1463_v14, 0.0  ;;  %v6229_v8 = vld [vmem:[%s6548_s13 + $0x250] ss:$8 sps:$4 sm:$0xff]  }
 0x14f   : > { %1681 = vmatprep.mubr.bf16.mxu0 %v6215_v7 }
 0x150   : > { %5599 = vmatmul.mubr.msk.bf16.vlgmr.msra.gmra.mrb[0].mxu1 %vm2224_vm1, %v2207_v13 }
 0x151   : > { %v1467_v15 = vpop.f32.mrb[24].mxu0  ;;  %5602 = vmatprep.mubr.msk.bf16.mxu1 %vm6454_vm0, %v8025_v50  ;;  %5619 = vmatpush3.bf16.msra.mxu1 %v6239_v11 }
 0x152   : > { %v1468_v17 = vadd.f32 %v6665_v12, %v1467_v15  ;;  %v1469_v18 = vpop.f32.mrb[25].mxu0  ;;  %5620 = vmatprep.subr.bf16.mxu1 %v8025_v50 }
 0x153   : > { %v1470_v20 = vpop.f32.mrb[26].mxu0 }
 0x154   : > { %v2006_v24 = vmax.f32 %v1468_v17, 0.0  ;;  %v1472_v25 = vpop.f32.mrb[27].mxu0  ;;  %v1471_v27 = vadd.f32 %v6665_v12, %v1470_v20  ;;  %v6232_v20 = vld [vmem:[%s6548_s13 + $0x260] ss:$8 sps:$4 sm:$0xff]  }
 0x155   : > { %5621 = vmatpush3.bf16.msra.mxu1 %v6242_v16 }
 0x156   : > { %v2208_v26 = vpack.c.bf16 %v2006_v24, %v2005_v22  ;;  %1682 = vmatmul.mubr.bf16.gmra.mrb[132].mxu0 %v6217_v19  ;;  %5642 = vmatprep.subr.bf16.mxu1 %v8025_v50  ;;  %v2007_v35 = vmax.f32 %v1471_v27, 0.0  ;;  %v6233_v22 = vld [vmem:[%s6548_s13 + $0x274] ss:$8 sps:$4 sm:$0xff]  }
 0x157   : > { %1689 = vmatprep.mubr.bf16.mxu0 %v6218_v21 }
 0x158   : > { %5603 = vmatmul.mubr.msk.bf16.gmra.mrb[4].mxu1 %vm2224_vm1, %v2208_v26 }
 0x159   : > { %v1475_v28 = vpop.f32.mrb[28].mxu0  ;;  %5606 = vmatprep.mubr.msk.bf16.mxu1 %vm6454_vm0, %v8025_v50 }
 0x15a   : > { %v1476_v29 = vadd.f32 %v6665_v12, %v1475_v28  ;;  %v1477_v30 = vpop.f32.mrb[29].mxu0 }
 0x15b   : > { %v1478_v32 = vpop.f32.mrb[30].mxu0 }
 0x15c   : > { %v2008_v36 = vmax.f32 %v1476_v29, 0.0  ;;  %v1480_v37 = vpop.f32.mrb[31].mxu0  ;;  %v1479_v39 = vadd.f32 %v6665_v12, %v1478_v32  ;;  %v6235_v32 = vld [vmem:[%s6548_s13 + $0x270] ss:$8 sps:$4 sm:$0xff]  }
 0x15e   : > { %v2209_v38 = vpack.c.bf16 %v2008_v36, %v2007_v35  ;;  %1690 = vmatmul.mubr.bf16.gmra.mrb[136].mxu0 %v6220_v31  ;;  %v2009_v47 = vmax.f32 %v1479_v39, 0.0  ;;  %v6236_v35 = vld [vmem:[%s6548_s13 + $0x284] ss:$8 sps:$4 sm:$0xff]  }
 0x15f   : > { %1697 = vmatprep.mubr.bf16.mxu0 %v6221_v33 }
 0x160   : > { %5607 = vmatmul.mubr.msk.bf16.gmra.mrb[8].mxu1 %vm2224_vm1, %v2209_v38 }
 0x161   : > { %v1483_v40 = vpop.f32.mrb[32].mxu0  ;;  %5610 = vmatprep.mubr.msk.bf16.mxu1 %vm6454_vm0, %v8025_v50 }
 0x162   : > { %v1484_v41 = vadd.f32 %v6665_v12, %v1483_v40  ;;  %v1485_v42 = vpop.f32.mrb[33].mxu0 }
 0x163   : > { %v1486_v44 = vpop.f32.mrb[34].mxu0 }
 0x164   : > { %v2010_v48 = vmax.f32 %v1484_v41, 0.0  ;;  %v1488_v49 = vpop.f32.mrb[35].mxu0  ;;  %v1487_v52 = vadd.f32 %v6665_v12, %v1486_v44 }
 0x166   : > { %v2210_v51 = vpack.c.bf16 %v2010_v48, %v2009_v47  ;;  %1698 = vmatmul.mubr.bf16.gmra.mrb[140].mxu0 %v6223_v43  ;;  %v2011_v54 = vmax.f32 %v1487_v52, 0.0  ;;  %v6238_v43 = vld [vmem:[%s6548_s13 + $0x280] ss:$8 sps:$4 sm:$0xff]  }
 0x167   : > { %1705 = vmatprep.mubr.bf16.mxu0 %v6224_v46  ;;  %v6240_v46 = vld [vmem:[%s6548_s13 + $0x294] ss:$8 sps:$4 sm:$0xff]  }
 0x168   : > { %5611 = vmatmul.mubr.msk.bf16.gmra.mrb[12].mxu1 %vm2224_vm1, %v2210_v51  ;;  %v2211_v0 = vpack.c.bf16 %v2011_v54, %v2011_v54 }
 0x169   : > { %v1491_v53 = vpop.f32.mrb[36].mxu0  ;;  %5614 = vmatprep.mubr.msk.bf16.mxu1 %vm6454_vm0, %v8025_v50 }
 0x16a   : > { %v1492_v55 = vadd.f32 %v6665_v12, %v1491_v53  ;;  %v1493_v56 = vpop.f32.mrb[37].mxu0  ;;  %v6243_v53 = vld [vmem:[%s6548_s13 + $0x290] ss:$8 sps:$4 sm:$0xff]  }
 0x16b   : > { %v1494_v60 = vpop.f32.mrb[38].mxu0 }
 0x16c   : > { %v1495_v62 = vadd.f32 %v6665_v12, %v1494_v60  ;;  %v1496_v63 = vpop.f32.mrb[39].mxu0  ;;  %v2012_v2 = vmax.f32 %v1492_v55, 0.0  ;;  %v6244_v55 = vld [vmem:[%s6548_s13 + $0x2a4] ss:$8 sps:$4 sm:$0xff]  }
 0x16e   : > { %v2013_v3 = vmax.f32 %v1495_v62, 0.0  ;;  %1706 = vmatmul.mubr.bf16.gmra.mrb[144].mxu0 %v6226_v59 }
 0x16f   : > { %1713 = vmatprep.mubr.bf16.mxu0 %v6227_v61  ;;  %v6268_v61 = vld [vmem:[%s8015_s3 + $0x50] sm:$0xff]  }
 0x170   : > { %v6736_v4 = vpack.c.bf16 %v2013_v3, %v2012_v2  ;;  %5615 = vmatmul.mubr.msk.bf16.gmra.mrb[16].mxu1 %vm2224_vm1, %v2211_v0  ;;  %v6271_v2 = vld [vmem:[%s8015_s3 + $0x58] sm:$0xff]  }
 0x171   : > { %v1499_v5 = vpop.f32.mrb[40].mxu0  ;;  %5622 = vmatprep.mubr.msk.bf16.mxu1 %vm6454_vm0, %v8025_v50 }
 0x172   : > { %v1500_v6 = vadd.f32 %v6665_v12, %v1499_v5  ;;  %v1501_v7 = vpop.f32.mrb[41].mxu0 }
 0x173   : > { %v1502_v9 = vpop.f32.mrb[42].mxu0 }
 0x174   : > { %v1503_v11 = vadd.f32 %v6665_v12, %v1502_v9  ;;  %v1504_v13 = vpop.f32.mrb[43].mxu0  ;;  %v2014_v14 = vmax.f32 %v1500_v6, 0.0  ;;  %v6246_v6 = vld [vmem:[%s6548_s13 + $0x2a0] ss:$8 sps:$4 sm:$0xff]  }
 0x176   : > { %v2015_v15 = vmax.f32 %v1503_v11, 0.0  ;;  %1714 = vmatmul.mubr.bf16.gmra.mrb[148].mxu0 %v6229_v8  ;;  %v6247_v8 = vld [vmem:[%s6548_s13 + $0x2b4] ss:$8 sps:$4 sm:$0xff]  }
 0x177   : > { %1721 = vmatprep.mubr.bf16.mxu0 %v6230_v10 }
 0x178   : > { %v6745_v16 = vpack.c.bf16 %v2015_v15, %v2014_v14 }
 0x179   : > { %v1507_v17 = vpop.f32.mrb[44].mxu0 }
 0x17a   : > { %v1508_v18 = vadd.f32 %v6665_v12, %v1507_v17  ;;  %v1509_v19 = vpop.f32.mrb[45].mxu0 }
 0x17b   : > { %v1510_v21 = vpop.f32.mrb[46].mxu0  ;;  %v6249_v19 = vld [vmem:[%s6548_s13 + $0x2b0] ss:$8 sps:$4 sm:$0xff]  }
 0x17c   : > { %v1511_v24 = vadd.f32 %v6665_v12, %v1510_v21  ;;  %v1512_v25 = vpop.f32.mrb[47].mxu0  ;;  %v2016_v26 = vmax.f32 %v1508_v18, 0.0  ;;  %v6250_v21 = vld [vmem:[%s6548_s13 + $0x2c4] ss:$8 sps:$4 sm:$0xff]  }
 0x17e   : > { %v2017_v27 = vmax.f32 %v1511_v24, 0.0  ;;  %1722 = vmatmul.mubr.bf16.gmra.mrb[152].mxu0 %v6232_v20 }
 0x17f   : > { %1729 = vmatprep.mubr.bf16.mxu0 %v6233_v22 }
 0x180   : > { %v6751_v28 = vpack.c.bf16 %v2017_v27, %v2016_v26 }
 0x181   : > { %v1515_v29 = vpop.f32.mrb[48].mxu0 }
 0x182   : > { %v1516_v30 = vadd.f32 %v6665_v12, %v1515_v29  ;;  %v1517_v31 = vpop.f32.mrb[49].mxu0 }
 0x183   : > { %v1518_v33 = vpop.f32.mrb[50].mxu0 }
 0x184   : > { %v1519_v36 = vadd.f32 %v6665_v12, %v1518_v33  ;;  %v1520_v37 = vpop.f32.mrb[51].mxu0  ;;  %v2018_v38 = vmax.f32 %v1516_v30, 0.0 }
 0x186   : > { %v2019_v39 = vmax.f32 %v1519_v36, 0.0  ;;  %1730 = vmatmul.mubr.bf16.gmra.mrb[156].mxu0 %v6235_v32  ;;  %v6252_v32 = vld [vmem:[%s6548_s13 + $0x2c0] ss:$8 sps:$4 sm:$0xff]  }
 0x187   : > { %1737 = vmatprep.mubr.bf16.mxu0 %v6236_v35  ;;  %v6253_v35 = vld [vmem:[%s6548_s13 + $0x2d4] ss:$8 sps:$4 sm:$0xff]  }
 0x188   : > { %v6757_v40 = vpack.c.bf16 %v2019_v39, %v2018_v38 }
 0x189   : > { %v6759_v41 = vpop.f32.mrb[52].mxu0 }
 0x18a   : > { %v1525_v42 = vpop.f32.mrb[53].mxu0 }
 0x18b   : > { %v1526_v44 = vpop.f32.mrb[54].mxu0 }
 0x18c   : > { %v1528_v47 = vpop.f32.mrb[55].mxu0  ;;  %v1527_v48 = vadd.f32 %v6665_v12, %v1526_v44 }
 0x18e   : > { %1738 = vmatmul.mubr.bf16.gmra.mrb[160].mxu0 %v6238_v43  ;;  %v2021_v56 = vmax.f32 %v1527_v48, 0.0  ;;  %v6255_v48 = vld [vmem:[%s6548_s13 + $0x2d0] ss:$8 sps:$4 sm:$0xff]  }
 0x18f   : > { %1745 = vmatprep.mubr.bf16.mxu0 %v6240_v46 }
 0x191   : > { %v1531_v49 = vpop.f32.mrb[56].mxu0 }
 0x192   : > { %v1532_v51 = vadd.f32 %v6665_v12, %v1531_v49  ;;  %v1533_v52 = vpop.f32.mrb[57].mxu0 }
 0x193   : > { %v1534_v54 = vpop.f32.mrb[58].mxu0 }
 0x194   : > { %v2022_v59 = vmax.f32 %v1532_v51, 0.0  ;;  %v1536_v60 = vpop.f32.mrb[59].mxu0  ;;  %v1535_v63 = vadd.f32 %v6665_v12, %v1534_v54  ;;  %v6256_v51 = vld [vmem:[%s6548_s13 + $0x2e4] ss:$8 sps:$4 sm:$0xff]  }
 0x196   : > { %v2317_v62 = vpack.c.bf16 %v2022_v59, %v2021_v56  ;;  %1746 = vmatmul.mubr.bf16.gmra.mrb[164].mxu0 %v6243_v53  ;;  %v2023_v9 = vmax.f32 %v1535_v63, 0.0  ;;  %v6258_v63 = vld [vmem:[%s6548_s13 + $0x2e0] ss:$8 sps:$4 sm:$0xff]  }
 0x197   : > { %1753 = vmatprep.mubr.bf16.mxu0 %v6244_v55 }
 0x198   : > { %5623 = vmatmul.mubr.msk.bf16.vlgmr.msra.gmra.mrb[20].mxu1 %vm2224_vm1, %v2317_v62 }
 0x199   : > { %v1539_v0 = vpop.f32.mrb[60].mxu0  ;;  %5626 = vmatprep.mubr.msk.bf16.mxu1 %vm6454_vm0, %v8025_v50  ;;  %5643 = vmatpush3.bf16.msra.mxu1 %v6268_v61 }
 0x19a   : > { %v1540_v3 = vadd.f32 %v6665_v12, %v1539_v0  ;;  %v1541_v5 = vpop.f32.mrb[61].mxu0  ;;  %5644 = vmatprep.subr.bf16.mxu1 %v8025_v50 }
 0x19b   : > { %v1542_v7 = vpop.f32.mrb[62].mxu0 }
 0x19c   : > { %v2024_v10 = vmax.f32 %v1540_v3, 0.0  ;;  %v1544_v11 = vpop.f32.mrb[63].mxu0  ;;  %v1543_v14 = vadd.f32 %v6665_v12, %v1542_v7 }
 0x19d   : > { %5645 = vmatpush3.bf16.msra.mxu1 %v6271_v2  ;;  %v6259_v2 = vld [vmem:[%s6548_s13 + $0x2f4] ss:$8 sps:$4 sm:$0xff]  }
 0x19e   : > { %v2318_v13 = vpack.c.bf16 %v2024_v10, %v2023_v9  ;;  %1754 = vmatmul.mubr.bf16.gmra.mrb[168].mxu0 %v6246_v6  ;;  %5666 = vmatprep.subr.bf16.mxu1 %v8025_v50  ;;  %v2025_v22 = vmax.f32 %v1543_v14, 0.0 }
 0x19f   : > { %1761 = vmatprep.mubr.bf16.mxu0 %v6247_v8 }
 0x1a0   : > { %5627 = vmatmul.mubr.msk.bf16.gmra.mrb[24].mxu1 %vm2224_vm1, %v2318_v13  ;;  %v6261_v13 = vld [vmem:[%s6548_s13 + $0x2f0] ss:$8 sps:$4 sm:$0xff]  }
 0x1a1   : > { %v1547_v15 = vpop.f32.mrb[64].mxu0  ;;  %5630 = vmatprep.mubr.msk.bf16.mxu1 %vm6454_vm0, %v8025_v50 }
 0x1a2   : > { %v1548_v17 = vadd.f32 %v6665_v12, %v1547_v15  ;;  %v1549_v18 = vpop.f32.mrb[65].mxu0  ;;  %v6262_v15 = vld [vmem:[%s6548_s13 + $0x304] ss:$8 sps:$4 sm:$0xff]  }
 0x1a3   : > { %v1550_v20 = vpop.f32.mrb[66].mxu0 }
 0x1a4   : > { %v2026_v24 = vmax.f32 %v1548_v17, 0.0  ;;  %v1552_v25 = vpop.f32.mrb[67].mxu0  ;;  %v1551_v27 = vadd.f32 %v6665_v12, %v1550_v20 }
 0x1a6   : > { %v2319_v26 = vpack.c.bf16 %v2026_v24, %v2025_v22  ;;  %1762 = vmatmul.mubr.bf16.gmra.mrb[172].mxu0 %v6249_v19  ;;  %v2027_v36 = vmax.f32 %v1551_v27, 0.0 }
 0x1a7   : > { %1769 = vmatprep.mubr.bf16.mxu0 %v6250_v21 }
 0x1a8   : > { %5631 = vmatmul.mubr.msk.bf16.gmra.mrb[28].mxu1 %vm2224_vm1, %v2319_v26  ;;  %v6264_v26 = vld [vmem:[%s6548_s13 + $0x300] ss:$8 sps:$4 sm:$0xff]  }
 0x1a9   : > { %v1555_v29 = vpop.f32.mrb[68].mxu0  ;;  %5634 = vmatprep.mubr.msk.bf16.mxu1 %vm6454_vm0, %v8025_v50 }
 0x1aa   : > { %v1556_v30 = vadd.f32 %v6665_v12, %v1555_v29  ;;  %v1557_v31 = vpop.f32.mrb[69].mxu0  ;;  %v6265_v29 = vld [vmem:[%s6548_s13 + $0x314] ss:$8 sps:$4 sm:$0xff]  }
 0x1ab   : > { %v1558_v33 = vpop.f32.mrb[70].mxu0 }
 0x1ac   : > { %v2028_v37 = vmax.f32 %v1556_v30, 0.0  ;;  %v1560_v38 = vpop.f32.mrb[71].mxu0  ;;  %v1559_v42 = vadd.f32 %v6665_v12, %v1558_v33 }
 0x1ad   : > { %v6267_v38 = vld [vmem:[%s6548_s13 + $0x310] ss:$8 sps:$4 sm:$0xff]  }
 0x1ae   : > { %v2320_v39 = vpack.c.bf16 %v2028_v37, %v2027_v36  ;;  %1770 = vmatmul.mubr.bf16.gmra.mrb[176].mxu0 %v6252_v32  ;;  %v2029_v44 = vmax.f32 %v1559_v42, 0.0  ;;  %v6269_v42 = vld [vmem:[%s6548_s13 + $0x324] ss:$8 sps:$4 sm:$0xff]  }
 0x1af   : > { %1777 = vmatprep.mubr.bf16.mxu0 %v6253_v35 }
 0x1b0   : > { %5635 = vmatmul.mubr.msk.bf16.gmra.mrb[32].mxu1 %vm2224_vm1, %v2320_v39  ;;  %v2321_v54 = vpack.c.bf16 %v2029_v44, %v2029_v44 }
 0x1b1   : > { %v1563_v43 = vpop.f32.mrb[72].mxu0  ;;  %5638 = vmatprep.mubr.msk.bf16.mxu1 %vm6454_vm0, %v8025_v50 }
 0x1b2   : > { %v1564_v46 = vadd.f32 %v6665_v12, %v1563_v43  ;;  %v1565_v47 = vpop.f32.mrb[73].mxu0 }
 0x1b3   : > { %v1566_v49 = vpop.f32.mrb[74].mxu0 }
 0x1b4   : > { %v1567_v52 = vadd.f32 %v6665_v12, %v1566_v49  ;;  %v1568_v53 = vpop.f32.mrb[75].mxu0  ;;  %v2030_v55 = vmax.f32 %v1564_v46, 0.0  ;;  %v6272_v49 = vld [vmem:[%s6548_s13 + $0x320] ss:$8 sps:$4 sm:$0xff]  }
 0x1b6   : > { %v2031_v56 = vmax.f32 %v1567_v52, 0.0  ;;  %1778 = vmatmul.mubr.bf16.gmra.mrb[180].mxu0 %v6255_v48  ;;  %v6273_v52 = vld [vmem:[%s6548_s13 + $0x334] ss:$8 sps:$4 sm:$0xff]  }
 0x1b7   : > { %1785 = vmatprep.mubr.bf16.mxu0 %v6256_v51 }
 0x1b8   : > { %v6804_v59 = vpack.c.bf16 %v2031_v56, %v2030_v55  ;;  %5639 = vmatmul.mubr.msk.bf16.gmra.mrb[36].mxu1 %vm2224_vm1, %v2321_v54  ;;  %v6297_v56 = vld [vmem:[%s8015_s3 + $0x70] sm:$0xff]  }
 0x1b9   : > { %v1571_v60 = vpop.f32.mrb[76].mxu0  ;;  %5646 = vmatprep.mubr.msk.bf16.mxu1 %vm6454_vm0, %v8025_v50 }
 0x1ba   : > { %v1572_v61 = vadd.f32 %v6665_v12, %v1571_v60  ;;  %v1573_v62 = vpop.f32.mrb[77].mxu0 }
 0x1bb   : > { %v1574_v0 = vpop.f32.mrb[78].mxu0 }
 0x1bc   : > { %v1575_v3 = vadd.f32 %v6665_v12, %v1574_v0  ;;  %v1576_v5 = vpop.f32.mrb[79].mxu0  ;;  %v2032_v6 = vmax.f32 %v1572_v61, 0.0 }
 0x1be   : > { %v2033_v7 = vmax.f32 %v1575_v3, 0.0  ;;  %1786 = vmatmul.mubr.bf16.gmra.mrb[184].mxu0 %v6258_v63  ;;  %v6300_v63 = vld [vmem:[%s8015_s3 + $0x78] sm:$0xff]  }
 0x1bf   : > { %1793 = vmatprep.mubr.bf16.mxu0 %v6259_v2  ;;  %v6275_v3 = vld [vmem:[%s6548_s13 + $0x330] ss:$8 sps:$4 sm:$0xff]  }
 0x1c0   : > { %v6813_v8 = vpack.c.bf16 %v2033_v7, %v2032_v6  ;;  %v6276_v6 = vld [vmem:[%s6548_s13 + $0x344] ss:$8 sps:$4 sm:$0xff]  }
 0x1c1   : > { %v1579_v9 = vpop.f32.mrb[80].mxu0 }
 0x1c2   : > { %v1580_v10 = vadd.f32 %v6665_v12, %v1579_v9  ;;  %v1581_v11 = vpop.f32.mrb[81].mxu0 }
 0x1c3   : > { %v1582_v14 = vpop.f32.mrb[82].mxu0 }
 0x1c4   : > { %v1583_v17 = vadd.f32 %v6665_v12, %v1582_v14  ;;  %v1584_v18 = vpop.f32.mrb[83].mxu0  ;;  %v2034_v19 = vmax.f32 %v1580_v10, 0.0 }
 0x1c5   : > { %v6278_v18 = vld [vmem:[%s6548_s13 + $0x340] ss:$8 sps:$4 sm:$0xff]  }
 0x1c6   : > { %v2035_v20 = vmax.f32 %v1583_v17, 0.0  ;;  %1794 = vmatmul.mubr.bf16.gmra.mrb[188].mxu0 %v6261_v13 }
 0x1c7   : > { %1801 = vmatprep.mubr.bf16.mxu0 %v6262_v15 }
 0x1c8   : > { %v6819_v21 = vpack.c.bf16 %v2035_v20, %v2034_v19  ;;  %v6279_v20 = vld [vmem:[%s6548_s13 + $0x354] ss:$8 sps:$4 sm:$0xff]  }
 0x1c9   : > { %v1587_v22 = vpop.f32.mrb[84].mxu0 }
 0x1ca   : > { %v1588_v24 = vadd.f32 %v6665_v12, %v1587_v22  ;;  %v1589_v25 = vpop.f32.mrb[85].mxu0 }
 0x1cb   : > { %v1590_v27 = vpop.f32.mrb[86].mxu0 }
 0x1cc   : > { %v1591_v30 = vadd.f32 %v6665_v12, %v1590_v27  ;;  %v1592_v31 = vpop.f32.mrb[87].mxu0  ;;  %v2036_v32 = vmax.f32 %v1588_v24, 0.0 }
 0x1ce   : > { %v2037_v33 = vmax.f32 %v1591_v30, 0.0  ;;  %1802 = vmatmul.mubr.bf16.gmra.mrb[192].mxu0 %v6264_v26 }
 0x1cf   : > { %1809 = vmatprep.mubr.bf16.mxu0 %v6265_v29 }
 0x1d0   : > { %v6825_v35 = vpack.c.bf16 %v2037_v33, %v2036_v32  ;;  %v6281_v32 = vld [vmem:[%s6548_s13 + $0x350] ss:$8 sps:$4 sm:$0xff]  }
 0x1d1   : > { %v6827_v36 = vpop.f32.mrb[88].mxu0 }
 0x1d2   : > { %v1597_v37 = vpop.f32.mrb[89].mxu0 }
 0x1d3   : > { %v1598_v39 = vpop.f32.mrb[90].mxu0  ;;  %v6282_v37 = vld [vmem:[%s6548_s13 + $0x364] ss:$8 sps:$4 sm:$0xff]  }
 0x1d4   : > { %v1600_v43 = vpop.f32.mrb[91].mxu0  ;;  %v1599_v44 = vadd.f32 %v6665_v12, %v1598_v39 }
 0x1d6   : > { %1810 = vmatmul.mubr.bf16.gmra.mrb[196].mxu0 %v6267_v38  ;;  %v2039_v53 = vmax.f32 %v1599_v44, 0.0 }
 0x1d7   : > { %1817 = vmatprep.mubr.bf16.mxu0 %v6269_v42 }
 0x1d9   : > { %v1603_v46 = vpop.f32.mrb[92].mxu0 }
 0x1da   : > { %v1604_v47 = vadd.f32 %v6665_v12, %v1603_v46  ;;  %v1605_v48 = vpop.f32.mrb[93].mxu0 }
 0x1db   : > { %v1606_v51 = vpop.f32.mrb[94].mxu0 }
 0x1dc   : > { %v2040_v54 = vmax.f32 %v1604_v47, 0.0  ;;  %v1608_v55 = vpop.f32.mrb[95].mxu0  ;;  %v1607_v61 = vadd.f32 %v6665_v12, %v1606_v51  ;;  %v6284_v51 = vld [vmem:[%s6548_s13 + $0x360] ss:$8 sps:$4 sm:$0xff]  }
 0x1de   : > { %v2426_v60 = vpack.c.bf16 %v2040_v54, %v2039_v53  ;;  %1818 = vmatmul.mubr.bf16.gmra.mrb[200].mxu0 %v6272_v49  ;;  %v2041_v7 = vmax.f32 %v1607_v61, 0.0  ;;  %v6285_v53 = vld [vmem:[%s6548_s13 + $0x374] ss:$8 sps:$4 sm:$0xff]  }
 0x1df   : > { %1825 = vmatprep.mubr.bf16.mxu0 %v6273_v52 }
 0x1e0   : > { %5647 = vmatmul.mubr.msk.bf16.vlgmr.msra.gmra.mrb[40].mxu1 %vm2224_vm1, %v2426_v60 }
 0x1e1   : > { %v1611_v62 = vpop.f32.mrb[96].mxu0  ;;  %5650 = vmatprep.mubr.msk.bf16.mxu1 %vm6454_vm0, %v8025_v50  ;;  %5667 = vmatpush3.bf16.msra.mxu1 %v6297_v56 }
 0x1e2   : > { %v1612_v0 = vadd.f32 %v6665_v12, %v1611_v62  ;;  %v1613_v2 = vpop.f32.mrb[97].mxu0  ;;  %5668 = vmatprep.subr.bf16.mxu1 %v8025_v50 }
 0x1e3   : > { %v1614_v5 = vpop.f32.mrb[98].mxu0 }
 0x1e4   : > { %v2042_v9 = vmax.f32 %v1612_v0, 0.0  ;;  %v1616_v10 = vpop.f32.mrb[99].mxu0  ;;  %v1615_v13 = vadd.f32 %v6665_v12, %v1614_v5 }
 0x1e5   : > { %5669 = vmatpush3.bf16.msra.mxu1 %v6300_v63 }
 0x1e6   : > { %v2427_v11 = vpack.c.bf16 %v2042_v9, %v2041_v7  ;;  %1826 = vmatmul.mubr.bf16.gmra.mrb[204].mxu0 %v6275_v3  ;;  %5690 = vmatprep.subr.bf16.mxu1 %v8025_v50  ;;  %v2043_v22 = vmax.f32 %v1615_v13, 0.0  ;;  %v6287_v3 = vld [vmem:[%s6548_s13 + $0x370] ss:$8 sps:$4 sm:$0xff]  }
 0x1e7   : > { %1833 = vmatprep.mubr.bf16.mxu0 %v6276_v6  ;;  %v6288_v6 = vld [vmem:[%s6548_s13 + $0x384] ss:$8 sps:$4 sm:$0xff]  }
 0x1e8   : > { %5651 = vmatmul.mubr.msk.bf16.gmra.mrb[44].mxu1 %vm2224_vm1, %v2427_v11 }
 0x1e9   : > { %v1619_v14 = vpop.f32.mrb[100].mxu0  ;;  %5654 = vmatprep.mubr.msk.bf16.mxu1 %vm6454_vm0, %v8025_v50 }
 0x1ea   : > { %v1620_v15 = vadd.f32 %v6665_v12, %v1619_v14  ;;  %v1621_v17 = vpop.f32.mrb[101].mxu0 }
 0x1eb   : > { %v1622_v19 = vpop.f32.mrb[102].mxu0 }
 0x1ec   : > { %v2044_v24 = vmax.f32 %v1620_v15, 0.0  ;;  %v1624_v25 = vpop.f32.mrb[103].mxu0  ;;  %v1623_v27 = vadd.f32 %v6665_v12, %v1622_v19 }
 0x1ee   : > { %v2428_v26 = vpack.c.bf16 %v2044_v24, %v2043_v22  ;;  %1834 = vmatmul.mubr.bf16.gmra.mrb[208].mxu0 %v6278_v18  ;;  %v2045_v38 = vmax.f32 %v1623_v27, 0.0  ;;  %v6290_v18 = vld [vmem:[%s6548_s13 + $0x380] ss:$8 sps:$4 sm:$0xff]  }
 0x1ef   : > { %1841 = vmatprep.mubr.bf16.mxu0 %v6279_v20  ;;  %v6291_v20 = vld [vmem:[%s6548_s13 + $0x394] ss:$8 sps:$4 sm:$0xff]  }
 0x1f0   : > { %5655 = vmatmul.mubr.msk.bf16.gmra.mrb[48].mxu1 %vm2224_vm1, %v2428_v26 }
 0x1f1   : > { %v1627_v29 = vpop.f32.mrb[104].mxu0  ;;  %5658 = vmatprep.mubr.msk.bf16.mxu1 %vm6454_vm0, %v8025_v50 }
 0x1f2   : > { %v1628_v30 = vadd.f32 %v6665_v12, %v1627_v29  ;;  %v1629_v31 = vpop.f32.mrb[105].mxu0 }
 0x1f3   : > { %v1630_v33 = vpop.f32.mrb[106].mxu0 }
 0x1f4   : > { %v2046_v39 = vmax.f32 %v1628_v30, 0.0  ;;  %v1632_v42 = vpop.f32.mrb[107].mxu0  ;;  %v1631_v44 = vadd.f32 %v6665_v12, %v1630_v33 }
 0x1f6   : > { %v2429_v43 = vpack.c.bf16 %v2046_v39, %v2045_v38  ;;  %1842 = vmatmul.mubr.bf16.gmra.mrb[212].mxu0 %v6281_v32  ;;  %v2047_v47 = vmax.f32 %v1631_v44, 0.0  ;;  %v6293_v32 = vld [vmem:[%s6548_s13 + $0x390] ss:$8 sps:$4 sm:$0xff]  }
 0x1f7   : > { %1849 = vmatprep.mubr.bf16.mxu0 %v6282_v37  ;;  %v6294_v37 = vld [vmem:[%s6548_s13 + $0x3a4] ss:$8 sps:$4 sm:$0xff]  }
 0x1f8   : > { %5659 = vmatmul.mubr.msk.bf16.gmra.mrb[52].mxu1 %vm2224_vm1, %v2429_v43  ;;  %v2430_v56 = vpack.c.bf16 %v2047_v47, %v2047_v47 }
 0x1f9   : > { %v1635_v46 = vpop.f32.mrb[108].mxu0  ;;  %5662 = vmatprep.mubr.msk.bf16.mxu1 %vm6454_vm0, %v8025_v50 }
 0x1fa   : > { %v1636_v48 = vadd.f32 %v6665_v12, %v1635_v46  ;;  %v1637_v49 = vpop.f32.mrb[109].mxu0 }
 0x1fb   : > { %v1638_v52 = vpop.f32.mrb[110].mxu0 }
 0x1fc   : > { %v1639_v54 = vadd.f32 %v6665_v12, %v1638_v52  ;;  %v1640_v55 = vpop.f32.mrb[111].mxu0  ;;  %v2048_v60 = vmax.f32 %v1636_v48, 0.0  ;;  %v6296_v48 = vld [vmem:[%s6548_s13 + $0x3a0] ss:$8 sps:$4 sm:$0xff]  }
 0x1fe   : > { %v2049_v61 = vmax.f32 %v1639_v54, 0.0  ;;  %1850 = vmatmul.mubr.bf16.gmra.mrb[216].mxu0 %v6284_v51  ;;  %v6298_v51 = vld [vmem:[%s6548_s13 + $0x3b4] ss:$8 sps:$4 sm:$0xff]  }
 0x1ff   : > { %1857 = vmatprep.mubr.bf16.mxu0 %v6285_v53 }
 0x200   : > { %v6872_v62 = vpack.c.bf16 %v2049_v61, %v2048_v60  ;;  %5663 = vmatmul.mubr.msk.bf16.gmra.mrb[56].mxu1 %vm2224_vm1, %v2430_v56  ;;  %v6301_v60 = vld [vmem:[%s6548_s13 + $0x3b0] ss:$8 sps:$4 sm:$0xff]  }
 0x201   : > { %v1643_v63 = vpop.f32.mrb[112].mxu0  ;;  %5670 = vmatprep.mubr.msk.bf16.mxu1 %vm6454_vm0, %v8025_v50 }
 0x202   : > { %v1644_v0 = vadd.f32 %v6665_v12, %v1643_v63  ;;  %v1645_v2 = vpop.f32.mrb[113].mxu0 }
 0x203   : > { %v1646_v5 = vpop.f32.mrb[114].mxu0 }
 0x204   : > { %v1647_v7 = vadd.f32 %v6665_v12, %v1646_v5  ;;  %v1648_v9 = vpop.f32.mrb[115].mxu0  ;;  %v2050_v10 = vmax.f32 %v1644_v0, 0.0  ;;  %v6302_v0 = vld [vmem:[%s6548_s13 + $0x3c4] ss:$8 sps:$4 sm:$0xff]  }
 0x205   : > { %v6326_v9 = vld [vmem:[%s8015_s3 + $0x90] sm:$0xff]  }
 0x206   : > { %v2051_v11 = vmax.f32 %v1647_v7, 0.0  ;;  %1858 = vmatmul.mubr.bf16.gmra.mrb[220].mxu0 %v6287_v3 }
 0x207   : > { %1865 = vmatprep.mubr.bf16.mxu0 %v6288_v6 }
 0x208   : > { %v6881_v13 = vpack.c.bf16 %v2051_v11, %v2050_v10 }
 0x209   : > { %v1651_v14 = vpop.f32.mrb[116].mxu0 }
 0x20a   : > { %v1652_v15 = vadd.f32 %v6665_v12, %v1651_v14  ;;  %v1653_v17 = vpop.f32.mrb[117].mxu0 }
 0x20b   : > { %v1654_v19 = vpop.f32.mrb[118].mxu0  ;;  %v6330_v17 = vld [vmem:[%s8015_s3 + $0x98] sm:$0xff]  }
 0x20c   : > { %v1655_v22 = vadd.f32 %v6665_v12, %v1654_v19  ;;  %v1656_v24 = vpop.f32.mrb[119].mxu0  ;;  %v2052_v25 = vmax.f32 %v1652_v15, 0.0 }
 0x20e   : > { %v2053_v26 = vmax.f32 %v1655_v22, 0.0  ;;  %1866 = vmatmul.mubr.bf16.gmra.mrb[224].mxu0 %v6290_v18 }
 0x20f   : > { %1873 = vmatprep.mubr.bf16.mxu0 %v6291_v20  ;;  %v6304_v20 = vld [vmem:[%s6548_s13 + $0x3c0] ss:$8 sps:$4 sm:$0xff]  }
 0x210   : > { %v6887_v27 = vpack.c.bf16 %v2053_v26, %v2052_v25  ;;  %v6305_v25 = vld [vmem:[%s6548_s13 + $0x3d4] ss:$8 sps:$4 sm:$0xff]  }
 0x211   : > { %v1659_v29 = vpop.f32.mrb[120].mxu0 }
 0x212   : > { %v1660_v30 = vadd.f32 %v6665_v12, %v1659_v29  ;;  %v1661_v31 = vpop.f32.mrb[121].mxu0 }
 0x213   : > { %v1662_v33 = vpop.f32.mrb[122].mxu0 }
 0x214   : > { %v1663_v38 = vadd.f32 %v6665_v12, %v1662_v33  ;;  %v1664_v39 = vpop.f32.mrb[123].mxu0  ;;  %v2054_v42 = vmax.f32 %v1660_v30, 0.0 }
 0x216   : > { %v2055_v43 = vmax.f32 %v1663_v38, 0.0  ;;  %1874 = vmatmul.mubr.bf16.gmra.mrb[228].mxu0 %v6293_v32 }
 0x217   : > { %1881 = vmatprep.mubr.bf16.mxu0 %v6294_v37 }
 0x218   : > { %v6893_v44 = vpack.c.bf16 %v2055_v43, %v2054_v42 }
 0x219   : > { %v6895_v46 = vpop.f32.mrb[124].mxu0 }
 0x21a   : > { %v1669_v47 = vpop.f32.mrb[125].mxu0 }
 0x21b   : > { %v1670_v49 = vpop.f32.mrb[126].mxu0  ;;  %v6307_v47 = vld [vmem:[%s6548_s13 + $0x3d0] ss:$8 sps:$4 sm:$0xff]  }
 0x21c   : > { %v1672_v52 = vpop.f32.mrb[127].mxu0  ;;  %v1671_v53 = vadd.f32 %v6665_v12, %v1670_v49 }
 0x21e   : > { %1882 = vmatmul.mubr.bf16.gmra.mrb[232].mxu0 %v6296_v48  ;;  %v2057_v2 = vmax.f32 %v1671_v53, 0.0 }
 0x21f   : > { %1889 = vmatprep.mubr.bf16.mxu0 %v6298_v51  ;;  %v6308_v51 = vld [vmem:[%s6548_s13 + $0x3e4] ss:$8 sps:$4 sm:$0xff]  }
 0x221   : > { %v1675_v54 = vpop.f32.mrb[128].mxu0 }
 0x222   : > { %v1676_v55 = vadd.f32 %v6665_v12, %v1675_v54  ;;  %v1677_v56 = vpop.f32.mrb[129].mxu0 }
 0x223   : > { %v1678_v61 = vpop.f32.mrb[130].mxu0  ;;  %v6902_v63 = vpop.f32.mrb[0].mxu1 }
 0x224   : > { %v2058_v3 = vmax.f32 %v1676_v55, 0.0  ;;  %v1680_v5 = vpop.f32.mrb[131].mxu0  ;;  %v5600_v6 = vpop.f32.mrb[1].mxu1  ;;  %v1679_v14 = vadd.f32 %v6665_v12, %v1678_v61 }
 0x225   : > { %v6905_v7 = vpop.f32.mrb[2].mxu1  ;;  %v6310_v6 = vld [vmem:[%s6548_s13 + $0x3e0] ss:$8 sps:$4 sm:$0xff]  }
 0x226   : > { %v2535_v10 = vpack.c.bf16 %v2058_v3, %v2057_v2  ;;  %1890 = vmatmul.mubr.bf16.gmra.mrb[236].mxu0 %v6301_v60  ;;  %v5601_v11 = vpop.f32.mrb[3].mxu1  ;;  %v2059_v26 = vmax.f32 %v1679_v14, 0.0 }
 0x227   : > { %1897 = vmatprep.mubr.bf16.mxu0 %v6302_v0  ;;  %v6311_v11 = vld [vmem:[%s6548_s13 + $0x3f4] ss:$8 sps:$4 sm:$0xff]  }
 0x228   : > { %5671 = vmatmul.mubr.msk.bf16.vlgmr.msra.gmra.mrb[60].mxu1 %vm2224_vm1, %v2535_v10 }
 0x229   : > { %v1683_v15 = vpop.f32.mrb[132].mxu0  ;;  %5674 = vmatprep.mubr.msk.bf16.mxu1 %vm6454_vm0, %v8025_v50  ;;  %5691 = vmatpush3.bf16.msra.mxu1 %v6326_v9 }
 0x22a   : > { %v1684_v18 = vadd.f32 %v6665_v12, %v1683_v15  ;;  %v1685_v19 = vpop.f32.mrb[133].mxu0  ;;  %5692 = vmatprep.subr.bf16.mxu1 %v8025_v50 }
 0x22b   : > { %v1686_v22 = vpop.f32.mrb[134].mxu0  ;;  %v6920_v24 = vpop.f32.mrb[4].mxu1 }
 0x22c   : > { %v2060_v29 = vmax.f32 %v1684_v18, 0.0  ;;  %v1688_v30 = vpop.f32.mrb[135].mxu0  ;;  %v5604_v31 = vpop.f32.mrb[5].mxu1  ;;  %v1687_v38 = vadd.f32 %v6665_v12, %v1686_v22 }
 0x22d   : > { %v6923_v32 = vpop.f32.mrb[6].mxu1  ;;  %5693 = vmatpush3.bf16.msra.mxu1 %v6330_v17 }
 0x22e   : > { %v2536_v33 = vpack.c.bf16 %v2060_v29, %v2059_v26  ;;  %1898 = vmatmul.mubr.bf16.gmra.mrb[240].mxu0 %v6304_v20  ;;  %v5605_v37 = vpop.f32.mrb[7].mxu1  ;;  %5714 = vmatprep.subr.bf16.mxu1 %v8025_v50  ;;  %v2061_v52 = vmax.f32 %v1687_v38, 0.0 }
 0x22f   : > { %1905 = vmatprep.mubr.bf16.mxu0 %v6305_v25 }
 0x230   : > { %5675 = vmatmul.mubr.msk.bf16.gmra.mrb[64].mxu1 %vm2224_vm1, %v2536_v33  ;;  %v6313_v33 = vld [vmem:[%s6548_s13 + $0x3f0] ss:$8 sps:$4 sm:$0xff]  }
 0x231   : > { %v1691_v39 = vpop.f32.mrb[136].mxu0  ;;  %5678 = vmatprep.mubr.msk.bf16.mxu1 %vm6454_vm0, %v8025_v50 }
 0x232   : > { %v1692_v42 = vadd.f32 %v6665_v12, %v1691_v39  ;;  %v1693_v43 = vpop.f32.mrb[137].mxu0  ;;  %v6940_v12 = vld [vmem:[%s8014_s2] ss:$0 sm:$0xff]  ;;  %v6316_v39 = vld [vmem:[%s6548_s13 + $0x404] ss:$8 sps:$4 sm:$0xff]  }
 0x233   : > { %v1694_v48 = vpop.f32.mrb[138].mxu0  ;;  %v6932_v49 = vpop.f32.mrb[8].mxu1 }
 0x234   : > { %v2062_v53 = vmax.f32 %v1692_v42, 0.0  ;;  %v1696_v54 = vpop.f32.mrb[139].mxu0  ;;  %v5608_v55 = vpop.f32.mrb[9].mxu1  ;;  %v1695_v0 = vadd.f32 %v6940_v12, %v1694_v48 }
 0x235   : > { %v6935_v56 = vpop.f32.mrb[10].mxu1 }
 0x236   : > { %v2537_v60 = vpack.c.bf16 %v2062_v53, %v2061_v52  ;;  %1906 = vmatmul.mubr.bf16.gmra.mrb[244].mxu0 %v6307_v47  ;;  %v5609_v61 = vpop.f32.mrb[11].mxu1  ;;  %v2063_v14 = vmax.f32 %v1695_v0, 0.0 }
 0x237   : > { %1913 = vmatprep.mubr.bf16.mxu0 %v6308_v51 }
 0x238   : > { %5679 = vmatmul.mubr.msk.bf16.gmra.mrb[68].mxu1 %vm2224_vm1, %v2537_v60 }
 0x239   : > { %v1699_v2 = vpop.f32.mrb[140].mxu0  ;;  %5682 = vmatprep.mubr.msk.bf16.mxu1 %vm6454_vm0, %v8025_v50 }
 0x23a   : > { %v1700_v3 = vadd.f32 %v6940_v12, %v1699_v2  ;;  %v1701_v5 = vpop.f32.mrb[141].mxu0  ;;  %v6314_v2 = vld [vmem:[%s6548_s13 + $0x400] ss:$8 sps:$4 sm:$0xff]  }
 0x23b   : > { %v1702_v9 = vpop.f32.mrb[142].mxu0  ;;  %v6948_v10 = vpop.f32.mrb[12].mxu1  ;;  %v6319_v5 = vld [vmem:[%s6548_s13 + $0x414] ss:$8 sps:$4 sm:$0xff]  }
 0x23c   : > { %v2064_v15 = vmax.f32 %v1700_v3, 0.0  ;;  %v1704_v17 = vpop.f32.mrb[143].mxu0  ;;  %v5612_v18 = vpop.f32.mrb[13].mxu1  ;;  %v1703_v22 = vadd.f32 %v6940_v12, %v1702_v9 }
 0x23d   : > { %v6951_v19 = vpop.f32.mrb[14].mxu1 }
 0x23e   : > { %v2538_v20 = vpack.c.bf16 %v2064_v15, %v2063_v14  ;;  %1914 = vmatmul.mubr.bf16.gmra.mrb[248].mxu0 %v6310_v6  ;;  %v5613_v25 = vpop.f32.mrb[15].mxu1  ;;  %v2065_v29 = vmax.f32 %v1703_v22, 0.0  ;;  %v6317_v22 = vld [vmem:[%s6548_s13 + $0x410] ss:$8 sps:$4 sm:$0xff]  }
 0x23f   : > { %1921 = vmatprep.mubr.bf16.mxu0 %v6311_v11 }
 0x240   : > { %5683 = vmatmul.mubr.msk.bf16.gmra.mrb[72].mxu1 %vm2224_vm1, %v2538_v20  ;;  %v2539_v51 = vpack.c.bf16 %v2065_v29, %v2065_v29 }
 0x241   : > { %v1707_v26 = vpop.f32.mrb[144].mxu0  ;;  %5686 = vmatprep.mubr.msk.bf16.mxu1 %vm6454_vm0, %v8025_v50 }
 0x242   : > { %v1708_v30 = vadd.f32 %v6940_v12, %v1707_v26  ;;  %v1709_v31 = vpop.f32.mrb[145].mxu0  ;;  %v6322_v26 = vld [vmem:[%s6548_s13 + $0x424] ss:$8 sps:$4 sm:$0xff]  }
 0x243   : > { %v1710_v37 = vpop.f32.mrb[146].mxu0  ;;  %v6959_v38 = vpop.f32.mrb[16].mxu1 }
 0x244   : > { %v1711_v42 = vadd.f32 %v6940_v12, %v1710_v37  ;;  %v1712_v43 = vpop.f32.mrb[147].mxu0  ;;  %v5616_v47 = vpop.f32.mrb[17].mxu1  ;;  %v2066_v52 = vmax.f32 %v1708_v30, 0.0 }
 0x245   : > { %v2309_v48 = vpop.f32.mrb[18].mxu1  ;;  %v6320_v47 = vld [vmem:[%s6548_s13 + $0x420] ss:$8 sps:$4 sm:$0xff]  }
 0x246   : > { %v2067_v53 = vmax.f32 %v1711_v42, 0.0  ;;  %1922 = vmatmul.mubr.bf16.gmra.mrb[252].mxu0 %v6313_v33  ;;  %v5617_v54 = vpop.f32.mrb[19].mxu1 }
 0x247   : > { %1929 = vmatprep.mubr.bf16.mxu0 %v6316_v39 }
 0x248   : > { %v6963_v55 = vpack.c.bf16 %v2067_v53, %v2066_v52  ;;  %5687 = vmatmul.mubr.msk.bf16.gmra.mrb[76].mxu1 %vm2224_vm1, %v2539_v51  ;;  %v6325_v51 = vld [vmem:[%s6548_s13 + $0x434] ss:$8 sps:$4 sm:$0xff]  }
 0x249   : > { %v1715_v60 = vpop.f32.mrb[148].mxu0  ;;  %5694 = vmatprep.mubr.msk.bf16.mxu1 %vm6454_vm0, %v8025_v50 }
 0x24a   : > { %v1716_v61 = vadd.f32 %v6940_v12, %v1715_v60  ;;  %v1717_v0 = vpop.f32.mrb[149].mxu0 }
 0x24b   : > { %v1718_v3 = vpop.f32.mrb[150].mxu0 }
 0x24c   : > { %v1719_v6 = vadd.f32 %v6940_v12, %v1718_v3  ;;  %v1720_v9 = vpop.f32.mrb[151].mxu0  ;;  %v2068_v11 = vmax.f32 %v1716_v61, 0.0  ;;  %v6323_v3 = vld [vmem:[%s6548_s13 + $0x430] ss:$8 sps:$4 sm:$0xff]  }
 0x24e   : > { %v2069_v14 = vmax.f32 %v1719_v6, 0.0  ;;  %1930 = vmatmul.mubr.bf16.gmra.mrb[0].mxu0 %v6314_v2  ;;  %v6329_v6 = vld [vmem:[%s6548_s13 + $0x444] ss:$8 sps:$4 sm:$0xff]  }
 0x24f   : > { %1937 = vmatprep.mubr.bf16.mxu0 %v6319_v5 }
 0x250   : > { %v6972_v15 = vpack.c.bf16 %v2069_v14, %v2068_v11 }
 0x251   : > { %v1723_v17 = vpop.f32.mrb[152].mxu0 }
 0x252   : > { %v1724_v18 = vadd.f32 %v6940_v12, %v1723_v17  ;;  %v1725_v20 = vpop.f32.mrb[153].mxu0 }
 0x253   : > { %v1726_v25 = vpop.f32.mrb[154].mxu0  ;;  %v6327_v20 = vld [vmem:[%s6548_s13 + $0x440] ss:$8 sps:$4 sm:$0xff]  }
 0x254   : > { %v1727_v29 = vadd.f32 %v6940_v12, %v1726_v25  ;;  %v1728_v30 = vpop.f32.mrb[155].mxu0  ;;  %v2070_v31 = vmax.f32 %v1724_v18, 0.0 }
 0x256   : > { %v2071_v33 = vmax.f32 %v1727_v29, 0.0  ;;  %1938 = vmatmul.mubr.bf16.gmra.mrb[4].mxu0 %v6317_v22 }
 0x257   : > { %1945 = vmatprep.mubr.bf16.mxu0 %v6322_v26  ;;  %v6333_v26 = vld [vmem:[%s6548_s13 + $0x454] ss:$8 sps:$4 sm:$0xff]  }
 0x258   : > { %v6978_v37 = vpack.c.bf16 %v2071_v33, %v2070_v31 }
 0x259   : > { %v1731_v39 = vpop.f32.mrb[156].mxu0 }
 0x25a   : > { %v1732_v42 = vadd.f32 %v6940_v12, %v1731_v39  ;;  %v1733_v43 = vpop.f32.mrb[157].mxu0 }
 0x25b   : > { %v1734_v48 = vpop.f32.mrb[158].mxu0 }
 0x25c   : > { %v1735_v52 = vadd.f32 %v6940_v12, %v1734_v48  ;;  %v1736_v53 = vpop.f32.mrb[159].mxu0  ;;  %v2072_v54 = vmax.f32 %v1732_v42, 0.0  ;;  %v6340_v42 = vld [vmem:[%s8015_s3 + $0xb0] sm:$0xff]  }
 0x25e   : > { %v2073_v60 = vmax.f32 %v1735_v52, 0.0  ;;  %1946 = vmatmul.mubr.bf16.gmra.mrb[8].mxu0 %v6320_v47  ;;  %v6341_v52 = vld [vmem:[%s8015_s3 + $0xb8] sm:$0xff]  }
 0x25f   : > { %1953 = vmatprep.mubr.bf16.mxu0 %v6325_v51 }
 0x260   : > { %v6984_v61 = vpack.c.bf16 %v2073_v60, %v2072_v54  ;;  %v6331_v60 = vld [vmem:[%s6548_s13 + $0x450] ss:$8 sps:$4 sm:$0xff]  }
 0x261   : > { %v6986_v0 = vpop.f32.mrb[160].mxu0 }
 0x262   : > { %v1741_v2 = vpop.f32.mrb[161].mxu0 }
 0x263   : > { %v1742_v5 = vpop.f32.mrb[162].mxu0 }
 0x264   : > { %v1744_v9 = vpop.f32.mrb[163].mxu0  ;;  %v1743_v11 = vadd.f32 %v6940_v12, %v1742_v5  ;;  %v6336_v5 = vld [vmem:[%s6548_s13 + $0x464] ss:$8 sps:$4 sm:$0xff]  }
 0x266   : > { %1954 = vmatmul.mubr.bf16.gmra.mrb[12].mxu0 %v6323_v3  ;;  %v2075_v29 = vmax.f32 %v1743_v11, 0.0 }
 0x267   : > { %1961 = vmatprep.mubr.bf16.mxu0 %v6329_v6 }
 0x269   : > { %v1747_v14 = vpop.f32.mrb[164].mxu0 }
 0x26a   : > { %v1748_v17 = vadd.f32 %v6940_v12, %v1747_v14  ;;  %v1749_v18 = vpop.f32.mrb[165].mxu0 }
 0x26b   : > { %v1750_v22 = vpop.f32.mrb[166].mxu0  ;;  %v6993_v25 = vpop.f32.mrb[20].mxu1 }
 0x26c   : > { %v2076_v30 = vmax.f32 %v1748_v17, 0.0  ;;  %v1752_v31 = vpop.f32.mrb[167].mxu0  ;;  %v5624_v33 = vpop.f32.mrb[21].mxu1  ;;  %v1751_v48 = vadd.f32 %v6940_v12, %v1750_v22 }
 0x26d   : > { %v6996_v39 = vpop.f32.mrb[22].mxu1  ;;  %v6334_v31 = vld [vmem:[%s6548_s13 + $0x460] ss:$8 sps:$4 sm:$0xff]  }
 0x26e   : > { %v2644_v43 = vpack.c.bf16 %v2076_v30, %v2075_v29  ;;  %1962 = vmatmul.mubr.bf16.gmra.mrb[16].mxu0 %v6327_v20  ;;  %v5625_v47 = vpop.f32.mrb[23].mxu1  ;;  %v2077_v6 = vmax.f32 %v1751_v48, 0.0 }
 0x26f   : > { %1969 = vmatprep.mubr.bf16.mxu0 %v6333_v26 }
 0x270   : > { %5695 = vmatmul.mubr.msk.bf16.vlgmr.msra.gmra.mrb[80].mxu1 %vm2224_vm1, %v2644_v43  ;;  %v6339_v43 = vld [vmem:[%s6548_s13 + $0x474] ss:$8 sps:$4 sm:$0xff]  }
 0x271   : > { %v1755_v51 = vpop.f32.mrb[168].mxu0  ;;  %5698 = vmatprep.mubr.msk.bf16.mxu1 %vm6454_vm0, %v8025_v50  ;;  %5715 = vmatpush3.bf16.msra.mxu1 %v6340_v42 }
 0x272   : > { %v1756_v53 = vadd.f32 %v6940_v12, %v1755_v51  ;;  %v1757_v54 = vpop.f32.mrb[169].mxu0  ;;  %5716 = vmatprep.subr.bf16.mxu1 %v8025_v50 }
 0x273   : > { %v1758_v2 = vpop.f32.mrb[170].mxu0  ;;  %v7011_v3 = vpop.f32.mrb[24].mxu1 }
 0x274   : > { %v2078_v9 = vmax.f32 %v1756_v53, 0.0  ;;  %v1760_v11 = vpop.f32.mrb[171].mxu0  ;;  %v5628_v14 = vpop.f32.mrb[25].mxu1  ;;  %v1759_v22 = vadd.f32 %v6940_v12, %v1758_v2 }
 0x275   : > { %v7014_v17 = vpop.f32.mrb[26].mxu1  ;;  %5717 = vmatpush3.bf16.msra.mxu1 %v6341_v52  ;;  %v6337_v11 = vld [vmem:[%s6548_s13 + $0x470] ss:$8 sps:$4 sm:$0xff]  }
 0x276   : > { %8027 = vst [vmem:[#allocation2_spill] sm:$0xff] %v7014_v17  ;;  %v2645_v18 = vpack.c.bf16 %v2078_v9, %v2077_v6  ;;  %1970 = vmatmul.mubr.bf16.gmra.mrb[20].mxu0 %v6331_v60  ;;  %v5629_v20 = vpop.f32.mrb[27].mxu1  ;;  %5738 = vmatprep.subr.bf16.mxu1 %v8025_v50  ;;  %v2079_v47 = vmax.f32 %v1759_v22, 0.0 }
 0x277   : > { %1977 = vmatprep.mubr.bf16.mxu0 %v6336_v5 }
 0x278   : > { %5699 = vmatmul.mubr.msk.bf16.gmra.mrb[84].mxu1 %vm2224_vm1, %v2645_v18 }
 0x279   : > { %v1763_v26 = vpop.f32.mrb[172].mxu0  ;;  %5702 = vmatprep.mubr.msk.bf16.mxu1 %vm6454_vm0, %v8025_v50 }
 0x27a   : > { %v1764_v29 = vadd.f32 %v6940_v12, %v1763_v26  ;;  %v1765_v30 = vpop.f32.mrb[173].mxu0 }
 0x27b   : > { %v1766_v33 = vpop.f32.mrb[174].mxu0  ;;  %v7023_v42 = vpop.f32.mrb[28].mxu1 }
 0x27c   : > { %8028 = vst [vmem:[#allocation3_spill] sm:$0xff] %v7023_v42  ;;  %v2080_v48 = vmax.f32 %v1764_v29, 0.0  ;;  %v1768_v51 = vpop.f32.mrb[175].mxu0  ;;  %v5632_v52 = vpop.f32.mrb[29].mxu1  ;;  %v1767_v2 = vadd.f32 %v6940_v12, %v1766_v33 }
 0x27d   : > { %v7026_v53 = vpop.f32.mrb[30].mxu1 }
 0x27e   : > { %8029 = vst [vmem:[#allocation4_spill] sm:$0xff] %v7026_v53  ;;  %v2646_v54 = vpack.c.bf16 %v2080_v48, %v2079_v47  ;;  %1978 = vmatmul.mubr.bf16.gmra.mrb[24].mxu0 %v6334_v31  ;;  %v5633_v60 = vpop.f32.mrb[31].mxu1  ;;  %v2081_v20 = vmax.f32 %v1767_v2, 0.0 }
 0x27f   : > { %1985 = vmatprep.mubr.bf16.mxu0 %v6339_v43 }
 0x280   : > { %5703 = vmatmul.mubr.msk.bf16.gmra.mrb[88].mxu1 %vm2224_vm1, %v2646_v54 }
 0x281   : > { %v1771_v5 = vpop.f32.mrb[176].mxu0  ;;  %5706 = vmatprep.mubr.msk.bf16.mxu1 %vm6454_vm0, %v8025_v50 }
 0x282   : > { %v1772_v6 = vadd.f32 %v6940_v12, %v1771_v5  ;;  %v1773_v9 = vpop.f32.mrb[177].mxu0 }
 0x283   : > { %v1774_v14 = vpop.f32.mrb[178].mxu0  ;;  %v7034_v18 = vpop.f32.mrb[32].mxu1 }
 0x284   : > { %8030 = vst [vmem:[#allocation5_spill] sm:$0xff] %v7034_v18  ;;  %v2082_v22 = vmax.f32 %v1772_v6, 0.0  ;;  %v1776_v26 = vpop.f32.mrb[179].mxu0  ;;  %v5636_v29 = vpop.f32.mrb[33].mxu1  ;;  %v1775_v33 = vadd.f32 %v6940_v12, %v1774_v14 }
 0x285   : > { %v7036_v30 = vpop.f32.mrb[34].mxu1 }
 0x286   : > { %8031 = vst [vmem:[#allocation6_spill] sm:$0xff] %v7036_v30  ;;  %v2647_v31 = vpack.c.bf16 %v2082_v22, %v2081_v20  ;;  %1986 = vmatmul.mubr.bf16.gmra.mrb[28].mxu0 %v6337_v11  ;;  %v5637_v43 = vpop.f32.mrb[35].mxu1  ;;  %v2083_v48 = vmax.f32 %v1775_v33, 0.0 }
 0x287   : > { %5986 = vmatprep.mubr.msk.bf16.mxu0 %vm6454_vm0, %v8025_v50 }
 0x288   : > { %5707 = vmatmul.mubr.msk.bf16.gmra.mrb[92].mxu1 %vm2224_vm1, %v2647_v31  ;;  %v2648_v11 = vpack.c.bf16 %v2083_v48, %v2083_v48 }
 0x289   : > { %v1779_v47 = vpop.f32.mrb[180].mxu0  ;;  %5710 = vmatprep.mubr.msk.bf16.mxu1 %vm6454_vm0, %v8025_v50 }
 0x28a   : > { %v1780_v51 = vadd.f32 %v6940_v12, %v1779_v47  ;;  %v1781_v52 = vpop.f32.mrb[181].mxu0 }
 0x28b   : > { %v1782_v54 = vpop.f32.mrb[182].mxu0  ;;  %v7045_v60 = vpop.f32.mrb[36].mxu1 }
 0x28c   : > { %8032 = vst [vmem:[#allocation7_spill] sm:$0xff] %v7045_v60  ;;  %v1783_v2 = vadd.f32 %v6940_v12, %v1782_v54  ;;  %v1784_v5 = vpop.f32.mrb[183].mxu0  ;;  %v5640_v6 = vpop.f32.mrb[37].mxu1  ;;  %v2084_v14 = vmax.f32 %v1780_v51, 0.0 }
 0x28d   : > { %v2418_v9 = vpop.f32.mrb[38].mxu1 }
 0x28e   : > { %v2085_v20 = vmax.f32 %v1783_v2, 0.0  ;;  %v5641_v22 = vpop.f32.mrb[39].mxu1 }
 0x290   : > { %v7048_v26 = vpack.c.bf16 %v2085_v20, %v2084_v14  ;;  %5711 = vmatmul.mubr.msk.bf16.gmra.mrb[96].mxu1 %vm2224_vm1, %v2648_v11 }
 0x291   : > { %v1787_v29 = vpop.f32.mrb[184].mxu0  ;;  %5718 = vmatprep.mubr.msk.bf16.mxu1 %vm6454_vm0, %v8025_v50 }
 0x292   : > { %v1788_v31 = vadd.f32 %v6940_v12, %v1787_v29  ;;  %v1789_v33 = vpop.f32.mrb[185].mxu0 }
 0x293   : > { %v1790_v43 = vpop.f32.mrb[186].mxu0 }
 0x294   : > { %v1791_v47 = vadd.f32 %v6940_v12, %v1790_v43  ;;  %v1792_v52 = vpop.f32.mrb[187].mxu0  ;;  %v2086_v54 = vmax.f32 %v1788_v31, 0.0 }
 0x296   : > { %v2087_v48 = vmax.f32 %v1791_v47, 0.0 }
 0x298   : > { %v7055_v51 = vpack.c.bf16 %v2087_v48, %v2086_v54 }
 0x299   : > { %v1795_v2 = vpop.f32.mrb[188].mxu0 }
 0x29a   : > { %v1796_v5 = vadd.f32 %v6940_v12, %v1795_v2  ;;  %v1797_v6 = vpop.f32.mrb[189].mxu0 }
 0x29b   : > { %v1798_v9 = vpop.f32.mrb[190].mxu0 }
 0x29c   : > { %v1799_v11 = vadd.f32 %v6940_v12, %v1798_v9  ;;  %v1800_v14 = vpop.f32.mrb[191].mxu0  ;;  %v2088_v20 = vmax.f32 %v1796_v5, 0.0 }
 0x29e   : > { %v2089_v22 = vmax.f32 %v1799_v11, 0.0 }
 0x2a0   : > { %v7059_v29 = vpack.c.bf16 %v2089_v22, %v2088_v20  ;;  %v6345_v20 = vld [vmem:[%s8017_s5 + $0x20] sm:$0xff]  }
 0x2a1   : > { %v1803_v33 = vpop.f32.mrb[192].mxu0  ;;  %5979 = vmatpush3.bf16.msra.mxu0 %v6345_v20 }
 0x2a2   : > { %v1804_v43 = vadd.f32 %v6940_v12, %v1803_v33  ;;  %v1805_v52 = vpop.f32.mrb[193].mxu0  ;;  %5980 = vmatprep.subr.bf16.mxu0 %v8025_v50 }
 0x2a3   : > { %v1806_v31 = vpop.f32.mrb[194].mxu0 }
 0x2a4   : > { %v1807_v47 = vadd.f32 %v6940_v12, %v1806_v31  ;;  %v1808_v54 = vpop.f32.mrb[195].mxu0  ;;  %v2090_v48 = vmax.f32 %v1804_v43, 0.0 }
 0x2a6   : > { %v2091_v1 = vmax.f32 %v1807_v47, 0.0 }
 0x2a8   : > { %v7063_v2 = vpack.c.bf16 %v2091_v1, %v2090_v48 }
 0x2a9   : > { %v7065_v6 = vpop.f32.mrb[196].mxu0 }
 0x2aa   : > { %v1813_v9 = vpop.f32.mrb[197].mxu0 }
 0x2ab   : > { %v1814_v14 = vpop.f32.mrb[198].mxu0 }
 0x2ac   : > { %v1816_v5 = vpop.f32.mrb[199].mxu0  ;;  %v1815_v11 = vadd.f32 %v6940_v12, %v1814_v14  ;;  %v6342_v14 = vld [vmem:[%s8015_s3 + $0xd0] sm:$0xff]  }
 0x2ae   : > { %v2093_v1 = vmax.f32 %v1815_v11, 0.0  ;;  %v6343_v11 = vld [vmem:[%s8015_s3 + $0xd8] sm:$0xff]  }
 0x2b1   : > { %v1819_v22 = vpop.f32.mrb[200].mxu0 }
 0x2b2   : > { %v1820_v33 = vadd.f32 %v6940_v12, %v1819_v22  ;;  %v1821_v52 = vpop.f32.mrb[201].mxu0 }
 0x2b3   : > { %v1822_v43 = vpop.f32.mrb[202].mxu0  ;;  %v7072_v31 = vpop.f32.mrb[40].mxu1 }
 0x2b4   : > { %8033 = vst [vmem:[#allocation8_spill] sm:$0xff] %v7072_v31  ;;  %v2094_v47 = vmax.f32 %v1820_v33, 0.0  ;;  %v1824_v54 = vpop.f32.mrb[203].mxu0  ;;  %v5648_v48 = vpop.f32.mrb[41].mxu1  ;;  %v1823_v22 = vadd.f32 %v6940_v12, %v1822_v43 }
 0x2b5   : > { %v7075_v9 = vpop.f32.mrb[42].mxu1 }
 0x2b6   : > { %8034 = vst [vmem:[#allocation9_spill] sm:$0xff] %v7075_v9  ;;  %v2753_v5 = vpack.c.bf16 %v2094_v47, %v2093_v1  ;;  %v5649_v60 = vpop.f32.mrb[43].mxu1  ;;  %v2095_v43 = vmax.f32 %v1823_v22, 0.0 }
 0x2b8   : > { %5719 = vmatmul.mubr.msk.bf16.vlgmr.msra.gmra.mrb[100].mxu1 %vm2224_vm1, %v2753_v5 }
 0x2b9   : > { %v1827_v20 = vpop.f32.mrb[204].mxu0  ;;  %5722 = vmatprep.mubr.msk.bf16.mxu1 %vm6454_vm0, %v8025_v50  ;;  %5739 = vmatpush3.bf16.msra.mxu1 %v6342_v14 }
 0x2ba   : > { %v1828_v33 = vadd.f32 %v6940_v12, %v1827_v20  ;;  %v1829_v52 = vpop.f32.mrb[205].mxu0  ;;  %5740 = vmatprep.subr.bf16.mxu1 %v8025_v50 }
 0x2bb   : > { %v1830_v1 = vpop.f32.mrb[206].mxu0  ;;  %v7089_v60 = vpop.f32.mrb[44].mxu1 }
 0x2bc   : > { %8035 = vst [vmem:[#allocation10_spill] sm:$0xff] %v7089_v60  ;;  %v2096_v47 = vmax.f32 %v1828_v33, 0.0  ;;  %v1832_v54 = vpop.f32.mrb[207].mxu0  ;;  %v5652_v48 = vpop.f32.mrb[45].mxu1  ;;  %v1831_v31 = vadd.f32 %v6940_v12, %v1830_v1 }
 0x2bd   : > { %v7091_v5 = vpop.f32.mrb[46].mxu1  ;;  %5741 = vmatpush3.bf16.msra.mxu1 %v6343_v11 }
 0x2be   : > { %8036 = vst [vmem:[#allocation11_spill] sm:$0xff] %v7091_v5  ;;  %v2754_v14 = vpack.c.bf16 %v2096_v47, %v2095_v43  ;;  %v5653_v9 = vpop.f32.mrb[47].mxu1  ;;  %5762 = vmatprep.subr.bf16.mxu1 %v8025_v50  ;;  %v2097_v48 = vmax.f32 %v1831_v31, 0.0 }
 0x2c0   : > { %5723 = vmatmul.mubr.msk.bf16.gmra.mrb[104].mxu1 %vm2224_vm1, %v2754_v14 }
 0x2c1   : > { %v1835_v20 = vpop.f32.mrb[208].mxu0  ;;  %5726 = vmatprep.mubr.msk.bf16.mxu1 %vm6454_vm0, %v8025_v50 }
 0x2c2   : > { %v1836_v22 = vadd.f32 %v6940_v12, %v1835_v20  ;;  %v1837_v33 = vpop.f32.mrb[209].mxu0 }
 0x2c3   : > { %v1838_v52 = vpop.f32.mrb[210].mxu0  ;;  %v7099_v54 = vpop.f32.mrb[48].mxu1 }
 0x2c4   : > { %8037 = vst [vmem:[#allocation12_spill] sm:$0xff] %v7099_v54  ;;  %v2098_v11 = vmax.f32 %v1836_v22, 0.0  ;;  %v1840_v43 = vpop.f32.mrb[211].mxu0  ;;  %v5656_v9 = vpop.f32.mrb[49].mxu1  ;;  %v1839_v14 = vadd.f32 %v6940_v12, %v1838_v52 }
 0x2c5   : > { %v7101_v47 = vpop.f32.mrb[50].mxu1 }
 0x2c6   : > { %8038 = vst [vmem:[#allocation13_spill] sm:$0xff] %v7101_v47  ;;  %v2755_v5 = vpack.c.bf16 %v2098_v11, %v2097_v48  ;;  %v5657_v1 = vpop.f32.mrb[51].mxu1  ;;  %v2099_v22 = vmax.f32 %v1839_v14, 0.0 }
 0x2c8   : > { %5727 = vmatmul.mubr.msk.bf16.gmra.mrb[108].mxu1 %vm2224_vm1, %v2755_v5 }
 0x2c9   : > { %v1843_v60 = vpop.f32.mrb[212].mxu0  ;;  %5730 = vmatprep.mubr.msk.bf16.mxu1 %vm6454_vm0, %v8025_v50 }
 0x2ca   : > { %v1844_v20 = vadd.f32 %v6940_v12, %v1843_v60  ;;  %v1845_v33 = vpop.f32.mrb[213].mxu0 }
 0x2cb   : > { %v1846_v54 = vpop.f32.mrb[214].mxu0  ;;  %v7108_v31 = vpop.f32.mrb[52].mxu1 }
 0x2cc   : > { %8039 = vst [vmem:[#allocation14_spill] sm:$0xff] %v7108_v31  ;;  %v2100_v43 = vmax.f32 %v1844_v20, 0.0  ;;  %v1848_v9 = vpop.f32.mrb[215].mxu0  ;;  %v5660_v47 = vpop.f32.mrb[53].mxu1  ;;  %v1847_v52 = vadd.f32 %v6940_v12, %v1846_v54 }
 0x2cd   : > { %v7110_v48 = vpop.f32.mrb[54].mxu1 }
 0x2ce   : > { %8040 = vst [vmem:[#allocation15_spill] sm:$0xff] %v7110_v48  ;;  %v2756_v11 = vpack.c.bf16 %v2100_v43, %v2099_v22  ;;  %v5661_v5 = vpop.f32.mrb[55].mxu1  ;;  %v2101_v60 = vmax.f32 %v1847_v52, 0.0 }
 0x2d0   : > { %5731 = vmatmul.mubr.msk.bf16.gmra.mrb[112].mxu1 %vm2224_vm1, %v2756_v11  ;;  %v2757_v54 = vpack.c.bf16 %v2101_v60, %v2101_v60 }
 0x2d1   : > { %v1851_v1 = vpop.f32.mrb[216].mxu0  ;;  %5734 = vmatprep.mubr.msk.bf16.mxu1 %vm6454_vm0, %v8025_v50 }
 0x2d2   : > { %v1852_v33 = vadd.f32 %v6940_v12, %v1851_v1  ;;  %v1853_v31 = vpop.f32.mrb[217].mxu0 }
 0x2d3   : > { %v1854_v14 = vpop.f32.mrb[218].mxu0  ;;  %v7117_v20 = vpop.f32.mrb[56].mxu1 }
 0x2d4   : > { %8041 = vst [vmem:[#allocation16_spill] sm:$0xff] %v7117_v20  ;;  %v1855_v47 = vadd.f32 %v6940_v12, %v1854_v14  ;;  %v1856_v9 = vpop.f32.mrb[219].mxu0  ;;  %v5664_v22 = vpop.f32.mrb[57].mxu1  ;;  %v2102_v5 = vmax.f32 %v1852_v33, 0.0 }
 0x2d5   : > { %v2527_v43 = vpop.f32.mrb[58].mxu1 }
 0x2d6   : > { %v2103_v48 = vmax.f32 %v1855_v47, 0.0  ;;  %v5665_v11 = vpop.f32.mrb[59].mxu1 }
 0x2d8   : > { %v7120_v30 = vpack.c.bf16 %v2103_v48, %v2102_v5  ;;  %5735 = vmatmul.mubr.msk.bf16.gmra.mrb[116].mxu1 %vm2224_vm1, %v2757_v54 }
 0x2d9   : > { %v1859_v52 = vpop.f32.mrb[220].mxu0  ;;  %5742 = vmatprep.mubr.msk.bf16.mxu1 %vm6454_vm0, %v8025_v50 }
 0x2da   : > { %v1860_v31 = vadd.f32 %v6940_v12, %v1859_v52  ;;  %v1861_v1 = vpop.f32.mrb[221].mxu0 }
 0x2db   : > { %v1862_v20 = vpop.f32.mrb[222].mxu0 }
 0x2dc   : > { %v1863_v14 = vadd.f32 %v6940_v12, %v1862_v20  ;;  %v1864_v9 = vpop.f32.mrb[223].mxu0  ;;  %v2104_v22 = vmax.f32 %v1860_v31, 0.0 }
 0x2de   : > { %v2105_v60 = vmax.f32 %v1863_v14, 0.0 }
 0x2e0   : > { %v7127_v33 = vpack.c.bf16 %v2105_v60, %v2104_v22 }
 0x2e1   : > { %v1867_v47 = vpop.f32.mrb[224].mxu0 }
 0x2e2   : > { %v1868_v48 = vadd.f32 %v6940_v12, %v1867_v47  ;;  %v1869_v43 = vpop.f32.mrb[225].mxu0 }
 0x2e3   : > { %v1870_v54 = vpop.f32.mrb[226].mxu0 }
 0x2e4   : > { %v1871_v5 = vadd.f32 %v6940_v12, %v1870_v54  ;;  %v1872_v11 = vpop.f32.mrb[227].mxu0  ;;  %v2106_v50 = vmax.f32 %v1868_v48, 0.0 }
 0x2e6   : > { %v2107_v18 = vmax.f32 %v1871_v5, 0.0 }
 0x2e8   : > { %v7131_v52 = vpack.c.bf16 %v2107_v18, %v2106_v50 }
 0x2e9   : > { %v1875_v1 = vpop.f32.mrb[228].mxu0 }
 0x2ea   : > { %v1876_v20 = vadd.f32 %v6940_v12, %v1875_v1  ;;  %v1877_v9 = vpop.f32.mrb[229].mxu0 }
 0x2eb   : > { %v1878_v31 = vpop.f32.mrb[230].mxu0 }
 0x2ec   : > { %v1879_v14 = vadd.f32 %v6940_v12, %v1878_v31  ;;  %v1880_v22 = vpop.f32.mrb[231].mxu0  ;;  %v2108_v60 = vmax.f32 %v1876_v20, 0.0 }
 0x2ee   : > { %v2109_v53 = vmax.f32 %v1879_v14, 0.0 }
 0x2f0   : > { %v7135_v47 = vpack.c.bf16 %v2109_v53, %v2108_v60  ;;  %v6344_v60 = vld [vmem:[%s8015_s3 + $0xf0] sm:$0xff]  }
 0x2f1   : > { %v7137_v43 = vpop.f32.mrb[232].mxu0 }
 0x2f2   : > { %8042 = vst [vmem:[#allocation17_spill] sm:$0xff] %v7135_v47  ;;  %8043 = vst [vmem:[#allocation18_spill] sm:$0xff] %v7137_v43  ;;  %v1885_v54 = vpop.f32.mrb[233].mxu0 }
 0x2f3   : > { %v1886_v11 = vpop.f32.mrb[234].mxu0 }
 0x2f4   : > { %v1888_v48 = vpop.f32.mrb[235].mxu0  ;;  %v1887_v50 = vadd.f32 %v6940_v12, %v1886_v11 }
 0x2f6   : > { %v2111_v31 = vmax.f32 %v1887_v50, 0.0  ;;  %v6346_v50 = vld [vmem:[%s8015_s3 + $0xf8] sm:$0xff]  }
 0x2f9   : > { %v1891_v18 = vpop.f32.mrb[236].mxu0 }
 0x2fa   : > { %v1892_v5 = vadd.f32 %v6940_v12, %v1891_v18  ;;  %v1893_v1 = vpop.f32.mrb[237].mxu0 }
 0x2fb   : > { %v1894_v9 = vpop.f32.mrb[238].mxu0  ;;  %v7141_v42 = vpop.f32.mrb[60].mxu1  ;;  %v8046_v1 = vmov 0.0  }
 0x2fc   : > { %8044 = vst [vmem:[#allocation19_spill] sm:$0xff] %v7141_v42  ;;  %v2112_v22 = vmax.f32 %v1892_v5, 0.0  ;;  %v1896_v20 = vpop.f32.mrb[239].mxu0  ;;  %v5672_v14 = vpop.f32.mrb[61].mxu1  ;;  %v1895_v11 = vadd.f32 %v6940_v12, %v1894_v9 }
 0x2fd   : > { %v7143_v53 = vpop.f32.mrb[62].mxu1 }
 0x2fe   : > { %8045 = vst [vmem:[#allocation20_spill] sm:$0xff] %v7143_v53  ;;  %v2862_v54 = vpack.c.bf16 %v2112_v22, %v2111_v31  ;;  %v5673_v48 = vpop.f32.mrb[63].mxu1  ;;  %v2113_v9 = vmax.f32 %v1895_v11, 0.0 }
 0x300   : > { %5743 = vmatmul.mubr.msk.bf16.vlgmr.msra.gmra.mrb[120].mxu1 %vm2224_vm1, %v2862_v54 }
 0x301   : > { %v1899_v18 = vpop.f32.mrb[240].mxu0  ;;  %5746 = vmatprep.mubr.msk.bf16.mxu1 %vm6454_vm0, %v8046_v1  ;;  %5763 = vmatpush3.bf16.msra.mxu1 %v6344_v60 }
 0x302   : > { %v1900_v5 = vadd.f32 %v6940_v12, %v1899_v18  ;;  %v1901_v20 = vpop.f32.mrb[241].mxu0  ;;  %5764 = vmatprep.subr.bf16.mxu1 %v8046_v1 }
 0x303   : > { %v1902_v31 = vpop.f32.mrb[242].mxu0  ;;  %v7157_v22 = vpop.f32.mrb[64].mxu1 }
 0x304   : > { %8047 = vst [vmem:[#allocation21_spill] sm:$0xff] %v7157_v22  ;;  %v2114_v14 = vmax.f32 %v1900_v5, 0.0  ;;  %v1904_v54 = vpop.f32.mrb[243].mxu0  ;;  %v5676_v48 = vpop.f32.mrb[65].mxu1  ;;  %v1903_v47 = vadd.f32 %v6940_v12, %v1902_v31 }
 0x305   : > { %v7159_v53 = vpop.f32.mrb[66].mxu1  ;;  %5765 = vmatpush3.bf16.msra.mxu1 %v6346_v50 }
 0x306   : > { %8048 = vst [vmem:[#allocation22_spill] sm:$0xff] %v7159_v53  ;;  %v2863_v60 = vpack.c.bf16 %v2114_v14, %v2113_v9  ;;  %v5677_v42 = vpop.f32.mrb[67].mxu1  ;;  %5786 = vmatprep.subr.bf16.mxu1 %v8046_v1  ;;  %v2115_v48 = vmax.f32 %v1903_v47, 0.0 }
 0x308   : > { %5747 = vmatmul.mubr.msk.bf16.gmra.mrb[124].mxu1 %vm2224_vm1, %v2863_v60 }
 0x309   : > { %v1907_v18 = vpop.f32.mrb[244].mxu0  ;;  %5750 = vmatprep.mubr.msk.bf16.mxu1 %vm6454_vm0, %v8046_v1 }
 0x30a   : > { %v1908_v11 = vadd.f32 %v6940_v12, %v1907_v18  ;;  %v1909_v5 = vpop.f32.mrb[245].mxu0 }
 0x30b   : > { %v1910_v20 = vpop.f32.mrb[246].mxu0  ;;  %v7167_v54 = vpop.f32.mrb[68].mxu1 }
 0x30c   : > { %8049 = vst [vmem:[#allocation23_spill] sm:$0xff] %v7167_v54  ;;  %v2116_v50 = vmax.f32 %v1908_v11, 0.0  ;;  %v1912_v9 = vpop.f32.mrb[247].mxu0  ;;  %v5680_v42 = vpop.f32.mrb[69].mxu1  ;;  %v1911_v60 = vadd.f32 %v6940_v12, %v1910_v20 }
 0x30d   : > { %v7169_v14 = vpop.f32.mrb[70].mxu1 }
 0x30e   : > { %8050 = vst [vmem:[#allocation24_spill] sm:$0xff] %v7169_v14  ;;  %v2864_v53 = vpack.c.bf16 %v2116_v50, %v2115_v48  ;;  %v5681_v31 = vpop.f32.mrb[71].mxu1  ;;  %v2117_v11 = vmax.f32 %v1911_v60, 0.0 }
 0x310   : > { %5751 = vmatmul.mubr.msk.bf16.gmra.mrb[128].mxu1 %vm2224_vm1, %v2864_v53 }
 0x311   : > { %v1915_v22 = vpop.f32.mrb[248].mxu0  ;;  %5754 = vmatprep.mubr.msk.bf16.mxu1 %vm6454_vm0, %v8046_v1 }
 0x312   : > { %v1916_v18 = vadd.f32 %v6940_v12, %v1915_v22  ;;  %v1917_v5 = vpop.f32.mrb[249].mxu0 }
 0x313   : > { %v1918_v54 = vpop.f32.mrb[250].mxu0  ;;  %v7176_v47 = vpop.f32.mrb[72].mxu1 }
 0x314   : > { %8051 = vst [vmem:[#allocation25_spill] sm:$0xff] %v7176_v47  ;;  %v2118_v9 = vmax.f32 %v1916_v18, 0.0  ;;  %v1920_v42 = vpop.f32.mrb[251].mxu0  ;;  %v5684_v14 = vpop.f32.mrb[73].mxu1  ;;  %v1919_v20 = vadd.f32 %v6940_v12, %v1918_v54 }
 0x315   : > { %v7178_v48 = vpop.f32.mrb[74].mxu1 }
 0x316   : > { %8052 = vst [vmem:[#allocation26_spill] sm:$0xff] %v7178_v48  ;;  %v2865_v50 = vpack.c.bf16 %v2118_v9, %v2117_v11  ;;  %v5685_v53 = vpop.f32.mrb[75].mxu1  ;;  %v2119_v22 = vmax.f32 %v1919_v20, 0.0 }
 0x318   : > { %5755 = vmatmul.mubr.msk.bf16.gmra.mrb[132].mxu1 %vm2224_vm1, %v2865_v50  ;;  %v2866_v54 = vpack.c.bf16 %v2119_v22, %v2119_v22 }
 0x319   : > { %v1923_v31 = vpop.f32.mrb[252].mxu0  ;;  %5758 = vmatprep.mubr.msk.bf16.mxu1 %vm6454_vm0, %v8046_v1 }
 0x31a   : > { %v1924_v5 = vadd.f32 %v6940_v12, %v1923_v31  ;;  %v1925_v47 = vpop.f32.mrb[253].mxu0 }
 0x31b   : > { %v1926_v60 = vpop.f32.mrb[254].mxu0  ;;  %v7185_v18 = vpop.f32.mrb[76].mxu1 }
 0x31c   : > { %8053 = vst [vmem:[#allocation27_spill] sm:$0xff] %v7185_v18  ;;  %v1927_v14 = vadd.f32 %v6940_v12, %v1926_v60  ;;  %v1928_v42 = vpop.f32.mrb[255].mxu0  ;;  %v5688_v11 = vpop.f32.mrb[77].mxu1  ;;  %v2120_v53 = vmax.f32 %v1924_v5, 0.0 }
 0x31d   : > { %v2636_v9 = vpop.f32.mrb[78].mxu1 }
 0x31e   : > { %v2121_v48 = vmax.f32 %v1927_v14, 0.0  ;;  %v5689_v50 = vpop.f32.mrb[79].mxu1 }
 0x320   : > { %v7188_v17 = vpack.c.bf16 %v2121_v48, %v2120_v53  ;;  %5759 = vmatmul.mubr.msk.bf16.gmra.mrb[136].mxu1 %vm2224_vm1, %v2866_v54 }
 0x321   : > { %v1931_v20 = vpop.f32.mrb[0].mxu0  ;;  %5766 = vmatprep.mubr.msk.bf16.mxu1 %vm6454_vm0, %v8046_v1 }
 0x322   : > { %8054 = vst [vmem:[#allocation28_spill] sm:$0xff] %v7188_v17  ;;  %v1932_v47 = vadd.f32 %v6940_v12, %v1931_v20  ;;  %v1933_v31 = vpop.f32.mrb[1].mxu0 }
 0x323   : > { %v1934_v18 = vpop.f32.mrb[2].mxu0 }
 0x324   : > { %v1935_v60 = vadd.f32 %v6940_v12, %v1934_v18  ;;  %v1936_v42 = vpop.f32.mrb[3].mxu0  ;;  %v2122_v11 = vmax.f32 %v1932_v47, 0.0 }
 0x326   : > { %v2123_v22 = vmax.f32 %v1935_v60, 0.0 }
 0x328   : > { %v7195_v5 = vpack.c.bf16 %v2123_v22, %v2122_v11 }
 0x329   : > { %v1939_v14 = vpop.f32.mrb[4].mxu0 }
 0x32a   : > { %8055 = vst [vmem:[#allocation29_spill] sm:$0xff] %v7195_v5  ;;  %v1940_v48 = vadd.f32 %v6940_v12, %v1939_v14  ;;  %v1941_v9 = vpop.f32.mrb[5].mxu0 }
 0x32b   : > { %v1942_v54 = vpop.f32.mrb[6].mxu0  ;;  %v6353_v9 = vld [vmem:[%s8017_s5 + $0x28] sm:$0xff]  }
 0x32c   : > { %v1943_v53 = vadd.f32 %v6940_v12, %v1942_v54  ;;  %v1944_v50 = vpop.f32.mrb[7].mxu0  ;;  %v2124_v17 = vmax.f32 %v1940_v48, 0.0  ;;  %5981 = vmatpush3.bf16.msra.mxu0 %v6353_v9  ;;  %v6347_v9 = vld [vmem:[%s8015_s3] sm:$0xff]  }
 0x32d   : > { %5982 = vmatprep.subr.bf16.mxu0 %v8046_v1 }
 0x32e   : > { %v2125_v43 = vmax.f32 %v1943_v53, 0.0 }
 0x330   : > { %v7199_v20 = vpack.c.bf16 %v2125_v43, %v2124_v17 }
 0x331   : > { %v1947_v31 = vpop.f32.mrb[8].mxu0 }
 0x332   : > { %v1948_v18 = vadd.f32 %v6940_v12, %v1947_v31  ;;  %v1949_v42 = vpop.f32.mrb[9].mxu0 }
 0x333   : > { %v1950_v47 = vpop.f32.mrb[10].mxu0 }
 0x334   : > { %v1951_v60 = vadd.f32 %v6940_v12, %v1950_v47  ;;  %v1952_v11 = vpop.f32.mrb[11].mxu0  ;;  %v2126_v22 = vmax.f32 %v1948_v18, 0.0 }
 0x336   : > { %v2127_v5 = vmax.f32 %v1951_v60, 0.0 }
 0x338   : > { %v7203_v14 = vpack.c.bf16 %v2127_v5, %v2126_v22 }
 0x339   : > { %v7208_v48 = vpop.f32.mrb[12].mxu0 }
 0x33a   : > { %8056 = vst [vmem:[#allocation30_spill] sm:$0xff] %v7203_v14  ;;  %v1957_v17 = vpop.f32.mrb[13].mxu0 }
 0x33b   : > { %v1958_v43 = vpop.f32.mrb[14].mxu0 }
 0x33c   : > { %v1960_v54 = vpop.f32.mrb[15].mxu0  ;;  %v1959_v53 = vadd.f32 %v6940_v12, %v1958_v43 }
 0x33e   : > { %v2129_v47 = vmax.f32 %v1959_v53, 0.0  ;;  %v6348_v53 = vld [vmem:[%s8015_s3 + $0x8] sm:$0xff]  }
 0x341   : > { %v1963_v50 = vpop.f32.mrb[16].mxu0 }
 0x342   : > { %v1964_v31 = vadd.f32 %v6940_v12, %v1963_v50  ;;  %v1965_v18 = vpop.f32.mrb[17].mxu0 }
 0x343   : > { %v1966_v5 = vpop.f32.mrb[18].mxu0  ;;  %v7213_v42 = vpop.f32.mrb[80].mxu1 }
 0x344   : > { %8057 = vst [vmem:[#allocation31_spill] sm:$0xff] %v7213_v42  ;;  %v2130_v60 = vmax.f32 %v1964_v31, 0.0  ;;  %v1968_v11 = vpop.f32.mrb[19].mxu0  ;;  %v5696_v22 = vpop.f32.mrb[81].mxu1  ;;  %v1967_v43 = vadd.f32 %v6940_v12, %v1966_v5 }
 0x345   : > { %v7215_v14 = vpop.f32.mrb[82].mxu1 }
 0x346   : > { %8058 = vst [vmem:[#allocation32_spill] sm:$0xff] %v7215_v14  ;;  %v2971_v17 = vpack.c.bf16 %v2130_v60, %v2129_v47  ;;  %v5697_v54 = vpop.f32.mrb[83].mxu1  ;;  %v2131_v5 = vmax.f32 %v1967_v43, 0.0 }
 0x348   : > { %5767 = vmatmul.mubr.msk.bf16.vlgmr.msra.gmra.mrb[140].mxu1 %vm2224_vm1, %v2971_v17 }
 0x349   : > { %5787 = vmatpush3.bf16.msra.mxu1 %v6347_v9  ;;  %v1971_v50 = vpop.f32.mrb[20].mxu0  ;;  %5770 = vmatprep.mubr.msk.bf16.mxu1 %vm6454_vm0, %v8046_v1 }
 0x34a   : > { %v1972_v31 = vadd.f32 %v6940_v12, %v1971_v50  ;;  %v1973_v18 = vpop.f32.mrb[21].mxu0  ;;  %5788 = vmatprep.subr.bf16.mxu1 %v8046_v1 }
 0x34b   : > { %v1974_v47 = vpop.f32.mrb[22].mxu0  ;;  %v7229_v60 = vpop.f32.mrb[84].mxu1 }
 0x34c   : > { %8059 = vst [vmem:[#allocation33_spill] sm:$0xff] %v7229_v60  ;;  %v2132_v11 = vmax.f32 %v1972_v31, 0.0  ;;  %v1976_v22 = vpop.f32.mrb[23].mxu0  ;;  %v5700_v9 = vpop.f32.mrb[85].mxu1  ;;  %v1975_v42 = vadd.f32 %v6940_v12, %v1974_v47 }
 0x34d   : > { %v7231_v17 = vpop.f32.mrb[86].mxu1  ;;  %5789 = vmatpush3.bf16.msra.mxu1 %v6348_v53 }
 0x34e   : > { %8060 = vst [vmem:[#allocation34_spill] sm:$0xff] %v7231_v17  ;;  %v2972_v54 = vpack.c.bf16 %v2132_v11, %v2131_v5  ;;  %v5701_v14 = vpop.f32.mrb[87].mxu1  ;;  %5810 = vmatprep.subr.bf16.mxu1 %v8046_v1  ;;  %v2133_v9 = vmax.f32 %v1975_v42, 0.0 }
 0x350   : > { %5771 = vmatmul.mubr.msk.bf16.gmra.mrb[144].mxu1 %vm2224_vm1, %v2972_v54 }
 0x351   : > { %v1979_v50 = vpop.f32.mrb[24].mxu0  ;;  %5774 = vmatprep.mubr.msk.bf16.mxu1 %vm6454_vm0, %v8046_v1 }
 0x352   : > { %v1980_v43 = vadd.f32 %v6940_v12, %v1979_v50  ;;  %v1981_v31 = vpop.f32.mrb[25].mxu0 }
 0x353   : > { %v1982_v18 = vpop.f32.mrb[26].mxu0  ;;  %v7239_v22 = vpop.f32.mrb[88].mxu1 }
 0x354   : > { %8061 = vst [vmem:[#allocation35_spill] sm:$0xff] %v7239_v22  ;;  %v2134_v53 = vmax.f32 %v1980_v43, 0.0  ;;  %v1984_v5 = vpop.f32.mrb[27].mxu0  ;;  %v5704_v14 = vpop.f32.mrb[89].mxu1  ;;  %v1983_v54 = vadd.f32 %v6940_v12, %v1982_v18 }
 0x355   : > { %v7241_v11 = vpop.f32.mrb[90].mxu1 }
 0x356   : > { %8062 = vst [vmem:[#allocation36_spill] sm:$0xff] %v7241_v11  ;;  %v2973_v17 = vpack.c.bf16 %v2134_v53, %v2133_v9  ;;  %v5705_v47 = vpop.f32.mrb[91].mxu1  ;;  %v2135_v43 = vmax.f32 %v1983_v54, 0.0 }
 0x358   : > { %5775 = vmatmul.mubr.msk.bf16.gmra.mrb[148].mxu1 %vm2224_vm1, %v2973_v17  ;;  %v7255_v17 = vld [vmem:[%s8014_s2] ss:$0 sm:$0xff] }
 0x359   : > { %v1987_v60 = vpop.f32.mrb[28].mxu0  ;;  %5778 = vmatprep.mubr.msk.bf16.mxu1 %vm6454_vm0, %v8046_v1 }
 0x35a   : > { %v1988_v50 = vadd.f32 %v6940_v12, %v1987_v60  ;;  %v1989_v31 = vpop.f32.mrb[29].mxu0 }
 0x35b   : > { %v1990_v22 = vpop.f32.mrb[30].mxu0  ;;  %v7248_v42 = vpop.f32.mrb[92].mxu1 }
 0x35c   : > { %v2136_v5 = vmax.f32 %v1988_v50, 0.0  ;;  %v1992_v14 = vpop.f32.mrb[31].mxu0  ;;  %v5708_v11 = vpop.f32.mrb[93].mxu1  ;;  %v1991_v18 = vadd.f32 %v7255_v17, %v1990_v22  ;;  %v6349_v22 = vld [vmem:[%s8015_s3 + $0x20] sm:$0xff]  }
 0x35d   : > { %v7250_v9 = vpop.f32.mrb[94].mxu1 }
 0x35e   : > { %v2974_v53 = vpack.c.bf16 %v2136_v5, %v2135_v43  ;;  %v5709_v47 = vpop.f32.mrb[95].mxu1  ;;  %v2137_v12 = vmax.f32 %v1991_v18, 0.0  ;;  %v6350_v43 = vld [vmem:[%s8015_s3 + $0x28] sm:$0xff]  }
 0x360   : > { %5779 = vmatmul.mubr.msk.bf16.gmra.mrb[152].mxu1 %vm2224_vm1, %v2974_v53  ;;  %v2975_v50 = vpack.c.bf16 %v2137_v12, %v2137_v12  ;;  %v6351_v12 = vld [vmem:[%s8015_s3 + $0x40] sm:$0xff]  }
 0x361   : > { %5782 = vmatprep.mubr.msk.bf16.mxu1 %vm6454_vm0, %v8046_v1 }
 0x363   : > { %v7261_v60 = vpop.f32.mrb[96].mxu1 }
 0x364   : > { %v5712_v11 = vpop.f32.mrb[97].mxu1 }
 0x365   : > { %v2745_v54 = vpop.f32.mrb[98].mxu1 }
 0x366   : > { %v5713_v31 = vpop.f32.mrb[99].mxu1  ;;  %v6352_v54 = vld [vmem:[%s8015_s3 + $0x48] sm:$0xff]  }
 0x368   : > { %5783 = vmatmul.mubr.msk.bf16.gmra.mrb[156].mxu1 %vm2224_vm1, %v2975_v50 }
 0x369   : > { %5790 = vmatprep.mubr.msk.bf16.mxu1 %vm6454_vm0, %v8046_v1 }
 0x370   : > { %5791 = vmatmul.mubr.msk.bf16.vlgmr.msra.gmra.mrb[160].mxu1 %vm2224_vm1, %v6671_v23  ;;  %v1452_v23 = vadd.f32 %v7255_v17, %v6691_v58 }
 0x371   : > { %5811 = vmatpush3.bf16.msra.mxu1 %v6349_v22  ;;  %5794 = vmatprep.mubr.msk.bf16.mxu1 %vm6454_vm0, %v8046_v1 }
 0x372   : > { %5812 = vmatprep.subr.bf16.mxu1 %v8046_v1  ;;  %v2002_v5 = vmax.f32 %v1452_v23, 0.0 }
 0x374   : > { %v2206_v18 = vpack.c.bf16 %v2002_v5, %v2002_v5 }
 0x375   : > { %5813 = vmatpush3.bf16.msra.mxu1 %v6350_v43 }
 0x376   : > { %5834 = vmatprep.subr.bf16.mxu1 %v8046_v1 }
 0x378   : > { %5795 = vmatmul.mubr.msk.bf16.gmra.mrb[164].mxu1 %vm2224_vm1, %v6677_v34 }
 0x379   : > { %5798 = vmatprep.mubr.msk.bf16.mxu1 %vm6454_vm0, %v8046_v1 }
 0x380   : > { %5799 = vmatmul.mubr.msk.bf16.gmra.mrb[168].mxu1 %vm2224_vm1, %v6683_v45 }
 0x381   : > { %5802 = vmatprep.mubr.msk.bf16.mxu1 %vm6454_vm0, %v8046_v1 }
 0x388   : > { %5803 = vmatmul.mubr.msk.bf16.gmra.mrb[172].mxu1 %vm2224_vm1, %v6689_v57 }
 0x389   : > { %5806 = vmatprep.mubr.msk.bf16.mxu1 %vm6454_vm0, %v8046_v1 }
 0x38b   : > { %v7292_v34 = vpop.f32.mrb[100].mxu1 }
 0x38c   : > { %v5720_v14 = vpop.f32.mrb[101].mxu1 }
 0x38d   : > { %v7294_v53 = vpop.f32.mrb[102].mxu1 }
 0x38e   : > { %v5721_v45 = vpop.f32.mrb[103].mxu1 }
 0x390   : > { %5807 = vmatmul.mubr.msk.bf16.gmra.mrb[176].mxu1 %vm2224_vm1, %v2206_v18 }
 0x391   : > { %5814 = vmatprep.mubr.msk.bf16.mxu1 %vm6454_vm0, %v8046_v1 }
 0x393   : > { %v7299_v58 = vpop.f32.mrb[104].mxu1 }
 0x394   : > { %v5724_v47 = vpop.f32.mrb[105].mxu1 }
 0x395   : > { %v7301_v57 = vpop.f32.mrb[106].mxu1 }
 0x396   : > { %v5725_v11 = vpop.f32.mrb[107].mxu1 }
 0x398   : > { %5815 = vmatmul.mubr.msk.bf16.vlgmr.msra.gmra.mrb[180].mxu1 %vm2224_vm1, %v6736_v4 }
 0x399   : > { %5835 = vmatpush3.bf16.msra.mxu1 %v6351_v12  ;;  %5818 = vmatprep.mubr.msk.bf16.mxu1 %vm6454_vm0, %v8046_v1 }
 0x39a   : > { %5836 = vmatprep.subr.bf16.mxu1 %v8046_v1 }
 0x39b   : > { %v7314_v50 = vpop.f32.mrb[108].mxu1 }
 0x39c   : > { %v5728_v31 = vpop.f32.mrb[109].mxu1 }
 0x39d   : > { %v7316_v22 = vpop.f32.mrb[110].mxu1  ;;  %5837 = vmatpush3.bf16.msra.mxu1 %v6352_v54 }
 0x39e   : > { %v5729_v43 = vpop.f32.mrb[111].mxu1  ;;  %5858 = vmatprep.subr.bf16.mxu1 %v8046_v1 }
 0x39f   : > { %v1596_v43 = vadd.f32 %v7255_v17, %v6827_v36 }
 0x3a0   : > { %5819 = vmatmul.mubr.msk.bf16.gmra.mrb[184].mxu1 %vm2224_vm1, %v6745_v16  ;;  %v1524_v16 = vadd.f32 %v7255_v17, %v6759_v41  ;;  %v6362_v41 = vld [vmem:[%s8017_s5 + $0x30] sm:$0xff]  }
 0x3a1   : > { %5822 = vmatprep.mubr.msk.bf16.mxu1 %vm6454_vm0, %v8046_v1  ;;  %5983 = vmatpush3.bf16.msra.mxu0 %v6362_v41 }
 0x3a2   : > { %v2020_v11 = vmax.f32 %v1524_v16, 0.0  ;;  %5984 = vmatprep.subr.bf16.mxu0 %v8046_v1 }
 0x3a3   : > { %v7323_v4 = vpop.f32.mrb[112].mxu1 }
 0x3a4   : > { %v5732_v23 = vpop.f32.mrb[113].mxu1  ;;  %v2316_v54 = vpack.c.bf16 %v2020_v11, %v2020_v11 }
 0x3a5   : > { %v7325_v5 = vpop.f32.mrb[114].mxu1 }
 0x3a6   : > { %v5733_v14 = vpop.f32.mrb[115].mxu1 }
 0x3a7   : > { %v2038_v14 = vmax.f32 %v1596_v43, 0.0 }
 0x3a8   : > { %5823 = vmatmul.mubr.msk.bf16.gmra.mrb[188].mxu1 %vm2224_vm1, %v6751_v28  ;;  %v6354_v28 = vld [vmem:[%s8015_s3 + $0x60] sm:$0xff]  }
 0x3a9   : > { %5826 = vmatprep.mubr.msk.bf16.mxu1 %vm6454_vm0, %v8046_v1  ;;  %v2425_v16 = vpack.c.bf16 %v2038_v14, %v2038_v14 }
 0x3ab   : > { %v7331_v18 = vpop.f32.mrb[116].mxu1 }
 0x3ac   : > { %v5736_v45 = vpop.f32.mrb[117].mxu1 }
 0x3ad   : > { %v2854_v47 = vpop.f32.mrb[118].mxu1 }
 0x3ae   : > { %v5737_v12 = vpop.f32.mrb[119].mxu1 }
 0x3b0   : > { %5827 = vmatmul.mubr.msk.bf16.gmra.mrb[192].mxu1 %vm2224_vm1, %v6757_v40  ;;  %v6355_v40 = vld [vmem:[%s8015_s3 + $0x68] sm:$0xff]  }
 0x3b1   : > { %5830 = vmatprep.mubr.msk.bf16.mxu1 %vm6454_vm0, %v8046_v1 }
 0x3b8   : > { %5831 = vmatmul.mubr.msk.bf16.gmra.mrb[196].mxu1 %vm2224_vm1, %v2316_v54  ;;  %v6356_v54 = vld [vmem:[%s8015_s3 + $0x80] sm:$0xff]  }
 0x3b9   : > { %5838 = vmatprep.mubr.msk.bf16.mxu1 %vm6454_vm0, %v8046_v1 }
 0x3c0   : > { %5839 = vmatmul.mubr.msk.bf16.vlgmr.msra.gmra.mrb[200].mxu1 %vm2224_vm1, %v6804_v59 }
 0x3c1   : > { %5859 = vmatpush3.bf16.msra.mxu1 %v6354_v28  ;;  %5842 = vmatprep.mubr.msk.bf16.mxu1 %vm6454_vm0, %v8046_v1 }
 0x3c2   : > { %5860 = vmatprep.subr.bf16.mxu1 %v8046_v1 }
 0x3c5   : > { %5861 = vmatpush3.bf16.msra.mxu1 %v6355_v40  ;;  %v6357_v40 = vld [vmem:[%s8015_s3 + $0x88] sm:$0xff]  }
 0x3c6   : > { %5882 = vmatprep.subr.bf16.mxu1 %v8046_v1 }
 0x3c8   : > { %5843 = vmatmul.mubr.msk.bf16.gmra.mrb[204].mxu1 %vm2224_vm1, %v6813_v8 }
 0x3c9   : > { %5846 = vmatprep.mubr.msk.bf16.mxu1 %vm6454_vm0, %v8046_v1 }
 0x3d0   : > { %5847 = vmatmul.mubr.msk.bf16.gmra.mrb[208].mxu1 %vm2224_vm1, %v6819_v21 }
 0x3d1   : > { %5850 = vmatprep.mubr.msk.bf16.mxu1 %vm6454_vm0, %v8046_v1 }
 0x3d3   : > { %v7366_v59 = vpop.f32.mrb[120].mxu1 }
 0x3d4   : > { %v5744_v31 = vpop.f32.mrb[121].mxu1 }
 0x3d5   : > { %v7368_v8 = vpop.f32.mrb[122].mxu1 }
 0x3d6   : > { %v5745_v23 = vpop.f32.mrb[123].mxu1 }
 0x3d8   : > { %5851 = vmatmul.mubr.msk.bf16.gmra.mrb[212].mxu1 %vm2224_vm1, %v6825_v35 }
 0x3d9   : > { %5854 = vmatprep.mubr.msk.bf16.mxu1 %vm6454_vm0, %v8046_v1 }
 0x3db   : > { %v7376_v21 = vpop.f32.mrb[124].mxu1 }
 0x3dc   : > { %v5748_v45 = vpop.f32.mrb[125].mxu1 }
 0x3dd   : > { %v7378_v47 = vpop.f32.mrb[126].mxu1 }
 0x3de   : > { %v5749_v12 = vpop.f32.mrb[127].mxu1 }
 0x3df   : > { %v1668_v12 = vadd.f32 %v7255_v17, %v6895_v46 }
 0x3e0   : > { %5855 = vmatmul.mubr.msk.bf16.gmra.mrb[216].mxu1 %vm2224_vm1, %v2425_v16 }
 0x3e1   : > { %5862 = vmatprep.mubr.msk.bf16.mxu1 %vm6454_vm0, %v8046_v1 }
 0x3e3   : > { %v7383_v36 = vpop.f32.mrb[128].mxu1 }
 0x3e4   : > { %v5752_v11 = vpop.f32.mrb[129].mxu1 }
 0x3e5   : > { %v7385_v35 = vpop.f32.mrb[130].mxu1 }
 0x3e6   : > { %v5753_v28 = vpop.f32.mrb[131].mxu1 }
 0x3e8   : > { %5863 = vmatmul.mubr.msk.bf16.vlgmr.msra.gmra.mrb[220].mxu1 %vm2224_vm1, %v6872_v62 }
 0x3e9   : > { %5883 = vmatpush3.bf16.msra.mxu1 %v6356_v54  ;;  %5866 = vmatprep.mubr.msk.bf16.mxu1 %vm6454_vm0, %v8046_v1 }
 0x3ea   : > { %5884 = vmatprep.subr.bf16.mxu1 %v8046_v1 }
 0x3eb   : > { %v7398_v41 = vpop.f32.mrb[132].mxu1 }
 0x3ec   : > { %v5756_v31 = vpop.f32.mrb[133].mxu1 }
 0x3ed   : > { %v7400_v43 = vpop.f32.mrb[134].mxu1  ;;  %5885 = vmatpush3.bf16.msra.mxu1 %v6357_v40 }
 0x3ee   : > { %v5757_v23 = vpop.f32.mrb[135].mxu1  ;;  %5906 = vmatprep.subr.bf16.mxu1 %v8046_v1 }
 0x3f0   : > { %5867 = vmatmul.mubr.msk.bf16.gmra.mrb[224].mxu1 %vm2224_vm1, %v6881_v13  ;;  %v2056_v13 = vmax.f32 %v1668_v12, 0.0 }
 0x3f1   : > { %5870 = vmatprep.mubr.msk.bf16.mxu1 %vm6454_vm0, %v8046_v1 }
 0x3f2   : > { %v2534_v11 = vpack.c.bf16 %v2056_v13, %v2056_v13 }
 0x3f3   : > { %v7407_v62 = vpop.f32.mrb[136].mxu1 }
 0x3f4   : > { %v5760_v14 = vpop.f32.mrb[137].mxu1 }
 0x3f5   : > { %v2963_v45 = vpop.f32.mrb[138].mxu1 }
 0x3f6   : > { %v5761_v16 = vpop.f32.mrb[139].mxu1 }
 0x3f8   : > { %5871 = vmatmul.mubr.msk.bf16.gmra.mrb[228].mxu1 %vm2224_vm1, %v6887_v27  ;;  %v6358_v27 = vld [vmem:[%s8015_s3 + $0xa0] sm:$0xff]  }
 0x3f9   : > { %5874 = vmatprep.mubr.msk.bf16.mxu1 %vm6454_vm0, %v8046_v1 }
 0x400   : > { %5875 = vmatmul.mubr.msk.bf16.gmra.mrb[232].mxu1 %vm2224_vm1, %v6893_v44  ;;  %v6359_v44 = vld [vmem:[%s8015_s3 + $0xa8] sm:$0xff]  }
 0x401   : > { %5878 = vmatprep.mubr.msk.bf16.mxu1 %vm6454_vm0, %v8046_v1 }
 0x408   : > { %5879 = vmatmul.mubr.msk.bf16.gmra.mrb[236].mxu1 %vm2224_vm1, %v2534_v11 }
 0x409   : > { %5886 = vmatprep.mubr.msk.bf16.mxu1 %vm6454_vm0, %v8046_v1 }
 0x410   : > { %5887 = vmatmul.mubr.msk.bf16.vlgmr.msra.gmra.mrb[240].mxu1 %vm2224_vm1, %v6963_v55 }
 0x411   : > { %5907 = vmatpush3.bf16.msra.mxu1 %v6358_v27  ;;  %5890 = vmatprep.mubr.msk.bf16.mxu1 %vm6454_vm0, %v8046_v1 }
 0x412   : > { %5908 = vmatprep.subr.bf16.mxu1 %v8046_v1 }
 0x415   : > { %5909 = vmatpush3.bf16.msra.mxu1 %v6359_v44  ;;  %v6360_v44 = vld [vmem:[%s8015_s3 + $0xc0] sm:$0xff]  }
 0x416   : > { %5930 = vmatprep.subr.bf16.mxu1 %v8046_v1 }
 0x418   : > { %5891 = vmatmul.mubr.msk.bf16.gmra.mrb[244].mxu1 %vm2224_vm1, %v6972_v15  ;;  %v1740_v15 = vadd.f32 %v7255_v17, %v6986_v0 }
 0x419   : > { %5894 = vmatprep.mubr.msk.bf16.mxu1 %vm6454_vm0, %v8046_v1 }
 0x41a   : > { %v2074_v45 = vmax.f32 %v1740_v15, 0.0 }
 0x41b   : > { %v7438_v46 = vpop.f32.mrb[140].mxu1 }
 0x41c   : > { %v5768_v55 = vpop.f32.mrb[141].mxu1  ;;  %v2643_v13 = vpack.c.bf16 %v2074_v45, %v2074_v45 }
 0x41d   : > { %v7440_v54 = vpop.f32.mrb[142].mxu1 }
 0x41e   : > { %v5769_v28 = vpop.f32.mrb[143].mxu1 }
 0x41f   : > { %v6361_v28 = vld [vmem:[%s8015_s3 + $0xc8] sm:$0xff]  }
 0x420   : > { %5895 = vmatmul.mubr.msk.bf16.gmra.mrb[248].mxu1 %vm2224_vm1, %v6978_v37 }
 0x421   : > { %5898 = vmatprep.mubr.msk.bf16.mxu1 %vm6454_vm0, %v8046_v1 }
 0x423   : > { %v7446_v40 = vpop.f32.mrb[144].mxu1 }
 0x424   : > { %v5772_v31 = vpop.f32.mrb[145].mxu1 }
 0x425   : > { %v7448_v23 = vpop.f32.mrb[146].mxu1 }
 0x426   : > { %v5773_v14 = vpop.f32.mrb[147].mxu1 }
 0x428   : > { %5899 = vmatmul.mubr.msk.bf16.gmra.mrb[252].mxu1 %vm2224_vm1, %v6984_v61 }
 0x429   : > { %5902 = vmatprep.mubr.msk.bf16.mxu1 %vm6454_vm0, %v8046_v1 }
 0x42b   : > { %v7456_v37 = vpop.f32.mrb[148].mxu1 }
 0x42c   : > { %v5776_v16 = vpop.f32.mrb[149].mxu1 }
 0x42d   : > { %v7458_v12 = vpop.f32.mrb[150].mxu1 }
 0x42e   : > { %8063 = vst [vmem:[#allocation37_spill] sm:$0xff] %v7458_v12  ;;  %v5777_v11 = vpop.f32.mrb[151].mxu1 }
 0x430   : > { %5903 = vmatmul.mubr.msk.bf16.gmra.mrb[0].mxu1 %vm2224_vm1, %v2643_v13 }
 0x431   : > { %5910 = vmatprep.mubr.msk.bf16.mxu1 %vm6454_vm0, %v8046_v1 }
 0x433   : > { %v7463_v0 = vpop.f32.mrb[152].mxu1 }
 0x434   : > { %8064 = vst [vmem:[#allocation38_spill] sm:$0xff] %v7463_v0  ;;  %v5780_v27 = vpop.f32.mrb[153].mxu1  ;;  %v8088_v0 = vld [vmem:[#allocation20_spill] sm:$0xff] }
 0x435   : > { %v7465_v61 = vpop.f32.mrb[154].mxu1 }
 0x436   : > { %8065 = vst [vmem:[#allocation39_spill] sm:$0xff] %v7465_v61  ;;  %v5781_v55 = vpop.f32.mrb[155].mxu1 }
 0x438   : > { %5911 = vmatmul.mubr.msk.bf16.vlgmr.msra.gmra.mrb[4].mxu1 %vm2224_vm1, %v7048_v26 }
 0x439   : > { %5931 = vmatpush3.bf16.msra.mxu1 %v6360_v44  ;;  %5914 = vmatprep.mubr.msk.bf16.mxu1 %vm6454_vm0, %v8046_v1 }
 0x43a   : > { %5932 = vmatprep.subr.bf16.mxu1 %v8046_v1 }
 0x43b   : > { %v7478_v31 = vpop.f32.mrb[156].mxu1 }
 0x43c   : > { %8066 = vst [vmem:[#allocation40_spill] sm:$0xff] %v7478_v31  ;;  %v5784_v15 = vpop.f32.mrb[157].mxu1 }
 0x43d   : > { %v3072_v14 = vpop.f32.mrb[158].mxu1  ;;  %5933 = vmatpush3.bf16.msra.mxu1 %v6361_v28 }
 0x43e   : > { %v5785_v45 = vpop.f32.mrb[159].mxu1  ;;  %5954 = vmatprep.subr.bf16.mxu1 %v8046_v1  ;;  %v1812_v14 = vadd.f32 %v7255_v17, %v7065_v6 }
 0x440   : > { %5915 = vmatmul.mubr.msk.bf16.gmra.mrb[8].mxu1 %vm2224_vm1, %v7055_v51 }
 0x441   : > { %5918 = vmatprep.mubr.msk.bf16.mxu1 %vm6454_vm0, %v8046_v1 }
 0x443   : > { %v3136_v26 = vpop.f32.mrb[160].mxu1 }
 0x444   : > { %v3137_v16 = vadd.f32 %v3136_v26, %v6902_v63  ;;  %v5792_v13 = vpop.f32.mrb[161].mxu1 }
 0x445   : > { %v3139_v11 = vpop.f32.mrb[162].mxu1 }
 0x446   : > { %v3140_v27 = vadd.f32 %v3139_v11, %v6905_v7  ;;  %v5793_v44 = vpop.f32.mrb[163].mxu1  ;;  %v2092_v7 = vmax.f32 %v1812_v14, 0.0 }
 0x448   : > { %5919 = vmatmul.mubr.msk.bf16.gmra.mrb[12].mxu1 %vm2224_vm1, %v7059_v29  ;;  %v2752_v11 = vpack.c.bf16 %v2092_v7, %v2092_v7 }
 0x449   : > { %5922 = vmatprep.mubr.msk.bf16.mxu1 %vm6454_vm0, %v8046_v1 }
 0x44b   : > { %v3144_v55 = vpop.f32.mrb[164].mxu1 }
 0x44c   : > { %v3145_v51 = vadd.f32 %v3144_v55, %v6920_v24  ;;  %v5796_v28 = vpop.f32.mrb[165].mxu1 }
 0x44d   : > { %v3147_v15 = vpop.f32.mrb[166].mxu1 }
 0x44e   : > { %v3148_v63 = vadd.f32 %v3147_v15, %v6923_v32  ;;  %v5797_v45 = vpop.f32.mrb[167].mxu1 }
 0x450   : > { %5923 = vmatmul.mubr.msk.bf16.gmra.mrb[16].mxu1 %vm2224_vm1, %v7063_v2 }
 0x451   : > { %5926 = vmatprep.mubr.msk.bf16.mxu1 %vm6454_vm0, %v8046_v1 }
 0x453   : > { %v3152_v29 = vpop.f32.mrb[168].mxu1 }
 0x454   : > { %v3153_v26 = vadd.f32 %v3152_v29, %v6932_v49  ;;  %v5800_v13 = vpop.f32.mrb[169].mxu1  ;;  %v6363_v49 = vld [vmem:[%s8015_s3 + $0xe0] sm:$0xff]  }
 0x455   : > { %v3155_v24 = vpop.f32.mrb[170].mxu1 }
 0x456   : > { %v3156_v44 = vadd.f32 %v3155_v24, %v6935_v56  ;;  %v5801_v55 = vpop.f32.mrb[171].mxu1  ;;  %v6365_v56 = vld [vmem:[%s8017_s5 + $0x38] sm:$0xff]  }
 0x457   : > { %5985 = vmatpush3.bf16.msra.mxu0 %v6365_v56  ;;  %v8067_v56 = vld [vmem:[#allocation18_spill] sm:$0xff] }
 0x458   : > { %5927 = vmatmul.mubr.msk.bf16.gmra.mrb[20].mxu1 %vm2224_vm1, %v2752_v11  ;;  %6002 = vmatprep.subr.bf16.mxu0 %v8046_v1 }
 0x459   : > { %5934 = vmatprep.mubr.msk.bf16.mxu1 %vm6454_vm0, %v8046_v1 }
 0x45b   : > { %v3160_v32 = vpop.f32.mrb[172].mxu1 }
 0x45c   : > { %v3161_v2 = vadd.f32 %v3160_v32, %v6948_v10  ;;  %v5804_v6 = vpop.f32.mrb[173].mxu1  ;;  %v6364_v10 = vld [vmem:[%s8015_s3 + $0xe8] sm:$0xff]  }
 0x45d   : > { %v3163_v28 = vpop.f32.mrb[174].mxu1 }
 0x45e   : > { %v3164_v15 = vadd.f32 %v3163_v28, %v6951_v19  ;;  %v5805_v14 = vpop.f32.mrb[175].mxu1 }
 0x460   : > { %5935 = vmatmul.mubr.msk.bf16.vlgmr.msra.gmra.mrb[24].mxu1 %vm2224_vm1, %v7120_v30 }
 0x461   : > { %5955 = vmatpush3.bf16.msra.mxu1 %v6363_v49  ;;  %5938 = vmatprep.mubr.msk.bf16.mxu1 %vm6454_vm0, %v8046_v1 }
 0x462   : > { %5956 = vmatprep.subr.bf16.mxu1 %v8046_v1 }
 0x463   : > { %v3168_v19 = vpop.f32.mrb[176].mxu1 }
 0x464   : > { %v3169_v30 = vadd.f32 %v3168_v19, %v6959_v38  ;;  %v5808_v45 = vpop.f32.mrb[177].mxu1 }
 0x465   : > { %v3171_v7 = vpop.f32.mrb[178].mxu1  ;;  %5957 = vmatpush3.bf16.msra.mxu1 %v6364_v10 }
 0x466   : > { %v5809_v29 = vpop.f32.mrb[179].mxu1  ;;  %5990 = vmatprep.subr.bf16.mxu1 %v8046_v1  ;;  %v8069_v7 = vld [vmem:[#allocation17_spill] sm:$0xff] }
 0x467   : > { %v8070_v29 = vld [vmem:[#allocation3_spill] sm:$0xff] }
 0x468   : > { %5939 = vmatmul.mubr.msk.bf16.gmra.mrb[28].mxu1 %vm2224_vm1, %v7127_v33 }
 0x469   : > { %5942 = vmatprep.mubr.msk.bf16.mxu1 %vm6454_vm0, %v8046_v1 }
 0x46b   : > { %v3235_v13 = vpop.f32.mrb[180].mxu1 }
 0x46c   : > { %v3236_v24 = vadd.f32 %v3235_v13, %v6993_v25  ;;  %v5816_v11 = vpop.f32.mrb[181].mxu1 }
 0x46d   : > { %v3238_v55 = vpop.f32.mrb[182].mxu1 }
 0x46e   : > { %v7528_v32 = vadd.f32 %v3236_v24, %v3137_v16  ;;  %v3239_v38 = vadd.f32 %v3238_v55, %v6996_v39  ;;  %v5817_v6 = vpop.f32.mrb[183].mxu1  ;;  %v1884_v16 = vadd.f32 %v7255_v17, %v8067_v56  ;;  %v8068_v39 = vld [vmem:[#allocation2_spill] sm:$0xff] }
 0x470   : > { %v7531_v28 = vadd.f32 %v3239_v38, %v3140_v27  ;;  %5943 = vmatmul.mubr.msk.bf16.gmra.mrb[32].mxu1 %vm2224_vm1, %v7131_v52  ;;  %v2110_v52 = vmax.f32 %v1884_v16, 0.0  ;;  %v8071_v38 = vld [vmem:[#allocation4_spill] sm:$0xff] }
 0x471   : > { %5946 = vmatprep.mubr.msk.bf16.mxu1 %vm6454_vm0, %v8046_v1 }
 0x472   : > { %v2861_v55 = vpack.c.bf16 %v2110_v52, %v2110_v52  ;;  %v8074_v52 = vld [vmem:[#allocation28_spill] sm:$0xff] }
 0x473   : > { %v3243_v33 = vpop.f32.mrb[184].mxu1 }
 0x474   : > { %v3244_v49 = vadd.f32 %v3243_v33, %v7011_v3  ;;  %v5820_v14 = vpop.f32.mrb[185].mxu1 }
 0x475   : > { %v3246_v25 = vpop.f32.mrb[186].mxu1  ;;  %v8072_v14 = vld [vmem:[#allocation5_spill] sm:$0xff] }
 0x476   : > { %v7540_v10 = vadd.f32 %v3244_v49, %v3145_v51  ;;  %v3247_v19 = vadd.f32 %v3246_v25, %v8068_v39  ;;  %v5821_v27 = vpop.f32.mrb[187].mxu1 }
 0x478   : > { %v7543_v45 = vadd.f32 %v3247_v19, %v3148_v63  ;;  %5947 = vmatmul.mubr.msk.bf16.gmra.mrb[36].mxu1 %vm2224_vm1, %v8069_v7  ;;  %v8073_v19 = vld [vmem:[#allocation6_spill] sm:$0xff] }
 0x479   : > { %5950 = vmatprep.mubr.msk.bf16.mxu1 %vm6454_vm0, %v8046_v1 }
 0x47b   : > { %v3251_v3 = vpop.f32.mrb[188].mxu1 }
 0x47c   : > { %v3252_v13 = vadd.f32 %v3251_v3, %v8070_v29  ;;  %v5824_v24 = vpop.f32.mrb[189].mxu1  ;;  %v8075_v3 = vld [vmem:[#allocation7_spill] sm:$0xff] }
 0x47d   : > { %v3254_v11 = vpop.f32.mrb[190].mxu1 }
 0x47e   : > { %v7550_v51 = vadd.f32 %v3252_v13, %v3153_v26  ;;  %v3255_v6 = vadd.f32 %v3254_v11, %v8071_v38  ;;  %v5825_v33 = vpop.f32.mrb[191].mxu1  ;;  %v8077_v38 = vld [vmem:[#allocation8_spill] sm:$0xff] }
 0x480   : > { %v7553_v63 = vadd.f32 %v3255_v6, %v3156_v44  ;;  %5951 = vmatmul.mubr.msk.bf16.gmra.mrb[40].mxu1 %vm2224_vm1, %v2861_v55  ;;  %v8076_v55 = vld [vmem:[#allocation29_spill] sm:$0xff] }
 0x481   : > { %5958 = vmatprep.mubr.msk.bf16.mxu1 %vm6454_vm0, %v8046_v1 }
 0x483   : > { %v3259_v49 = vpop.f32.mrb[192].mxu1 }
 0x484   : > { %v3260_v25 = vadd.f32 %v3259_v49, %v8072_v14  ;;  %v5828_v56 = vpop.f32.mrb[193].mxu1  ;;  %v8078_v14 = vld [vmem:[#allocation9_spill] sm:$0xff] }
 0x485   : > { %v3262_v16 = vpop.f32.mrb[194].mxu1 }
 0x486   : > { %v7559_v39 = vadd.f32 %v3260_v25, %v3161_v2  ;;  %v3263_v26 = vadd.f32 %v3262_v16, %v8073_v19  ;;  %v5829_v27 = vpop.f32.mrb[195].mxu1  ;;  %v8079_v16 = vld [vmem:[#allocation10_spill] sm:$0xff] }
 0x488   : > { %v7562_v7 = vadd.f32 %v3263_v26, %v3164_v15  ;;  %5959 = vmatmul.mubr.msk.bf16.vlgmr.msra.gmra.mrb[44].mxu1 %vm2224_vm1, %v8074_v52  ;;  %v1956_v52 = vadd.f32 %v7255_v17, %v7208_v48  ;;  %v8084_v17 = vld [vmem:[#allocation14_spill] sm:$0xff] }
 0x489   : > { %5962 = vmatprep.mubr.msk.bf16.mxu1 %vm6454_vm0, %v8046_v1 }
 0x48b   : > { %v3267_v44 = vpop.f32.mrb[196].mxu1 }
 0x48c   : > { %v3268_v29 = vadd.f32 %v3267_v44, %v8075_v3  ;;  %v5832_v13 = vpop.f32.mrb[197].mxu1  ;;  %v8080_v44 = vld [vmem:[#allocation11_spill] sm:$0xff] }
 0x48d   : > { %v3270_v24 = vpop.f32.mrb[198].mxu1  ;;  %v8081_v13 = vld [vmem:[#allocation30_spill] sm:$0xff] }
 0x48e   : > { %v7569_v11 = vadd.f32 %v3268_v29, %v3169_v30  ;;  %v5833_v2 = vpop.f32.mrb[199].mxu1 }
 0x48f   : > { %v8082_v2 = vld [vmem:[#allocation12_spill] sm:$0xff] }
 0x490   : > { %5963 = vmatmul.mubr.msk.bf16.gmra.mrb[48].mxu1 %vm2224_vm1, %v8076_v55 }
 0x491   : > { %5966 = vmatprep.mubr.msk.bf16.mxu1 %vm6454_vm0, %v8046_v1 }
 0x493   : > { %v3334_v15 = vpop.f32.mrb[200].mxu1 }
 0x494   : > { %v3335_v6 = vadd.f32 %v3334_v15, %v8077_v38  ;;  %v5840_v33 = vpop.f32.mrb[201].mxu1 }
 0x495   : > { %v3337_v49 = vpop.f32.mrb[202].mxu1 }
 0x496   : > { %v3338_v25 = vadd.f32 %v3337_v49, %v8078_v14  ;;  %v5841_v56 = vpop.f32.mrb[203].mxu1  ;;  %v8083_v49 = vld [vmem:[#allocation13_spill] sm:$0xff] }
 0x498   : > { %5967 = vmatmul.mubr.msk.bf16.gmra.mrb[52].mxu1 %vm2224_vm1, %v7199_v20  ;;  %v2128_v20 = vmax.f32 %v1956_v52, 0.0 }
 0x499   : > { %5970 = vmatprep.mubr.msk.bf16.mxu1 %vm6454_vm0, %v8046_v1 }
 0x49a   : > { %v2970_v33 = vpack.c.bf16 %v2128_v20, %v2128_v20 }
 0x49b   : > { %v3342_v30 = vpop.f32.mrb[204].mxu1 }
 0x49c   : > { %v3343_v19 = vadd.f32 %v3342_v30, %v8079_v16  ;;  %v5844_v26 = vpop.f32.mrb[205].mxu1 }
 0x49d   : > { %v3345_v27 = vpop.f32.mrb[206].mxu1 }
 0x49e   : > { %v3346_v3 = vadd.f32 %v3345_v27, %v8080_v44  ;;  %v5845_v29 = vpop.f32.mrb[207].mxu1  ;;  %v8085_v27 = vld [vmem:[#allocation15_spill] sm:$0xff] }
 0x4a0   : > { %5971 = vmatmul.mubr.msk.bf16.gmra.mrb[56].mxu1 %vm2224_vm1, %v8081_v13  ;;  %v8086_v13 = vld [vmem:[#allocation16_spill] sm:$0xff] }
 0x4a1   : > { %5974 = vmatprep.mubr.msk.bf16.mxu1 %vm6454_vm0, %v8046_v1 }
 0x4a3   : > { %v3350_v24 = vpop.f32.mrb[208].mxu1 }
 0x4a4   : > { %v3351_v55 = vadd.f32 %v3350_v24, %v8082_v2  ;;  %v5848_v15 = vpop.f32.mrb[209].mxu1 }
 0x4a5   : > { %v3353_v38 = vpop.f32.mrb[210].mxu1 }
 0x4a6   : > { %v3354_v14 = vadd.f32 %v3353_v38, %v8083_v49  ;;  %v5849_v56 = vpop.f32.mrb[211].mxu1  ;;  %v8087_v49 = vld [vmem:[#allocation19_spill] sm:$0xff] }
 0x4a8   : > { %5975 = vmatmul.mubr.msk.bf16.gmra.mrb[60].mxu1 %vm2224_vm1, %v2970_v33 }
 0x4a9   : > { %5998 = vmatprep.mubr.msk.bf16.mxu1 %vm6454_vm0, %v8046_v1 }
 0x4ab   : > { %v3358_v48 = vpop.f32.mrb[212].mxu1 }
 0x4ac   : > { %v3359_v30 = vadd.f32 %v3358_v48, %v8084_v17  ;;  %v5852_v16 = vpop.f32.mrb[213].mxu1 }
 0x4ad   : > { %v3361_v26 = vpop.f32.mrb[214].mxu1 }
 0x4ae   : > { %v3362_v52 = vadd.f32 %v3361_v26, %v8085_v27  ;;  %v5853_v44 = vpop.f32.mrb[215].mxu1 }
 0x4af   : > { %v8089_v44 = vld [vmem:[#allocation21_spill] sm:$0xff] }
 0x4b3   : > { %v3366_v29 = vpop.f32.mrb[216].mxu1 }
 0x4b4   : > { %v3367_v24 = vadd.f32 %v3366_v29, %v8086_v13  ;;  %v5856_v20 = vpop.f32.mrb[217].mxu1 }
 0x4b5   : > { %v3369_v2 = vpop.f32.mrb[218].mxu1 }
 0x4b6   : > { %v5857_v15 = vpop.f32.mrb[219].mxu1 }
 0x4b7   : > { %v8090_v15 = vld [vmem:[#allocation22_spill] sm:$0xff] }
 0x4bb   : > { %v3433_v38 = vpop.f32.mrb[220].mxu1 }
 0x4bc   : > { %v3434_v33 = vadd.f32 %v3433_v38, %v8087_v49  ;;  %v5864_v56 = vpop.f32.mrb[221].mxu1 }
 0x4bd   : > { %v3436_v31 = vpop.f32.mrb[222].mxu1  ;;  %v8092_v56 = vld [vmem:[#allocation24_spill] sm:$0xff] }
 0x4be   : > { %v3876_v61 = vadd.f32 %v3434_v33, %v3335_v6  ;;  %v3437_v12 = vadd.f32 %v3436_v31, %v8088_v0  ;;  %v5865_v48 = vpop.f32.mrb[223].mxu1  ;;  %v8091_v31 = vld [vmem:[#allocation23_spill] sm:$0xff] }
 0x4c0   : > { %v7600_v17 = vadd.f32 %v3876_v61, %v7528_v32  ;;  %v3877_v16 = vadd.f32 %v3437_v12, %v3338_v25 }
 0x4c2   : > { %v7603_v26 = vadd.f32 %v3877_v16, %v7531_v28 }
 0x4c3   : > { %v3441_v27 = vpop.f32.mrb[224].mxu1 }
 0x4c4   : > { %v3442_v29 = vadd.f32 %v3441_v27, %v8089_v44  ;;  %v5868_v13 = vpop.f32.mrb[225].mxu1  ;;  %v8093_v44 = vld [vmem:[#allocation25_spill] sm:$0xff] }
 0x4c5   : > { %v3444_v20 = vpop.f32.mrb[226].mxu1  ;;  %v6366_v13 = vld [vmem:[%s8017_s5 + $0x60] sm:$0xff]  }
 0x4c6   : > { %v3878_v2 = vadd.f32 %v3442_v29, %v3343_v19  ;;  %v3445_v38 = vadd.f32 %v3444_v20, %v8090_v15  ;;  %v5869_v49 = vpop.f32.mrb[227].mxu1  ;;  %5991 = vmatpush3.bf16.msra.mxu1 %v6366_v13 }
 0x4c7   : > { %5992 = vmatprep.subr.bf16.mxu1 %v8046_v1 }
 0x4c8   : > { %v7608_v6 = vadd.f32 %v3878_v2, %v7540_v10  ;;  %v3879_v0 = vadd.f32 %v3445_v38, %v3346_v3  ;;  %v8094_v2 = vld [vmem:[#allocation26_spill] sm:$0xff] }
 0x4ca   : > { %v7611_v61 = vadd.f32 %v3879_v0, %v7543_v45  ;;  %v8095_v0 = vld [vmem:[#allocation27_spill] sm:$0xff] }
 0x4cb   : > { %v3449_v12 = vpop.f32.mrb[228].mxu1 }
 0x4cc   : > { %v3450_v32 = vadd.f32 %v3449_v12, %v8091_v31  ;;  %v5872_v28 = vpop.f32.mrb[229].mxu1 }
 0x4cd   : > { %v3452_v25 = vpop.f32.mrb[230].mxu1 }
 0x4ce   : > { %v3880_v33 = vadd.f32 %v3450_v32, %v3351_v55  ;;  %v3453_v48 = vadd.f32 %v3452_v25, %v8092_v56  ;;  %v5873_v16 = vpop.f32.mrb[231].mxu1  ;;  %v8096_v56 = vld [vmem:[#allocation31_spill] sm:$0xff] }
 0x4d0   : > { %v7616_v19 = vadd.f32 %v3880_v33, %v7550_v51  ;;  %v3881_v27 = vadd.f32 %v3453_v48, %v3354_v14 }
 0x4d2   : > { %v7619_v10 = vadd.f32 %v3881_v27, %v7553_v63  ;;  %v8097_v27 = vld [vmem:[#allocation32_spill] sm:$0xff] }
 0x4d3   : > { %v3457_v3 = vpop.f32.mrb[232].mxu1 }
 0x4d4   : > { %v3458_v45 = vadd.f32 %v3457_v3, %v8093_v44  ;;  %v5876_v29 = vpop.f32.mrb[233].mxu1  ;;  %v8098_v44 = vld [vmem:[#allocation33_spill] sm:$0xff] }
 0x4d5   : > { %v3460_v20 = vpop.f32.mrb[234].mxu1 }
 0x4d6   : > { %v3882_v55 = vadd.f32 %v3458_v45, %v3359_v30  ;;  %v3461_v15 = vadd.f32 %v3460_v20, %v8094_v2  ;;  %v5877_v38 = vpop.f32.mrb[235].mxu1  ;;  %v8099_v20 = vld [vmem:[#allocation34_spill] sm:$0xff] }
 0x4d8   : > { %v7628_v51 = vadd.f32 %v3882_v55, %v7559_v39  ;;  %v3883_v63 = vadd.f32 %v3461_v15, %v3362_v52  ;;  %v6370_v15 = vld [vmem:[%s8017_s5 + $0x78] sm:$0xff]  }
 0x4da   : > { %v7631_v14 = vadd.f32 %v3883_v63, %v7562_v7  ;;  %v6367_v7 = vld [vmem:[%s8017_s5 + $0x68] sm:$0xff]  }
 0x4db   : > { %v3465_v49 = vpop.f32.mrb[236].mxu1  ;;  %5993 = vmatpush3.bf16.msra.mxu1 %v6367_v7  ;;  %v8100_v63 = vld [vmem:[#allocation35_spill] sm:$0xff] }
 0x4dc   : > { %v3466_v12 = vadd.f32 %v3465_v49, %v8095_v0  ;;  %v5880_v31 = vpop.f32.mrb[237].mxu1  ;;  %5994 = vmatprep.subr.bf16.mxu1 %v8046_v1 }
 0x4dd   : > { %v3468_v32 = vpop.f32.mrb[238].mxu1  ;;  %v8101_v31 = vld [vmem:[#allocation36_spill] sm:$0xff] }
 0x4de   : > { %v3884_v28 = vadd.f32 %v3466_v12, %v3367_v24  ;;  %v5881_v30 = vpop.f32.mrb[239].mxu1 }
 0x4e0   : > { %v7635_v25 = vadd.f32 %v3884_v28, %v7569_v11  ;;  %v6368_v11 = vld [vmem:[%s8017_s5 + $0x70] sm:$0xff]  }
 0x4e1   : > { %5995 = vmatpush3.bf16.msra.mxu1 %v6368_v11 }
 0x4e2   : > { %5996 = vmatprep.subr.bf16.mxu1 %v8046_v1 }
 0x4e3   : > { %v3532_v33 = vpop.f32.mrb[240].mxu1 }
 0x4e4   : > { %v3533_v48 = vadd.f32 %v3532_v33, %v8096_v56  ;;  %v5888_v16 = vpop.f32.mrb[241].mxu1 }
 0x4e5   : > { %v3535_v39 = vpop.f32.mrb[242].mxu1  ;;  %5997 = vmatpush3.bf16.msra.mxu1 %v6370_v15 }
 0x4e6   : > { %v3536_v52 = vadd.f32 %v3535_v39, %v8097_v27  ;;  %v5889_v3 = vpop.f32.mrb[243].mxu1  ;;  %6014 = vmatprep.subr.bf16.mxu1 %v8046_v1 }
 0x4eb   : > { %v3540_v24 = vpop.f32.mrb[244].mxu1 }
 0x4ec   : > { %v3541_v45 = vadd.f32 %v3540_v24, %v8098_v44  ;;  %v5892_v29 = vpop.f32.mrb[245].mxu1 }
 0x4ed   : > { %v3543_v13 = vpop.f32.mrb[246].mxu1 }
 0x4ee   : > { %v3544_v55 = vadd.f32 %v3543_v13, %v8099_v20  ;;  %v5893_v2 = vpop.f32.mrb[247].mxu1 }
 0x4f3   : > { %v3548_v38 = vpop.f32.mrb[248].mxu1 }
 0x4f4   : > { %v3549_v49 = vadd.f32 %v3548_v38, %v8100_v63  ;;  %v5896_v0 = vpop.f32.mrb[249].mxu1 }
 0x4f5   : > { %v3551_v12 = vpop.f32.mrb[250].mxu1 }
 0x4f6   : > { %v3552_v32 = vadd.f32 %v3551_v12, %v8101_v31  ;;  %v5897_v28 = vpop.f32.mrb[251].mxu1 }
 0x4fb   : > { %v3556_v30 = vpop.f32.mrb[252].mxu1 }
 0x4fc   : > { %v3557_v33 = vadd.f32 %v3556_v30, %v7248_v42  ;;  %v5900_v56 = vpop.f32.mrb[253].mxu1 }
 0x4fd   : > { %v3559_v16 = vpop.f32.mrb[254].mxu1 }
 0x4fe   : > { %v3560_v39 = vadd.f32 %v3559_v16, %v7250_v9  ;;  %v5901_v27 = vpop.f32.mrb[255].mxu1 }
 0x503   : > { %v3564_v3 = vpop.f32.mrb[0].mxu1 }
 0x504   : > { %v3565_v7 = vadd.f32 %v3564_v3, %v7261_v60  ;;  %v5904_v11 = vpop.f32.mrb[1].mxu1 }
 0x505   : > { %v3567_v24 = vpop.f32.mrb[2].mxu1 }
 0x506   : > { %v5905_v44 = vpop.f32.mrb[3].mxu1 }
 0x50b   : > { %v3631_v29 = vpop.f32.mrb[4].mxu1 }
 0x50c   : > { %v3632_v13 = vadd.f32 %v3631_v29, %v7292_v34  ;;  %v5912_v20 = vpop.f32.mrb[5].mxu1 }
 0x50d   : > { %v3634_v2 = vpop.f32.mrb[6].mxu1 }
 0x50e   : > { %v7659_v15 = vadd.f32 %v3632_v13, %v3533_v48  ;;  %v3635_v42 = vadd.f32 %v3634_v2, %v7294_v53  ;;  %v5913_v38 = vpop.f32.mrb[7].mxu1 }
 0x510   : > { %v7662_v63 = vadd.f32 %v3635_v42, %v3536_v52 }
 0x513   : > { %v3639_v9 = vpop.f32.mrb[8].mxu1 }
 0x514   : > { %v3640_v0 = vadd.f32 %v3639_v9, %v7299_v58  ;;  %v5916_v12 = vpop.f32.mrb[9].mxu1 }
 0x515   : > { %v3642_v60 = vpop.f32.mrb[10].mxu1 }
 0x516   : > { %v7665_v31 = vadd.f32 %v3640_v0, %v3541_v45  ;;  %v3643_v28 = vadd.f32 %v3642_v60, %v7301_v57  ;;  %v5917_v30 = vpop.f32.mrb[11].mxu1 }
 0x518   : > { %v7668_v34 = vadd.f32 %v3643_v28, %v3544_v55 }
 0x51b   : > { %v3647_v56 = vpop.f32.mrb[12].mxu1 }
 0x51c   : > { %v3648_v48 = vadd.f32 %v3647_v56, %v7314_v50  ;;  %v5920_v16 = vpop.f32.mrb[13].mxu1 }
 0x51d   : > { %v3650_v53 = vpop.f32.mrb[14].mxu1 }
 0x51e   : > { %v7671_v27 = vadd.f32 %v3648_v48, %v3549_v49  ;;  %v3651_v52 = vadd.f32 %v3650_v53, %v7316_v22  ;;  %v5921_v3 = vpop.f32.mrb[15].mxu1 }
 0x520   : > { %v7674_v58 = vadd.f32 %v3651_v52, %v3552_v32 }
 0x523   : > { %v3655_v11 = vpop.f32.mrb[16].mxu1 }
 0x524   : > { %v3656_v45 = vadd.f32 %v3655_v11, %v7323_v4  ;;  %v5924_v24 = vpop.f32.mrb[17].mxu1 }
 0x525   : > { %v3658_v57 = vpop.f32.mrb[18].mxu1 }
 0x526   : > { %v7677_v44 = vadd.f32 %v3656_v45, %v3557_v33  ;;  %v3659_v55 = vadd.f32 %v3658_v57, %v7325_v5  ;;  %v5925_v29 = vpop.f32.mrb[19].mxu1 }
 0x528   : > { %v7680_v50 = vadd.f32 %v3659_v55, %v3560_v39 }
 0x52b   : > { %v3663_v13 = vpop.f32.mrb[20].mxu1 }
 0x52c   : > { %v3664_v49 = vadd.f32 %v3663_v13, %v7331_v18  ;;  %v5928_v20 = vpop.f32.mrb[21].mxu1 }
 0x52d   : > { %v3666_v22 = vpop.f32.mrb[22].mxu1 }
 0x52e   : > { %v7683_v2 = vadd.f32 %v3664_v49, %v3565_v7  ;;  %v5929_v32 = vpop.f32.mrb[23].mxu1 }
 0x533   : > { %v3730_v42 = vpop.f32.mrb[24].mxu1 }
 0x534   : > { %v3731_v4 = vadd.f32 %v3730_v42, %v7366_v59  ;;  %v5936_v38 = vpop.f32.mrb[25].mxu1 }
 0x535   : > { %v3733_v9 = vpop.f32.mrb[26].mxu1 }
 0x536   : > { %v3734_v33 = vadd.f32 %v3733_v9, %v7368_v8  ;;  %v5937_v0 = vpop.f32.mrb[27].mxu1 }
 0x53b   : > { %v3738_v5 = vpop.f32.mrb[28].mxu1 }
 0x53c   : > { %v3739_v39 = vadd.f32 %v3738_v5, %v7376_v21  ;;  %v5940_v12 = vpop.f32.mrb[29].mxu1 }
 0x53d   : > { %v3741_v60 = vpop.f32.mrb[30].mxu1 }
 0x53e   : > { %v3742_v18 = vadd.f32 %v3741_v60, %v7378_v47  ;;  %v5941_v28 = vpop.f32.mrb[31].mxu1 }
 0x543   : > { %v3746_v30 = vpop.f32.mrb[32].mxu1 }
 0x544   : > { %v3747_v7 = vadd.f32 %v3746_v30, %v7383_v36  ;;  %v5944_v56 = vpop.f32.mrb[33].mxu1 }
 0x545   : > { %v3749_v48 = vpop.f32.mrb[34].mxu1 }
 0x546   : > { %v3750_v59 = vadd.f32 %v3749_v48, %v7385_v35  ;;  %v5945_v16 = vpop.f32.mrb[35].mxu1  ;;  %v8102_v48 = vld [vmem:[#allocation37_spill] sm:$0xff] }
 0x54b   : > { %v3754_v53 = vpop.f32.mrb[36].mxu1 }
 0x54c   : > { %v7692_v8 = vadd.f32 %v3754_v53, %v7398_v41  ;;  %v5948_v52 = vpop.f32.mrb[37].mxu1 }
 0x54d   : > { %v3757_v3 = vpop.f32.mrb[38].mxu1 }
 0x54e   : > { %v7695_v21 = vadd.f32 %v3757_v3, %v7400_v43  ;;  %v5949_v11 = vpop.f32.mrb[39].mxu1  ;;  %v6372_v3 = vld [vmem:[%s8017_s5 + $0xb0] sm:$0xff]  }
 0x54f   : > { %v6373_v11 = vld [vmem:[%s8017_s5 + $0xe0] sm:$0xff]  }
 0x553   : > { %v3762_v47 = vpop.f32.mrb[40].mxu1 }
 0x554   : > { %v7698_v45 = vadd.f32 %v3762_v47, %v7407_v62  ;;  %v5952_v36 = vpop.f32.mrb[41].mxu1 }
 0x555   : > { %v3765_v24 = vpop.f32.mrb[42].mxu1 }
 0x556   : > { %v5953_v57 = vpop.f32.mrb[43].mxu1 }
 0x55b   : > { %v3829_v55 = vpop.f32.mrb[44].mxu1 }
 0x55c   : > { %v3830_v35 = vadd.f32 %v3829_v55, %v7438_v46  ;;  %v5960_v29 = vpop.f32.mrb[45].mxu1 }
 0x55d   : > { %v3832_v13 = vpop.f32.mrb[46].mxu1 }
 0x55e   : > { %v3894_v41 = vadd.f32 %v3830_v35, %v3731_v4  ;;  %v3833_v49 = vadd.f32 %v3832_v13, %v7440_v54  ;;  %v5961_v20 = vpop.f32.mrb[47].mxu1  ;;  %v7712_v4 = vld [vmem:[%s8016_s4] ss:$0 sm:$0xff]  ;;  %v8104_v13 = vld [vmem:[#allocation39_spill] sm:$0xff] }
 0x560   : > { %v3912_v43 = vadd.f32 %v3894_v41, %v7659_v15  ;;  %v3895_v22 = vadd.f32 %v3833_v49, %v3734_v33 }
 0x562   : > { %v7704_v32 = vadd.f32 %v3912_v43, %v7600_v17  ;;  %v3913_v62 = vadd.f32 %v3895_v22, %v7662_v63 }
 0x563   : > { %v3837_v42 = vpop.f32.mrb[48].mxu1 }
 0x564   : > { %v3922_v38 = vadd.f32 %v3913_v62, %v7603_v26  ;;  %v3838_v9 = vadd.f32 %v3837_v42, %v7446_v40  ;;  %v5964_v46 = vpop.f32.mrb[49].mxu1  ;;  %v6369_v40 = vld [vmem:[%s8017_s5 + $0xa0] sm:$0xff]  }
 0x565   : > { %v3840_v54 = vpop.f32.mrb[50].mxu1  ;;  %v6377_v62 = vld [vmem:[%s8017_s5 + $0x100] sm:$0xff]  }
 0x566   : > { %v3938_v15 = vadd.f32 %v7712_v4, %v3922_v38  ;;  %v3896_v33 = vadd.f32 %v3838_v9, %v3739_v39  ;;  %v3841_v17 = vadd.f32 %v3840_v54, %v7448_v23  ;;  %v5965_v0 = vpop.f32.mrb[51].mxu1  ;;  %v8105_v54 = vld [vmem:[#allocation40_spill] sm:$0xff] }
 0x568   : > { %v3947_v5 = vmax.f32 %v3938_v15, 0.0  ;;  %v3914_v63 = vadd.f32 %v3896_v33, %v7665_v31  ;;  %v3897_v12 = vadd.f32 %v3841_v17, %v3742_v18  ;;  %v6371_v18 = vld [vmem:[%s8017_s5 + $0xa8] sm:$0xff]  }
 0x569   : > { %v6379_v17 = vld [vmem:[%s8017_s5 + $0x108] sm:$0xff]  }
 0x56a   : > { %v4028_v26 = vpack.c.bf16 %v3947_v5, %v3947_v5  ;;  %v7721_v60 = vadd.f32 %v3914_v63, %v7608_v6  ;;  %v3915_v28 = vadd.f32 %v3897_v12, %v7668_v34 }
 0x56b   : > { %v3845_v30 = vpop.f32.mrb[52].mxu1 }
 0x56c   : > { %v3924_v39 = vadd.f32 %v3915_v28, %v7611_v61  ;;  %v3846_v23 = vadd.f32 %v3845_v30, %v7456_v37  ;;  %v5968_v56 = vpop.f32.mrb[53].mxu1  ;;  %5987 = vmatmul.mubr.msk.bf16.vlgmr.msra.gmra.mrb[32].mxu0 %vm4053_vm2, %v4028_v26 }
 0x56d   : > { %6003 = vmatpush3.bf16.msra.mxu0 %v6369_v40  ;;  %v3848_v31 = vpop.f32.mrb[54].mxu1  ;;  %6010 = vmatprep.mubr.msk.bf16.mxu0 %vm6454_vm0, %v8046_v1  ;;  %v6380_v40 = vld [vmem:[%s8017_s5 + $0x110] sm:$0xff]  }
 0x56e   : > { %v3940_v6 = vadd.f32 %v7712_v4, %v3924_v39  ;;  %v3898_v34 = vadd.f32 %v3846_v23, %v3747_v7  ;;  %v3849_v16 = vadd.f32 %v3848_v31, %v8102_v48  ;;  %v5969_v61 = vpop.f32.mrb[55].mxu1  ;;  %6004 = vmatprep.subr.bf16.mxu0 %v8046_v1  ;;  %v6383_v39 = vld [vmem:[%s8017_s5 + $0x8] sm:$0xff]   ;;  %v6384_v56 = vld [vmem:[%s8017_s5 + $0x10] sm:$0xff]   ;;  %v6385_v31 = vld [vmem:[%s8017_s5 + $0x40] sm:$0xff]  }
 0x570   : > { %v3949_v37 = vmax.f32 %v3940_v6, 0.0  ;;  %v3916_v53 = vadd.f32 %v3898_v34, %v7671_v27  ;;  %v3899_v52 = vadd.f32 %v3849_v16, %v3750_v59  ;;  %v8103_v59 = vld [vmem:[#allocation38_spill] sm:$0xff]  ;;  %v6386_v6 = vld [vmem:[%s8017_s5 + $0x18] sm:$0xff]   ;;  %v6387_v34 = vld [vmem:[%s8017_s5 + $0x48] sm:$0xff]  }
 0x571   : > { %6005 = vmatpush3.bf16.msra.mxu0 %v6371_v18  ;;  %v3937_v18 = vadd.f32 %v7712_v4, %v7704_v32  ;;  %v6388_v32 = vld [vmem:[%s8017_s5 + $0x50] sm:$0xff]   ;;  %v6389_v16 = vld [vmem:[%s8017_s5 + $0x80] sm:$0xff]  }
 0x572   : > { %v4098_v47 = vpack.c.bf16 %v3949_v37, %v3949_v37  ;;  %v7743_v7 = vadd.f32 %v3916_v53, %v7616_v19  ;;  %v3917_v36 = vadd.f32 %v3899_v52, %v7674_v58  ;;  %6006 = vmatprep.subr.bf16.mxu0 %v8046_v1  ;;  %v6374_v19 = vld [vmem:[%s8017_s5 + $0xb8] sm:$0xff]   ;;  %v6375_v58 = vld [vmem:[%s8017_s5 + $0xe8] sm:$0xff]   ;;  %v3939_v37 = vadd.f32 %v7712_v4, %v7721_v60  ;;  %v6392_v60 = vld [vmem:[%s8017_s5 + $0x90] sm:$0xff]  }
 0x573   : > { %v3853_v24 = vpop.f32.mrb[56].mxu1  ;;  %v3946_v48 = vmax.f32 %v3937_v18, 0.0  ;;  %v6390_v53 = vld [vmem:[%s8017_s5 + $0x58] sm:$0xff]   ;;  %v6391_v52 = vld [vmem:[%s8017_s5 + $0x88] sm:$0xff]  }
 0x574   : > { %v3926_v27 = vadd.f32 %v3917_v36, %v7619_v10  ;;  %v3854_v57 = vadd.f32 %v3853_v24, %v8103_v59  ;;  %v5972_v55 = vpop.f32.mrb[57].mxu1  ;;  %5999 = vmatmul.mubr.msk.bf16.vlgmr.msra.gmra.mrb[64].mxu1 %vm4053_vm2, %v4098_v47  ;;  %v3941_v36 = vadd.f32 %v7712_v4, %v7743_v7  ;;  %v6394_v24 = vld [vmem:[%s8017_s5 + $0x98] sm:$0xff]  }
 0x575   : > { %6007 = vmatpush3.bf16.msra.mxu0 %v6372_v3  ;;  %6015 = vmatpush3.bf16.msra.mxu1 %v6373_v11  ;;  %v3856_v35 = vpop.f32.mrb[58].mxu1  ;;  %v4027_v61 = vpack.c.bf16 %v3946_v48, %v3946_v48  ;;  %v3948_v3 = vmax.f32 %v3939_v37, 0.0  ;;  %v6393_v11 = vld [vmem:[%s8017_s5 + $0xc0] sm:$0xff]   ;;  %v8106_v55 = vmov 0  }
 0x576   : > { %v3942_v29 = vadd.f32 %v7712_v4, %v3926_v27  ;;  %v3900_v10 = vadd.f32 %v3854_v57, %v7692_v8  ;;  %v3857_v41 = vadd.f32 %v3856_v35, %v8104_v13  ;;  %v5973_v49 = vpop.f32.mrb[59].mxu1  ;;  %6008 = vmatprep.subr.bf16.mxu0 %v8046_v1  ;;  %6016 = vmatprep.subr.bf16.mxu1 %v8046_v1  ;;  %v6376_v8 = vld [vmem:[%s8017_s5 + $0xf0] sm:$0xff]   ;;  %v6395_v27 = vld [vmem:[%s8017_s5 + $0xc8] sm:$0xff]   ;;  %v3950_v59 = vmax.f32 %v3941_v36, 0.0  ;;  %v6397_v57 = vld [vmem:[%s8017_s5 + $0xd8] sm:$0xff]  }
 0x577   : > { %6022 = vmatprep.mubr.msk.bf16.mxu1 %vm6454_vm0, %v8046_v1  ;;  %v4097_v47 = vpack.c.bf16 %v3948_v3, %v3948_v3  ;;  %v6406_v13 = vld [vmem:[%s8019_s7 + $0x24] ss:$8 sps:$4 sm:$0xff]   ;;  %v6409_v49 = vld [vmem:[%s8019_s7 + $0x34] ss:$8 sps:$4 sm:$0xff]  }
 0x578   : > { %v3951_v20 = vmax.f32 %v3942_v29, 0.0  ;;  %v3918_v43 = vadd.f32 %v3900_v10, %v7677_v44  ;;  %v3901_v22 = vadd.f32 %v3857_v41, %v7695_v21  ;;  %v4166_v7 = vpack.c.bf16 %v3950_v59, %v3950_v59  ;;  %v6400_v29 = vld [vmem:[%s8019_s7 + $0x4] ss:$8 sps:$4 sm:$0xff]   ;;  %v6403_v10 = vld [vmem:[%s8019_s7 + $0x14] ss:$8 sps:$4 sm:$0xff]  }
 0x579   : > { %6009 = vmatpush3.bf16.msra.mxu0 %v6374_v19  ;;  %6017 = vmatpush3.bf16.msra.mxu1 %v6375_v58  ;;  %v6398_v58 = vld [vmem:[%s8019_s7] ss:$8 sps:$4 sm:$0xff]  }
 0x57a   : > { %v4167_v42 = vpack.c.bf16 %v3951_v20, %v3951_v20  ;;  %v3927_v38 = vadd.f32 %v3918_v43, %v7628_v51  ;;  %v3919_v9 = vadd.f32 %v3901_v22, %v7680_v50  ;;  %6018 = vmatprep.subr.bf16.mxu1 %v8046_v1  ;;  %6026 = vmatprep.subr.bf16.mxu0 %v8046_v1  ;;  %v6378_v50 = vld [vmem:[%s8017_s5 + $0xf8] sm:$0xff]   ;;  %v6404_v41 = vld [vmem:[%s8019_s7 + $0x20] ss:$8 sps:$4 sm:$0xff]   ;;  %v6412_v43 = vld [vmem:[%s8019_s7 + $0x44] ss:$8 sps:$4 sm:$0xff]  }
 0x57b   : > { %v3861_v44 = vpop.f32.mrb[60].mxu1  ;;  %v6407_v20 = vld [vmem:[%s8019_s7 + $0x30] ss:$8 sps:$4 sm:$0xff]   ;;  %v6410_v22 = vld [vmem:[%s8019_s7 + $0x40] ss:$8 sps:$4 sm:$0xff]  }
 0x57c   : > { %v7776_v21 = vadd.f32 %v7712_v4, %v3927_v38  ;;  %v3928_v46 = vadd.f32 %v3919_v9, %v7631_v14  ;;  %v3862_v15 = vadd.f32 %v3861_v44, %v8105_v54  ;;  %v5976_v33 = vpop.f32.mrb[61].mxu1  ;;  %6011 = vmatmul.mubr.msk.bf16.vlgmr.msra.gmra.mrb[36].mxu0 %vm4053_vm2, %v4167_v42  ;;  %v6418_v42 = vld [vmem:[%s8019_s7 + $0x64] ss:$8 sps:$4 sm:$0xff]   ;;  %v6416_v38 = vld [vmem:[%s8019_s7 + $0x60] ss:$8 sps:$4 sm:$0xff]  }
 0x57d   : > { %6019 = vmatpush3.bf16.msra.mxu1 %v6376_v8  ;;  %6027 = vmatpush3.bf16.msra.mxu0 %v6377_v62  ;;  %v3864_v51 = vpop.f32.mrb[62].mxu1  ;;  %v6415_v8 = vld [vmem:[%s8019_s7 + $0x54] ss:$8 sps:$4 sm:$0xff]   ;;  %v6413_v62 = vld [vmem:[%s8019_s7 + $0x50] ss:$8 sps:$4 sm:$0xff]   ;;  %v6424_v54 = vld [vmem:[%s8021_s9 + $0x48] sm:$0xff]  }
 0x57e   : > { %v3944_v0 = vadd.f32 %v7712_v4, %v3928_v46  ;;  %v3902_v14 = vadd.f32 %v3862_v15, %v7698_v45  ;;  %v5977_v5 = vpop.f32.mrb[63].mxu1  ;;  %6020 = vmatprep.subr.bf16.mxu1 %v8046_v1  ;;  %6028 = vmatprep.subr.bf16.mxu0 %v8046_v1  ;;  %v6381_v45 = vld [vmem:[%s8017_s5] sm:$0xff]   ;;  %v3952_v35 = vmax.f32 %v7776_v21, 0.0  ;;  %v6421_v9 = vld [vmem:[%s8019_s7 + $0x74] ss:$8 sps:$4 sm:$0xff]   ;;  %v6425_v15 = vld [vmem:[%s8021_s9 + $0x8] sm:$0xff]  }
 0x57f   : > { %6034 = vmatprep.mubr.msk.bf16.mxu0 %vm6454_vm0, %v8046_v1  ;;  %v6419_v44 = vld [vmem:[%s8019_s7 + $0x70] ss:$8 sps:$4 sm:$0xff]   ;;  %v6422_v21 = vld [vmem:[%s8021_s9 + $0x40] sm:$0xff]   ;;  %v6432_v5 = vld [vmem:[%s8021_s9 + $0x68] sm:$0xff]  }
 0x580   : > { %v3953_v63 = vmax.f32 %v3944_v0, 0.0  ;;  %v3920_v12 = vadd.f32 %v3902_v14, %v7683_v2  ;;  %v6382_v2 = vld [vmem:[%s8017_s5 + $0x118] sm:$0xff]   ;;  %v4235_v19 = vpack.c.bf16 %v3952_v35, %v3952_v35  ;;  %v6423_v46 = vld [vmem:[%s8021_s9] sm:$0xff]   ;;  %v6426_v33 = vld [vmem:[%s8021_s9 + $0x50] sm:$0xff]  }
 0x581   : > { %6021 = vmatpush3.bf16.msra.mxu1 %v6378_v50  ;;  %6029 = vmatpush3.bf16.msra.mxu0 %v6379_v17  ;;  %v6427_v51 = vld [vmem:[%s8021_s9 + $0x10] sm:$0xff]   ;;  %v6428_v50 = vld [vmem:[%s8021_s9 + $0x58] sm:$0xff]   ;;  %v6430_v0 = vld [vmem:[%s8021_s9 + $0x60] sm:$0xff]  }
 0x582   : > { %v4236_v26 = vpack.c.bf16 %v3953_v63, %v3953_v63  ;;  %v3929_v28 = vadd.f32 %v3920_v12, %v7635_v25  ;;  %6030 = vmatprep.subr.bf16.mxu0 %v8046_v1  ;;  %6038 = vmatprep.subr.bf16.mxu1 %v8046_v1  ;;  %v6429_v17 = vld [vmem:[%s8021_s9 + $0x18] sm:$0xff]   ;;  %v6431_v14 = vld [vmem:[%s8021_s9 + $0x20] sm:$0xff]   ;;  %v6433_v63 = vld [vmem:[%s8021_s9 + $0x28] sm:$0xff]  }
 0x583   : > { %v6434_v12 = vld [vmem:[%s8021_s9 + $0x70] sm:$0xff]  }
 0x584   : > { %v3945_v30 = vadd.f32 %v7712_v4, %v3929_v28  ;;  %6023 = vmatmul.mubr.msk.bf16.vlgmr.msra.gmra.mrb[68].mxu1 %vm4053_vm2, %v4236_v26  ;;  %v6396_v4 = vld [vmem:[%s8017_s5 + $0xd0] sm:$0xff]  }
 0x585   : > { %6031 = vmatpush3.bf16.msra.mxu0 %v6380_v40  ;;  %6039 = vmatpush3.bf16.msra.mxu1 %v6381_v45 }
 0x586   : > { %v3954_v23 = vmax.f32 %v3945_v30, 0.0  ;;  %6032 = vmatprep.subr.bf16.mxu0 %v8046_v1  ;;  %6040 = vmatprep.subr.bf16.mxu1 %v8046_v1 }
 0x587   : > { %6046 = vmatprep.mubr.msk.bf16.mxu1 %vm6454_vm0, %v8046_v1 }
 0x588   : > { %v4304_v25 = vpack.c.bf16 %v3954_v23, %v3954_v23 }
 0x589   : > { %6033 = vmatpush3.bf16.msra.mxu0 %v6382_v2  ;;  %6041 = vmatpush3.bf16.msra.mxu1 %v6383_v39 }
 0x58a   : > { %6042 = vmatprep.subr.bf16.mxu1 %v8046_v1  ;;  %6050 = vmatprep.subr.bf16.mxu0 %v8046_v1 }
 0x58c   : > { %6035 = vmatmul.mubr.msk.bf16.vlgmr.msra.gmra.mrb[40].mxu0 %vm4053_vm2, %v4304_v25 }
 0x58d   : > { %6043 = vmatpush3.bf16.msra.mxu1 %v6384_v56  ;;  %6051 = vmatpush3.bf16.msra.mxu0 %v6385_v31 }
 0x58e   : > { %6044 = vmatprep.subr.bf16.mxu1 %v8046_v1  ;;  %6052 = vmatprep.subr.bf16.mxu0 %v8046_v1 }
 0x58f   : > { %6058 = vmatprep.mubr.msk.bf16.mxu0 %vm6454_vm0, %v8046_v1 }
 0x591   : > { %6045 = vmatpush3.bf16.msra.mxu1 %v6386_v6  ;;  %6053 = vmatpush3.bf16.msra.mxu0 %v6387_v34 }
 0x592   : > { %6054 = vmatprep.subr.bf16.mxu0 %v8046_v1  ;;  %6062 = vmatprep.subr.bf16.mxu1 %v8046_v1 }
 0x594   : > { %6047 = vmatmul.mubr.msk.bf16.vlgmr.msra.gmra.mrb[72].mxu1 %vm4053_vm2, %v4027_v61 }
 0x595   : > { %6055 = vmatpush3.bf16.msra.mxu0 %v6388_v32  ;;  %6063 = vmatpush3.bf16.msra.mxu1 %v6389_v16 }
 0x596   : > { %6056 = vmatprep.subr.bf16.mxu0 %v8046_v1  ;;  %6064 = vmatprep.subr.bf16.mxu1 %v8046_v1 }
 0x597   : > { %6070 = vmatprep.mubr.msk.bf16.mxu1 %vm6454_vm0, %v8046_v1 }
 0x599   : > { %6057 = vmatpush3.bf16.msra.mxu0 %v6390_v53  ;;  %6065 = vmatpush3.bf16.msra.mxu1 %v6391_v52 }
 0x59a   : > { %6066 = vmatprep.subr.bf16.mxu1 %v8046_v1  ;;  %6074 = vmatprep.subr.bf16.mxu0 %v8046_v1 }
 0x59c   : > { %6059 = vmatmul.mubr.msk.bf16.vlgmr.msra.gmra.mrb[44].mxu0 %vm4053_vm2, %v4097_v47 }
 0x59d   : > { %6067 = vmatpush3.bf16.msra.mxu1 %v6392_v60  ;;  %6075 = vmatpush3.bf16.msra.mxu0 %v6393_v11 }
 0x59e   : > { %6068 = vmatprep.subr.bf16.mxu1 %v8046_v1  ;;  %6076 = vmatprep.subr.bf16.mxu0 %v8046_v1 }
 0x59f   : > { %6082 = vmatprep.mubr.msk.bf16.mxu0 %vm6454_vm0, %v8046_v1 }
 0x5a1   : > { %6069 = vmatpush3.bf16.msra.mxu1 %v6394_v24  ;;  %6077 = vmatpush3.bf16.msra.mxu0 %v6395_v27 }
 0x5a2   : > { %6078 = vmatprep.subr.bf16.mxu0 %v8046_v1  ;;  %4762 = vmatprep.subr.bf16.mxu1 %v6400_v29 }
 0x5a4   : > { %6071 = vmatmul.mubr.msk.bf16.vlgmr.msra.gmra.mrb[76].mxu1 %vm4053_vm2, %v4166_v7 }
 0x5a5   : > { %6079 = vmatpush3.bf16.msra.mxu0 %v6396_v4  ;;  %4794 = vmatprep.mubr.bf16.mxu1 %v8106_v55 }
 0x5a6   : > { %6080 = vmatprep.subr.bf16.mxu0 %v8046_v1  ;;  %4763 = vmatpush1.bf16.msra.mxu1 %v6398_v58  ;;  %v6401_v1 = vld [vmem:[%s8019_s7 + $0x10] ss:$8 sps:$4 sm:$0xff]  }
 0x5a7   : > { %4764 = vmatprep.subr.bf16.mxu1 %v6403_v10 }
 0x5a9   : > { %6081 = vmatpush3.bf16.msra.mxu0 %v6397_v57 }
 0x5aa   : > { %4765 = vmatpush1.bf16.msra.mxu1 %v6401_v1  ;;  %5572 = vmatprep.subr.bf16.mxu0 %v6422_v21  ;;  %v4672_v21 = vlaneseq }
 0x5ab   : > { %4766 = vmatprep.subr.bf16.mxu1 %v6406_v13 }
 0x5ac   : > { %6083 = vmatmul.mubr.msk.bf16.vlgmr.msra.gmra.mrb[48].mxu0 %vm4053_vm2, %v4235_v19 }
 0x5ad   : > { %5573 = vmatpush3.bf16.msra.mxu0 %v6423_v46  ;;  %v4673_v46 = vshrl.u32 %v4672_v21, 7 }
 0x5ae   : > { %4767 = vmatpush1.bf16.msra.mxu1 %v6404_v41  ;;  %5574 = vmatprep.subr.bf16.mxu0 %v6424_v54 }
 0x5af   : > { %4768 = vmatprep.subr.bf16.mxu1 %v6409_v49  ;;  %v4674_v54 = vsub.s32 0, %v4673_v46 }
 0x5b1   : > { %5575 = vmatpush3.bf16.msra.mxu0 %v6425_v15  ;;  %v4670_v15 = vld [vmem:[%s8020_s8] sm:$0x3] }
 0x5b2   : > { %4769 = vmatpush1.bf16.msra.mxu1 %v6407_v20  ;;  %5576 = vmatprep.subr.bf16.mxu0 %v6426_v33  ;;  %v4678_v33 = vsub.s32 1, %v4673_v46 }
 0x5b3   : > { %4770 = vmatprep.subr.bf16.mxu1 %v6412_v43  ;;  %v5379_v43 = vld [vmem:[%s8018_s6] ss:$0 sm:$0xff] }
 0x5b5   : > { %5577 = vmatpush3.bf16.msra.mxu0 %v6427_v51  ;;  %v4675_v51 = vrot.slane %v4670_v15, %v4674_v54 }
 0x5b6   : > { %4771 = vmatpush1.bf16.msra.mxu1 %v6410_v22  ;;  %5578 = vmatprep.subr.bf16.mxu0 %v6428_v50  ;;  %v4679_v50 = vrot.slane %v4670_v15, %v4678_v33 }
 0x5b7   : > { %4772 = vmatprep.subr.bf16.mxu1 %v6415_v8 }
 0x5b9   : > { %5579 = vmatpush3.bf16.msra.mxu0 %v6429_v17 }
 0x5ba   : > { %4773 = vmatpush1.bf16.msra.mxu1 %v6413_v62  ;;  %5580 = vmatprep.subr.bf16.mxu0 %v6430_v0 }
 0x5bb   : > { %4774 = vmatprep.subr.bf16.mxu1 %v6418_v42 }
 0x5bd   : > { %5581 = vmatpush3.bf16.msra.mxu0 %v6431_v14 }
 0x5be   : > { %4775 = vmatpush1.bf16.msra.mxu1 %v6416_v38  ;;  %5582 = vmatprep.subr.bf16.mxu0 %v6432_v5  ;;  %v6435_v38 = vld [vmem:[%s8021_s9 + $0x30] sm:$0xff]  }
 0x5bf   : > { %4776 = vmatprep.subr.bf16.mxu1 %v6421_v9  ;;  %v6436_v9 = vld [vmem:[%s8021_s9 + $0x78] sm:$0xff]  }
 0x5c1   : > { %5583 = vmatpush3.bf16.msra.mxu0 %v6433_v63 }
 0x5c2   : > { %4777 = vmatpush1.bf16.msra.mxu1 %v6419_v44  ;;  %5584 = vmatprep.subr.bf16.mxu0 %v6434_v12  ;;  %v6437_v44 = vld [vmem:[%s8021_s9 + $0x38] sm:$0xff]  }
 0x5c5   : > { %5585 = vmatpush3.bf16.msra.mxu0 %v6435_v38 }
 0x5c6   : > { %5586 = vmatprep.subr.bf16.mxu0 %v6436_v9 }
 0x5c9   : > { %5587 = vmatpush3.bf16.msra.mxu0 %v6437_v44 }
 0x63f   : > { %v4091_v40 = vpop.f32.mrb[32].mxu0 }
 0x640   : > { %v5988_v45 = vpop.f32.mrb[33].mxu0 }
 0x641   : > { %v4094_v26 = vpop.f32.mrb[34].mxu0 }
 0x642   : > { %v5989_v28 = vpop.f32.mrb[35].mxu0  ;;  %v4981_v26 = vand.u32 127, %v4672_v21 }
 0x644   : > { %vm4982_vm3 = vcmp.ge.s32.totalorder %v4981_v26, 1  ;;  %vm4983_vm4 = vcmp.lt.s32.totalorder %v4981_v26, 7 }
 0x645   : > { %vm7995_vm5 = vmand %vm4982_vm3, %vm4983_vm4 }
 0x647   : > { %v4160_v30 = vpop.f32.mrb[64].mxu1 }
 0x648   : > { %v6000_v2 = vpop.f32.mrb[65].mxu1 }
 0x649   : > { %v4163_v39 = vpop.f32.mrb[66].mxu1 }
 0x64a   : > { %v6001_v23 = vpop.f32.mrb[67].mxu1 }
 0x64f   : > { %v4229_v25 = vpop.f32.mrb[36].mxu0 }
 0x650   : > { %v6012_v56 = vpop.f32.mrb[37].mxu0 }
 0x651   : > { %v4232_v31 = vpop.f32.mrb[38].mxu0 }
 0x652   : > { %v6013_v18 = vpop.f32.mrb[39].mxu0 }
 0x657   : > { %v4298_v6 = vpop.f32.mrb[68].mxu1 }
 0x658   : > { %v6024_v34 = vpop.f32.mrb[69].mxu1 }
 0x659   : > { %v4301_v48 = vpop.f32.mrb[70].mxu1 }
 0x65a   : > { %v6025_v32 = vpop.f32.mrb[71].mxu1 }
 0x65f   : > { %v4366_v16 = vpop.f32.mrb[40].mxu0 }
 0x660   : > { %v6036_v61 = vpop.f32.mrb[41].mxu0 }
 0x661   : > { %v4369_v37 = vpop.f32.mrb[42].mxu0 }
 0x662   : > { %v6037_v53 = vpop.f32.mrb[43].mxu0 }
 0x667   : > { %v4433_v52 = vpop.f32.mrb[72].mxu1 }
 0x668   : > { %v4434_v3 = vadd.f32 %v4433_v52, %v4091_v40  ;;  %v6048_v60 = vpop.f32.mrb[73].mxu1 }
 0x669   : > { %v4436_v11 = vpop.f32.mrb[74].mxu1 }
 0x66a   : > { %v6049_v47 = vpop.f32.mrb[75].mxu1 }
 0x66f   : > { %v4500_v36 = vpop.f32.mrb[44].mxu0 }
 0x670   : > { %v4501_v24 = vadd.f32 %v4500_v36, %v4160_v30  ;;  %v6060_v27 = vpop.f32.mrb[45].mxu0  ;;  %v5396_v30 = vld [vmem:[%s8022_s10] ss:$0 sm:$0xff] }
 0x671   : > { %v4503_v59 = vpop.f32.mrb[46].mxu0 }
 0x672   : > { %v4640_v4 = vadd.f32 %v4501_v24, %v4434_v3  ;;  %v6061_v7 = vpop.f32.mrb[47].mxu0 }
 0x677   : > { %v4567_v57 = vpop.f32.mrb[76].mxu1 }
 0x678   : > { %v4568_v55 = vadd.f32 %v4567_v57, %v4229_v25  ;;  %v6072_v35 = vpop.f32.mrb[77].mxu1 }
 0x679   : > { %v4570_v19 = vpop.f32.mrb[78].mxu1 }
 0x67a   : > { %v6073_v58 = vpop.f32.mrb[79].mxu1 }
 0x67f   : > { %v4634_v29 = vpop.f32.mrb[48].mxu0 }
 0x680   : > { %v4635_v10 = vadd.f32 %v4634_v29, %v4298_v6  ;;  %v6084_v1 = vpop.f32.mrb[49].mxu0 }
 0x681   : > { %v4637_v13 = vpop.f32.mrb[50].mxu0 }
 0x682   : > { %v4641_v41 = vadd.f32 %v4635_v10, %v4568_v55  ;;  %v6085_v49 = vpop.f32.mrb[51].mxu0 }
 0x684   : > { %v4642_v20 = vadd.f32 %v4641_v41, %v4640_v4 }
 0x686   : > { %v4643_v22 = vadd.f32 %v4642_v20, %v4366_v16 }
 0x688   : > { %v4651_v8 = vadd.f32 %v5379_v43, %v4643_v22 }
 0x68a   : > { %v4652_v62 = vmax.f32 %v4651_v8, 0.0 }
 0x68c   : > { %v4653_v42 = vpack.c.bf16 %v4652_v62, %v4652_v62 }
 0x68e   : > { %4795 = vmatmul.mubr.bf16.vlgmr.msra.gmra.mrb[80].mxu1 %v4653_v42 }
 0x761   : > { %v4796_v17 = vpop.f32.mrb[80].mxu1 }
 0x762   : > { %v4797_v0 = vadd.f32 %v4796_v17, %v4675_v51  ;;  %v4798_v14 = vpop.f32.mrb[81].mxu1 }
 0x763   : > { %v4799_v5 = vadd.f32 %v4798_v14, %v4679_v50  ;;  %v4800_v63 = vpop.f32.mrb[82].mxu1 }
 0x764   : > { %v4801_v12 = vpop.f32.mrb[83].mxu1  ;;  %v4803_v45 = vpack.c.bf16 %v4797_v0, %v4797_v0 }
 0x765   : > { %v4804_v40 = vpack.c.bf16 %v4799_v5, %v4799_v5 }
 0x767   : > { %4972 = vmatprep.mubr.bf16.mxu0 %v4804_v40 }
 0x768   : > { %4973 = vmatmul.mubr.bf16.vlgmr.msra.gmra.mrb[52].mxu0 %v4803_v45 }
 0x83b   : > { %v5588_v28 = vpop.f32.mrb[52].mxu0 }
 0x83c   : > { %v5589_v2 = vpop.f32.mrb[53].mxu0 }
 0x83d   : > { %v5590_v39 = vadd.f32 %v5589_v2, %v5588_v28  ;;  %v5591_v23 = vpop.f32.mrb[54].mxu0 }
 0x83e   : > { %v5592_v25 = vpop.f32.mrb[55].mxu0 }
 0x83f   : > { %v4975_v31 = vadd.f32 %v5590_v39, %v5396_v30 }
 0x841   : > { %v4985_v18 = vsel %vm7995_vm5, %v4975_v31, -1e+30 }
 0x842   : > { %4986 = vmax.xlane.f32.xlu0 %v4985_v18 }
 0x8cf   : > { %v4987_v6 = vpop.xlane.xlu0 %4986 }
 0x8d0   : > { %v4988_v34 = vsub.f32 %v4985_v18, %v4987_v6 }
 0x8d2   : > { %v4989_v48 = vmul.f32 1.442695, %v4988_v34 }
 0x8d4   : > { %6438 = vpow2.f32 %v4989_v48 }
 0x8de   : > { %v6439_v32 = vpop.eup %6438 }
 0x8df   : > { %v4991_v16 = vsel %vm7995_vm5, %v6439_v32, 0.0 }
 0x8e0   : > { %4992 = vadd.xlane.f32.xlu0 %v4991_v16 }
 0x96d   : > { %v4993_v61 = vpop.xlane.xlu0 %4992 }
 0x96e   : > { %6440 = vlog2.f32 %v4993_v61 }
 0x978   : > { %v6441_v37 = vpop.eup %6440 }
 0x979   : > { %v4995_v53 = vmul.f32 0.6931472, %v6441_v37 }
 0x97b   : > { %v4996_v52 = vadd.f32 %v4995_v53, %v4987_v6 }
 0x97d   : > { %v4997_v3 = vsub.f32 %v4975_v31, %v4996_v52 }
 0x97f   : > { %v4998_v60 = vsel %vm7995_vm5, %v4997_v3, %v4975_v31 }
 0x980   : > { %4999 = vst [vmem:[%s384_s19] sm:$0xff] %v4998_v60 }
 0x981 PF: > { %s21_s17 = sadd.s32 1, %s6450_s17  }
 0x982   : > { %p18_p4 = scmp.ge.s32.totalorder %s21_s17, 4  }
 0x984   :  { %20 = sbr.rel (!%p18_p4) target bundleno = 1 (0x1), region = 94 }

</bundles_post_ra>
